<compile_context>
chip_gen: v5e
topology: v5e:2x2
jax: 0.10.0
libtpu: 0.0.40
codegen_flags: <defaults>
</compile_context>

<pallas_src>
import jax
import jax.numpy as jnp
from jax.experimental import pallas as pl
from jax.experimental.pallas import tpu as pltpu


def _mlp_kernel(x_ref,
                w1_ref, b1_ref,
                w2_ref, b2_ref,
                w3_ref, b3_ref,
                w4_ref, b4_ref,
                o_ref):
    """One batch tile of the fused MLP.

    x_ref / w*_ref are bf16 (MXU operands); b*_ref are f32 and are added to the
    f32 MXU accumulator. All weights live fully in VMEM.
    """
    h = jnp.dot(x_ref[...], w1_ref[...], preferred_element_type=jnp.float32)
    h = jnp.maximum(h + b1_ref[...], 0.0)

    h = jnp.dot(h.astype(jnp.bfloat16), w2_ref[...],
                preferred_element_type=jnp.float32)
    h = jnp.maximum(h + b2_ref[...], 0.0)

    h = jnp.dot(h.astype(jnp.bfloat16), w3_ref[...],
                preferred_element_type=jnp.float32)
    h = jnp.maximum(h + b3_ref[...], 0.0)

    # Dropout(p=0.25) is identity in eval/inference mode.
    # TODO(synk): add a pltpu.prng_seed / pltpu.prng_random_bits Bernoulli mask if
    #             training-mode dropout semantics are ever required.

    out = jnp.dot(h.astype(jnp.bfloat16), w4_ref[...],
                  preferred_element_type=jnp.float32)
    o_ref[...] = (out + b4_ref[...]).astype(o_ref.dtype)


def _round_up(x, m):
    return ((x + m - 1) // m) * m


def fully_connected_forward(x, params, *, batch_tile=256):
    """Fused MLP forward pass via a single Pallas kernel.

    x:      (B, input_size) float32 (or bf16)
    params: dict with w1..w4 stored as (in, out) and b1..b4 as (1, out), float32.

    batch_tile: max batch rows per grid step. 256 keeps the MXU full on v5e
      (4x128^2) and matches the 256-wide MXUs on v6e/v7x. Small batches use a
      smaller tile (multiple of 8) so no MXU work / writeback is wasted.
    """
    B, in_features = x.shape
    out_features = params["w4"].shape[1]

    # Adaptive tile: smallest multiple of 8 covering B, capped at batch_tile.
    tile = min(batch_tile, max(8, _round_up(B, 8)))

    # Pad batch up to a multiple of the tile (handles ragged batches) and pad the
    # output feature dim to a lane-dense multiple of 128 (unmasked stores).
    b_pad = _round_up(B, tile)
    n_pad = _round_up(out_features, 128)

    x_p = x if b_pad == B else jnp.pad(x, ((0, b_pad - B), (0, 0)))
    x_bf16 = x_p.astype(jnp.bfloat16)

    # Cast weights to bf16 once, outside the grid; biases stay f32.
    w1 = params["w1"].astype(jnp.bfloat16)
    w2 = params["w2"].astype(jnp.bfloat16)
    w3 = params["w3"].astype(jnp.bfloat16)
    w4 = params["w4"].astype(jnp.bfloat16)
    b1 = params["b1"].astype(jnp.float32)
    b2 = params["b2"].astype(jnp.float32)
    b3 = params["b3"].astype(jnp.float32)
    b4 = params["b4"].astype(jnp.float32)
    if n_pad != out_features:
        w4 = jnp.pad(w4, ((0, 0), (0, n_pad - out_features)))
        b4 = jnp.pad(b4, ((0, 0), (0, n_pad - out_features)))

    consts = (w1, b1, w2, b2, w3, b3, w4, b4)
    grid = (b_pad // tile,)

    def batch_map(i):
        return (i, 0)

    def const_map(i):
        return (0, 0)

    def _const_spec(shape, mode):
        if mode is None:
            return pl.BlockSpec(shape, const_map)
        return pl.BlockSpec(shape, const_map, pipeline_mode=mode)

    matmul_flops = 2 * b_pad * sum(
        int(w.shape[0]) * int(w.shape[1]) for w in (w1, w2, w3, w4))
    bytes_accessed = (int(x_bf16.size) * 2
                      + sum(int(c.size) * c.dtype.itemsize for c in consts)
                      + b_pad * n_pad * 4)
    cost = pl.CostEstimate(flops=matmul_flops, transcendentals=0,
                           bytes_accessed=bytes_accessed)

    def _call(weight_mode):
        in_specs = [pl.BlockSpec((tile, in_features), batch_map)]
        in_specs += [_const_spec(c.shape, weight_mode) for c in consts]
        out_spec = pl.BlockSpec((tile, n_pad), batch_map)
        return pl.pallas_call(
            _mlp_kernel,
            out_shape=jax.ShapeDtypeStruct((b_pad, n_pad), jnp.float32),
            grid_spec=pltpu.PrefetchScalarGridSpec(
                num_scalar_prefetch=0,
                grid=grid,
                in_specs=in_specs,
                out_specs=out_spec,
            ),
            compiler_params=pltpu.CompilerParams(
                dimension_semantics=("parallel",),
                vmem_limit_bytes=32 * 1024 * 1024,
            ),
            cost_estimate=cost,
        )(x_bf16, *consts)

    try:
        # Weights/biases are grid-invariant: single-buffer them instead of the
        # default double-buffering (saves ~1.4 MB VMEM; tidy on v7x's 64 MiB).
        out = _call(pl.Buffered(1))
    except Exception:
        # Fallback for Pallas builds without BlockSpec pipeline_mode support.
        out = _call(None)

    return out[:B, :out_features]


def init_params(key, input_size, output_size):
    """PyTorch nn.Linear-style init: U(-1/sqrt(fan_in), 1/sqrt(fan_in)).

    Weights stored as (in, out) so the kernel computes x @ W (== PyTorch x @ W.T).
    """
    dims = [(input_size, 256), (256, 512), (512, 1024), (1024, output_size)]
    params = {}
    for idx, (fan_in, fan_out) in enumerate(dims, start=1):
        key, kw, kb = jax.random.split(key, 3)
        bound = 1.0 / (fan_in ** 0.5)
        params[f"w{idx}"] = jax.random.uniform(
            kw, (fan_in, fan_out), jnp.float32, -bound, bound)
        params[f"b{idx}"] = jax.random.uniform(
            kb, (1, fan_out), jnp.float32, -bound, bound)
    return params


def reference_forward(x, params):
    """Pure-JAX reference with the same bf16-operand / f32-accumulate numerics."""
    def layer(h, w, b, relu):
        y = jnp.dot(h.astype(jnp.bfloat16), w.astype(jnp.bfloat16),
                    preferred_element_type=jnp.float32) + b.astype(jnp.float32)
        return jnp.maximum(y, 0.0) if relu else y

    h = layer(x, params["w1"], params["b1"], True)
    h = layer(h, params["w2"], params["b2"], True)
    h = layer(h, params["w3"], params["b3"], True)
    # dropout == identity (eval mode)
    return layer(h, params["w4"], params["b4"], False)


if __name__ == "__main__":
    input_size = 32
    output_size = 16

    key = jax.random.PRNGKey(0)
    key, kx1, kx2 = jax.random.split(key, 3)
    params = init_params(key, input_size, output_size)

    # Small case: batch=8 -> adaptive tile of 8, single grid step, no waste.
    x_small = jax.random.normal(kx1, (8, input_size), jnp.float32)
    out_small = jax.block_until_ready(fully_connected_forward(x_small, params))
    ref_small = reference_forward(x_small, params)
    assert out_small.shape == (8, output_size)
    assert jnp.allclose(out_small, ref_small, atol=2e-2, rtol=2e-2), \
        "small-batch mismatch vs JAX reference"

    # Multi-tile case: batch=384 -> tile 256, padded to 512, 2 grid steps
    # (exercises batch padding + megacore-parallel grid).
    x_big = jax.random.normal(kx2, (384, input_size), jnp.float32)
    out_big = jax.block_until_ready(fully_connected_forward(x_big, params))
    ref_big = reference_forward(x_big, params)
    assert out_big.shape == (384, output_size)
    assert jnp.allclose(out_big, ref_big, atol=2e-2, rtol=2e-2), \
        "multi-tile mismatch vs JAX reference"

    print("KERNEL_OK")
</pallas_src>

<mosaic_0001>
module attributes {stable_mosaic.version = 11 : i64} {
  func.func @_mlp_kernel(%arg0: i32, %arg1: memref<8x32xbf16, #tpu.memory_space<vmem>>, %arg2: memref<32x256xbf16, #tpu.memory_space<vmem>>, %arg3: memref<1x256xf32, #tpu.memory_space<vmem>>, %arg4: memref<256x512xbf16, #tpu.memory_space<vmem>>, %arg5: memref<1x512xf32, #tpu.memory_space<vmem>>, %arg6: memref<512x1024xbf16, #tpu.memory_space<vmem>>, %arg7: memref<1x1024xf32, #tpu.memory_space<vmem>>, %arg8: memref<1024x128xbf16, #tpu.memory_space<vmem>>, %arg9: memref<1x128xf32, #tpu.memory_space<vmem>>, %arg10: memref<8x128xf32, #tpu.memory_space<vmem>>) attributes {dimension_semantics = [#tpu.dimension_semantics<parallel>], iteration_bounds = array<i64: 1>, scalar_prefetch = 0 : i64, scratch_operands = 0 : i64, tpu.core_type = #tpu.core_type<tc>, window_params = [{transform_indices = @transform_0, window_bounds = array<i64: 8, 32>}, {pipeline_mode = #tpu.pipeline_mode<synchronous>, transform_indices = @transform_1, window_bounds = array<i64: 32, 256>}, {pipeline_mode = #tpu.pipeline_mode<synchronous>, transform_indices = @transform_2, window_bounds = array<i64: 1, 256>}, {pipeline_mode = #tpu.pipeline_mode<synchronous>, transform_indices = @transform_3, window_bounds = array<i64: 256, 512>}, {pipeline_mode = #tpu.pipeline_mode<synchronous>, transform_indices = @transform_4, window_bounds = array<i64: 1, 512>}, {pipeline_mode = #tpu.pipeline_mode<synchronous>, transform_indices = @transform_5, window_bounds = array<i64: 512, 1024>}, {pipeline_mode = #tpu.pipeline_mode<synchronous>, transform_indices = @transform_6, window_bounds = array<i64: 1, 1024>}, {pipeline_mode = #tpu.pipeline_mode<synchronous>, transform_indices = @transform_7, window_bounds = array<i64: 1024, 128>}, {pipeline_mode = #tpu.pipeline_mode<synchronous>, transform_indices = @transform_8, window_bounds = array<i64: 1, 128>}, {transform_indices = @transform_9, window_bounds = array<i64: 8, 128>}]} {
    %c0 = arith.constant 0 : index
    %c0_0 = arith.constant 0 : index
    %0 = vector.load %arg1[%c0, %c0_0] : memref<8x32xbf16, #tpu.memory_space<vmem>>, vector<8x32xbf16>
    %c0_1 = arith.constant 0 : index
    %c0_2 = arith.constant 0 : index
    %1 = vector.load %arg2[%c0_1, %c0_2] : memref<32x256xbf16, #tpu.memory_space<vmem>>, vector<32x256xbf16>
    %cst = arith.constant dense<0.000000e+00> : vector<8x256xf32>
    %2 = tpu.matmul %0, %1, %cst {dimension_numbers = #tpu.dot_dimension_numbers<[1], [0], [0], [1], [0, 0, 1, 1], [], []>} : vector<8x32xbf16>, vector<32x256xbf16>, vector<8x256xf32> -> vector<8x256xf32>
    %c0_3 = arith.constant 0 : index
    %c0_4 = arith.constant 0 : index
    %3 = vector.load %arg3[%c0_3, %c0_4] : memref<1x256xf32, #tpu.memory_space<vmem>>, vector<1x256xf32>
    %4 = vector.broadcast %3 : vector<1x256xf32> to vector<8x256xf32>
    %5 = arith.addf %2, %4 : vector<8x256xf32>
    %cst_5 = arith.constant 0.000000e+00 : f32
    %6 = vector.broadcast %cst_5 : f32 to vector<8x256xf32>
    %7 = arith.maximumf %5, %6 : vector<8x256xf32>
    %8 = arith.truncf %7 : vector<8x256xf32> to vector<8x256xbf16>
    %c0_6 = arith.constant 0 : index
    %c0_7 = arith.constant 0 : index
    %9 = vector.load %arg4[%c0_6, %c0_7] : memref<256x512xbf16, #tpu.memory_space<vmem>>, vector<256x512xbf16>
    %cst_8 = arith.constant dense<0.000000e+00> : vector<8x512xf32>
    %10 = tpu.matmul %8, %9, %cst_8 {dimension_numbers = #tpu.dot_dimension_numbers<[1], [0], [0], [1], [0, 0, 1, 1], [], []>} : vector<8x256xbf16>, vector<256x512xbf16>, vector<8x512xf32> -> vector<8x512xf32>
    %c0_9 = arith.constant 0 : index
    %c0_10 = arith.constant 0 : index
    %11 = vector.load %arg5[%c0_9, %c0_10] : memref<1x512xf32, #tpu.memory_space<vmem>>, vector<1x512xf32>
    %12 = vector.broadcast %11 : vector<1x512xf32> to vector<8x512xf32>
    %13 = arith.addf %10, %12 : vector<8x512xf32>
    %cst_11 = arith.constant 0.000000e+00 : f32
    %14 = vector.broadcast %cst_11 : f32 to vector<8x512xf32>
    %15 = arith.maximumf %13, %14 : vector<8x512xf32>
    %16 = arith.truncf %15 : vector<8x512xf32> to vector<8x512xbf16>
    %c0_12 = arith.constant 0 : index
    %c0_13 = arith.constant 0 : index
    %17 = vector.load %arg6[%c0_12, %c0_13] : memref<512x1024xbf16, #tpu.memory_space<vmem>>, vector<512x1024xbf16>
    %cst_14 = arith.constant dense<0.000000e+00> : vector<8x1024xf32>
    %18 = tpu.matmul %16, %17, %cst_14 {dimension_numbers = #tpu.dot_dimension_numbers<[1], [0], [0], [1], [0, 0, 1, 1], [], []>} : vector<8x512xbf16>, vector<512x1024xbf16>, vector<8x1024xf32> -> vector<8x1024xf32>
    %c0_15 = arith.constant 0 : index
    %c0_16 = arith.constant 0 : index
    %19 = vector.load %arg7[%c0_15, %c0_16] : memref<1x1024xf32, #tpu.memory_space<vmem>>, vector<1x1024xf32>
    %20 = vector.broadcast %19 : vector<1x1024xf32> to vector<8x1024xf32>
    %21 = arith.addf %18, %20 : vector<8x1024xf32>
    %cst_17 = arith.constant 0.000000e+00 : f32
    %22 = vector.broadcast %cst_17 : f32 to vector<8x1024xf32>
    %23 = arith.maximumf %21, %22 : vector<8x1024xf32>
    %24 = arith.truncf %23 : vector<8x1024xf32> to vector<8x1024xbf16>
    %c0_18 = arith.constant 0 : index
    %c0_19 = arith.constant 0 : index
    %25 = vector.load %arg8[%c0_18, %c0_19] : memref<1024x128xbf16, #tpu.memory_space<vmem>>, vector<1024x128xbf16>
    %cst_20 = arith.constant dense<0.000000e+00> : vector<8x128xf32>
    %26 = tpu.matmul %24, %25, %cst_20 {dimension_numbers = #tpu.dot_dimension_numbers<[1], [0], [0], [1], [0, 0, 1, 1], [], []>} : vector<8x1024xbf16>, vector<1024x128xbf16>, vector<8x128xf32> -> vector<8x128xf32>
    %c0_21 = arith.constant 0 : index
    %c0_22 = arith.constant 0 : index
    %27 = vector.load %arg9[%c0_21, %c0_22] : memref<1x128xf32, #tpu.memory_space<vmem>>, vector<1x128xf32>
    %28 = vector.broadcast %27 : vector<1x128xf32> to vector<8x128xf32>
    %29 = arith.addf %26, %28 : vector<8x128xf32>
    %c0_23 = arith.constant 0 : index
    %c0_24 = arith.constant 0 : index
    %30 = vector.load %arg10[%c0_23, %c0_24] : memref<8x128xf32, #tpu.memory_space<vmem>>, vector<8x128xf32>
    tpu.vector_store %arg10[%c0_23, %c0_24], %29 {strides = array<i32>} : memref<8x128xf32, #tpu.memory_space<vmem>>, vector<8x128xf32>,
    return
  }
  func.func @transform_0(%arg0: i32) -> (i32, i32) {
    %c0_i32 = arith.constant 0 : i32
    %c0_i32_0 = arith.constant 0 : i32
    return %arg0, %c0_i32 : i32, i32
  }
  func.func @transform_1(%arg0: i32) -> (i32, i32) {
    %c0_i32 = arith.constant 0 : i32
    %c0_i32_0 = arith.constant 0 : i32
    %c0_i32_1 = arith.constant 0 : i32
    return %c0_i32, %c0_i32_0 : i32, i32
  }
  func.func @transform_2(%arg0: i32) -> (i32, i32) {
    %c0_i32 = arith.constant 0 : i32
    %c0_i32_0 = arith.constant 0 : i32
    %c0_i32_1 = arith.constant 0 : i32
    return %c0_i32, %c0_i32_0 : i32, i32
  }
  func.func @transform_3(%arg0: i32) -> (i32, i32) {
    %c0_i32 = arith.constant 0 : i32
    %c0_i32_0 = arith.constant 0 : i32
    %c0_i32_1 = arith.constant 0 : i32
    return %c0_i32, %c0_i32_0 : i32, i32
  }
  func.func @transform_4(%arg0: i32) -> (i32, i32) {
    %c0_i32 = arith.constant 0 : i32
    %c0_i32_0 = arith.constant 0 : i32
    %c0_i32_1 = arith.constant 0 : i32
    return %c0_i32, %c0_i32_0 : i32, i32
  }
  func.func @transform_5(%arg0: i32) -> (i32, i32) {
    %c0_i32 = arith.constant 0 : i32
    %c0_i32_0 = arith.constant 0 : i32
    %c0_i32_1 = arith.constant 0 : i32
    return %c0_i32, %c0_i32_0 : i32, i32
  }
  func.func @transform_6(%arg0: i32) -> (i32, i32) {
    %c0_i32 = arith.constant 0 : i32
    %c0_i32_0 = arith.constant 0 : i32
    %c0_i32_1 = arith.constant 0 : i32
    return %c0_i32, %c0_i32_0 : i32, i32
  }
  func.func @transform_7(%arg0: i32) -> (i32, i32) {
    %c0_i32 = arith.constant 0 : i32
    %c0_i32_0 = arith.constant 0 : i32
    %c0_i32_1 = arith.constant 0 : i32
    return %c0_i32, %c0_i32_0 : i32, i32
  }
  func.func @transform_8(%arg0: i32) -> (i32, i32) {
    %c0_i32 = arith.constant 0 : i32
    %c0_i32_0 = arith.constant 0 : i32
    %c0_i32_1 = arith.constant 0 : i32
    return %c0_i32, %c0_i32_0 : i32, i32
  }
  func.func @transform_9(%arg0: i32) -> (i32, i32) {
    %c0_i32 = arith.constant 0 : i32
    %c0_i32_0 = arith.constant 0 : i32
    return %arg0, %c0_i32 : i32, i32
  }
}

module attributes {stable_mosaic.version = 11 : i64} {
  func.func @_mlp_kernel(%arg0: i32, %arg1: memref<8x32xbf16, #tpu.memory_space<vmem>>, %arg2: memref<32x256xbf16, #tpu.memory_space<vmem>>, %arg3: memref<1x256xf32, #tpu.memory_space<vmem>>, %arg4: memref<256x512xbf16, #tpu.memory_space<vmem>>, %arg5: memref<1x512xf32, #tpu.memory_space<vmem>>, %arg6: memref<512x1024xbf16, #tpu.memory_space<vmem>>, %arg7: memref<1x1024xf32, #tpu.memory_space<vmem>>, %arg8: memref<1024x128xbf16, #tpu.memory_space<vmem>>, %arg9: memref<1x128xf32, #tpu.memory_space<vmem>>, %arg10: memref<8x128xf32, #tpu.memory_space<vmem>>) attributes {dimension_semantics = [#tpu.dimension_semantics<parallel>], iteration_bounds = array<i64: 1>, scalar_prefetch = 0 : i64, scratch_operands = 0 : i64, tpu.core_type = #tpu.core_type<tc>, window_params = [{transform_indices = @transform_0, window_bounds = array<i64: 8, 32>}, {pipeline_mode = #tpu.pipeline_mode<synchronous>, transform_indices = @transform_1, window_bounds = array<i64: 32, 256>}, {pipeline_mode = #tpu.pipeline_mode<synchronous>, transform_indices = @transform_2, window_bounds = array<i64: 1, 256>}, {pipeline_mode = #tpu.pipeline_mode<synchronous>, transform_indices = @transform_3, window_bounds = array<i64: 256, 512>}, {pipeline_mode = #tpu.pipeline_mode<synchronous>, transform_indices = @transform_4, window_bounds = array<i64: 1, 512>}, {pipeline_mode = #tpu.pipeline_mode<synchronous>, transform_indices = @transform_5, window_bounds = array<i64: 512, 1024>}, {pipeline_mode = #tpu.pipeline_mode<synchronous>, transform_indices = @transform_6, window_bounds = array<i64: 1, 1024>}, {pipeline_mode = #tpu.pipeline_mode<synchronous>, transform_indices = @transform_7, window_bounds = array<i64: 1024, 128>}, {pipeline_mode = #tpu.pipeline_mode<synchronous>, transform_indices = @transform_8, window_bounds = array<i64: 1, 128>}, {transform_indices = @transform_9, window_bounds = array<i64: 8, 128>}]} {
    %c0 = arith.constant 0 : index
    %c0_0 = arith.constant 0 : index
    %0 = vector.load %arg1[%c0, %c0_0] : memref<8x32xbf16, #tpu.memory_space<vmem>>, vector<8x32xbf16>
    %c0_1 = arith.constant 0 : index
    %c0_2 = arith.constant 0 : index
    %1 = vector.load %arg2[%c0_1, %c0_2] : memref<32x256xbf16, #tpu.memory_space<vmem>>, vector<32x256xbf16>
    %cst = arith.constant dense<0.000000e+00> : vector<8x256xf32>
    %2 = tpu.matmul %0, %1, %cst {dimension_numbers = #tpu.dot_dimension_numbers<[1], [0], [0], [1], [0, 0, 1, 1], [], []>} : vector<8x32xbf16>, vector<32x256xbf16>, vector<8x256xf32> -> vector<8x256xf32>
    %c0_3 = arith.constant 0 : index
    %c0_4 = arith.constant 0 : index
    %3 = vector.load %arg3[%c0_3, %c0_4] : memref<1x256xf32, #tpu.memory_space<vmem>>, vector<1x256xf32>
    %4 = vector.broadcast %3 : vector<1x256xf32> to vector<8x256xf32>
    %5 = arith.addf %2, %4 : vector<8x256xf32>
    %cst_5 = arith.constant 0.000000e+00 : f32
    %6 = vector.broadcast %cst_5 : f32 to vector<8x256xf32>
    %7 = arith.maximumf %5, %6 : vector<8x256xf32>
    %8 = arith.truncf %7 : vector<8x256xf32> to vector<8x256xbf16>
    %c0_6 = arith.constant 0 : index
    %c0_7 = arith.constant 0 : index
    %9 = vector.load %arg4[%c0_6, %c0_7] : memref<256x512xbf16, #tpu.memory_space<vmem>>, vector<256x512xbf16>
    %cst_8 = arith.constant dense<0.000000e+00> : vector<8x512xf32>
    %10 = tpu.matmul %8, %9, %cst_8 {dimension_numbers = #tpu.dot_dimension_numbers<[1], [0], [0], [1], [0, 0, 1, 1], [], []>} : vector<8x256xbf16>, vector<256x512xbf16>, vector<8x512xf32> -> vector<8x512xf32>
    %c0_9 = arith.constant 0 : index
    %c0_10 = arith.constant 0 : index
    %11 = vector.load %arg5[%c0_9, %c0_10] : memref<1x512xf32, #tpu.memory_space<vmem>>, vector<1x512xf32>
    %12 = vector.broadcast %11 : vector<1x512xf32> to vector<8x512xf32>
    %13 = arith.addf %10, %12 : vector<8x512xf32>
    %cst_11 = arith.constant 0.000000e+00 : f32
    %14 = vector.broadcast %cst_11 : f32 to vector<8x512xf32>
    %15 = arith.maximumf %13, %14 : vector<8x512xf32>
    %16 = arith.truncf %15 : vector<8x512xf32> to vector<8x512xbf16>
    %c0_12 = arith.constant 0 : index
    %c0_13 = arith.constant 0 : index
    %17 = vector.load %arg6[%c0_12, %c0_13] : memref<512x1024xbf16, #tpu.memory_space<vmem>>, vector<512x1024xbf16>
    %cst_14 = arith.constant dense<0.000000e+00> : vector<8x1024xf32>
    %18 = tpu.matmul %16, %17, %cst_14 {dimension_numbers = #tpu.dot_dimension_numbers<[1], [0], [0], [1], [0, 0, 1, 1], [], []>} : vector<8x512xbf16>, vector<512x1024xbf16>, vector<8x1024xf32> -> vector<8x1024xf32>
    %c0_15 = arith.constant 0 : index
    %c0_16 = arith.constant 0 : index
    %19 = vector.load %arg7[%c0_15, %c0_16] : memref<1x1024xf32, #tpu.memory_space<vmem>>, vector<1x1024xf32>
    %20 = vector.broadcast %19 : vector<1x1024xf32> to vector<8x1024xf32>
    %21 = arith.addf %18, %20 : vector<8x1024xf32>
    %cst_17 = arith.constant 0.000000e+00 : f32
    %22 = vector.broadcast %cst_17 : f32 to vector<8x1024xf32>
    %23 = arith.maximumf %21, %22 : vector<8x1024xf32>
    %24 = arith.truncf %23 : vector<8x1024xf32> to vector<8x1024xbf16>
    %c0_18 = arith.constant 0 : index
    %c0_19 = arith.constant 0 : index
    %25 = vector.load %arg8[%c0_18, %c0_19] : memref<1024x128xbf16, #tpu.memory_space<vmem>>, vector<1024x128xbf16>
    %cst_20 = arith.constant dense<0.000000e+00> : vector<8x128xf32>
    %26 = tpu.matmul %24, %25, %cst_20 {dimension_numbers = #tpu.dot_dimension_numbers<[1], [0], [0], [1], [0, 0, 1, 1], [], []>} : vector<8x1024xbf16>, vector<1024x128xbf16>, vector<8x128xf32> -> vector<8x128xf32>
    %c0_21 = arith.constant 0 : index
    %c0_22 = arith.constant 0 : index
    %27 = vector.load %arg9[%c0_21, %c0_22] : memref<1x128xf32, #tpu.memory_space<vmem>>, vector<1x128xf32>
    %28 = vector.broadcast %27 : vector<1x128xf32> to vector<8x128xf32>
    %29 = arith.addf %26, %28 : vector<8x128xf32>
    %c0_23 = arith.constant 0 : index
    %c0_24 = arith.constant 0 : index
    %30 = vector.load %arg10[%c0_23, %c0_24] : memref<8x128xf32, #tpu.memory_space<vmem>>, vector<8x128xf32>
    tpu.vector_store %arg10[%c0_23, %c0_24], %29 {strides = array<i32>} : memref<8x128xf32, #tpu.memory_space<vmem>>, vector<8x128xf32>,
    return
  }
  func.func @transform_0(%arg0: i32) -> (i32, i32) {
    %c0_i32 = arith.constant 0 : i32
    %c0_i32_0 = arith.constant 0 : i32
    return %arg0, %c0_i32 : i32, i32
  }
  func.func @transform_1(%arg0: i32) -> (i32, i32) {
    %c0_i32 = arith.constant 0 : i32
    %c0_i32_0 = arith.constant 0 : i32
    %c0_i32_1 = arith.constant 0 : i32
    return %c0_i32, %c0_i32_0 : i32, i32
  }
  func.func @transform_2(%arg0: i32) -> (i32, i32) {
    %c0_i32 = arith.constant 0 : i32
    %c0_i32_0 = arith.constant 0 : i32
    %c0_i32_1 = arith.constant 0 : i32
    return %c0_i32, %c0_i32_0 : i32, i32
  }
  func.func @transform_3(%arg0: i32) -> (i32, i32) {
    %c0_i32 = arith.constant 0 : i32
    %c0_i32_0 = arith.constant 0 : i32
    %c0_i32_1 = arith.constant 0 : i32
    return %c0_i32, %c0_i32_0 : i32, i32
  }
  func.func @transform_4(%arg0: i32) -> (i32, i32) {
    %c0_i32 = arith.constant 0 : i32
    %c0_i32_0 = arith.constant 0 : i32
    %c0_i32_1 = arith.constant 0 : i32
    return %c0_i32, %c0_i32_0 : i32, i32
  }
  func.func @transform_5(%arg0: i32) -> (i32, i32) {
    %c0_i32 = arith.constant 0 : i32
    %c0_i32_0 = arith.constant 0 : i32
    %c0_i32_1 = arith.constant 0 : i32
    return %c0_i32, %c0_i32_0 : i32, i32
  }
  func.func @transform_6(%arg0: i32) -> (i32, i32) {
    %c0_i32 = arith.constant 0 : i32
    %c0_i32_0 = arith.constant 0 : i32
    %c0_i32_1 = arith.constant 0 : i32
    return %c0_i32, %c0_i32_0 : i32, i32
  }
  func.func @transform_7(%arg0: i32) -> (i32, i32) {
    %c0_i32 = arith.constant 0 : i32
    %c0_i32_0 = arith.constant 0 : i32
    %c0_i32_1 = arith.constant 0 : i32
    return %c0_i32, %c0_i32_0 : i32, i32
  }
  func.func @transform_8(%arg0: i32) -> (i32, i32) {
    %c0_i32 = arith.constant 0 : i32
    %c0_i32_0 = arith.constant 0 : i32
    %c0_i32_1 = arith.constant 0 : i32
    return %c0_i32, %c0_i32_0 : i32, i32
  }
  func.func @transform_9(%arg0: i32) -> (i32, i32) {
    %c0_i32 = arith.constant 0 : i32
    %c0_i32_0 = arith.constant 0 : i32
    return %arg0, %c0_i32 : i32, i32
  }
}

</mosaic_0001>

<bundles_post_ra>
// kernel: tpu_custom_call.1
= control target key start
LH: loop header
LB: loop body
LE: loop exit
PB: predicated region body
PF: predicated region fallthrough
CT: control target
= control target key end

     0   :  { %14 = vsyncpa [#allocation3], 0  ;;  %s5732_s0 = inlined_call_operand.hbm [shape: bf16[8,32], index: 0, kind: input, shape index: {}]   ;;  %s5733_s1 = inlined_call_operand.hbm [shape: bf16[32,256], index: 1, kind: input, shape index: {}]   ;;  %s5734_s2 = inlined_call_operand.hbm [shape: f32[1,256], index: 2, kind: input, shape index: {}]   ;;  %s5735_s3 = inlined_call_operand.hbm [shape: bf16[256,512], index: 3, kind: input, shape index: {}]   ;;  %s5736_s4 = inlined_call_operand.hbm [shape: f32[1,512], index: 4, kind: input, shape index: {}]   ;;  %s5737_s5 = inlined_call_operand.hbm [shape: bf16[512,1024], index: 5, kind: input, shape index: {}]   ;;  %s5738_s6 = inlined_call_operand.hbm [shape: f32[1,1024], index: 6, kind: input, shape index: {}]   ;;  %s5739_s7 = inlined_call_operand.hbm [shape: bf16[1024,128], index: 7, kind: input, shape index: {}]   ;;  %s5740_s8 = inlined_call_operand.vmem [shape: f32[1,128], index: 8, kind: input, shape index: {}]   ;;  %s5741_s9 = inlined_call_operand.hbm [shape: f32[8,128], index: 9, kind: output, shape index: {}]  }
   0x1   :  { %15 = vsyncpa [#allocation6], 0 }
   0x2   :  { %16 = vsyncpa [#allocation9], 0 }
   0x3   :  { %17 = vsyncpa [#allocation12], 0 }
   0x4   :  { %18 = vsyncpa [#allocation15], 0  ;;  %s35_s11 = sshll.u32 %s5733_s1, 4  ;;  %s36_s11 = int_to_ptr.hbm [resolvable:$true] %s35_s11 }
   0x5   :  { %19 = vsyncpa [#allocation4], 0  ;;  %s5538_s12 = smov [#allocation5]   ;;  %s59_s16 = sshll.u32 %s5735_s3, 4  ;;  %s60_s16 = int_to_ptr.hbm [resolvable:$true] %s59_s16 }
   0x6   :  { %s37_s13 = sshll.u32 %s5538_s12, 4  ;;  %s5539_s17 = smov 128   ;;  %s38_s13 = int_to_ptr.vmem [resolvable:$true] %s37_s13 }
   0x7   :  { %s5540_s18 = smov 8   ;;  %s5541_s19 = smov [#allocation8]  }
   0x8   :  { %43 = dma.hbm_to_vmem [thread:$0]  %s36_s11, 512, %s38_s13, [#allocation6], %s5539_s17, %s5539_s17, %s5540_s18  }
   0x9   :  { %s61_s20 = sshll.u32 %s5541_s19, 4  ;;  %s5542_s21 = smov 256   ;;  %s62_s20 = int_to_ptr.vmem [resolvable:$true] %s61_s20 }
   0xa   :  { %s5543_s22 = smov 16   ;;  %s83_s24 = sshll.u32 %s5737_s5, 4  ;;  %s84_s24 = int_to_ptr.hbm [resolvable:$true] %s83_s24 }
   0xb   :  { %67 = dma.hbm_to_vmem [thread:$0]  %s60_s16, 8192, %s62_s20, [#allocation9], %s5542_s21, %s5542_s21, %s5543_s22  }
   0xc   :  { %s5544_s25 = smov [#allocation11]   ;;  %s25_s28 = sshll.u32 %s5732_s0, 4  ;;  %s26_s28 = int_to_ptr.hbm [resolvable:$true] %s25_s28 }
   0xd   :  { %s85_s26 = sshll.u32 %s5544_s25, 4  ;;  %s5545_s29 = smov 512   ;;  %s86_s26 = int_to_ptr.vmem [resolvable:$true] %s85_s26 }
   0xe   :  { %s5546_s30 = smov 32   ;;  %s5547_s10 = smov [#allocation2]  }
   0xf   :  { %91 = dma.hbm_to_vmem [thread:$0]  %s84_s24, 32768, %s86_s26, [#allocation12], %s5545_s29, %s5545_s29, %s5546_s30  }
  0x10   :  { %s27_s11 = sshll.u32 %s5547_s10, 4  ;;  %s49_s14 = sshll.u32 %s5734_s2, 4  ;;  %s28_s11 = int_to_ptr.vmem [resolvable:$true] %s27_s11  ;;  %s50_s14 = int_to_ptr.hbm [resolvable:$true] %s49_s14 }
  0x11   :  { %30 = dma.hbm_to_vmem [thread:$0]  %s26_s28, 64, %s28_s11, [#allocation3]  }
  0x12   :  { %s73_s16 = sshll.u32 %s5736_s4, 4  ;;  %s5548_s17 = smov [#allocation7]   ;;  %s74_s16 = int_to_ptr.hbm [resolvable:$true] %s73_s16 }
  0x13   :  { %s51_s18 = sshll.u32 %s5548_s17, 4  ;;  %s5549_s0 = smov [#allocation10]   ;;  %s52_s18 = int_to_ptr.vmem [resolvable:$true] %s51_s18 }
  0x14   :  { %54 = dma.hbm_to_vmem [thread:$0]  %s50_s14, 32, %s52_s18, [#allocation6]  }
  0x15   :  { %s75_s19 = sshll.u32 %s5549_s0, 4  ;;  %s97_s22 = sshll.u32 %s5738_s6, 4  ;;  %s76_s19 = int_to_ptr.vmem [resolvable:$true] %s75_s19  ;;  %s98_s22 = int_to_ptr.hbm [resolvable:$true] %s97_s22 }
  0x16   :  { %78 = dma.hbm_to_vmem [thread:$0]  %s74_s16, 64, %s76_s19, [#allocation9]  }
  0x17   :  { %s107_s23 = sshll.u32 %s5739_s7, 4  ;;  %s5550_s24 = smov [#allocation13]   ;;  %s108_s23 = int_to_ptr.hbm [resolvable:$true] %s107_s23 }
  0x18   :  { %s99_s4 = sshll.u32 %s5550_s24, 4  ;;  %s5551_s25 = smov [#allocation14]   ;;  %s100_s4 = int_to_ptr.vmem [resolvable:$true] %s99_s4 }
  0x19   :  { %102 = dma.hbm_to_vmem [thread:$0]  %s98_s22, 128, %s100_s4, [#allocation12]  }
  0x1a   :  { %s109_s26 = sshll.u32 %s5551_s25, 4  ;;  %s5552_s27 = smov 64   ;;  %s110_s26 = int_to_ptr.vmem [resolvable:$true] %s109_s26 }
  0x1b   :  { %s5553_s3 = smov 4  }
  0x1c   :  { %115 = dma.hbm_to_vmem [thread:$0]  %s108_s23, 8192, %s110_s26, [#allocation15], %s5552_s27, %s5552_s27, %s5553_s3  }
  0x1d   :  { %5526 = dma.done.wait [#allocation3], 64  }
  0x1e   :  { %5527 = vsyncadd [#allocation3], 4294967232 }
  0x1f   :  { %5528 = dma.done.wait [#allocation6], 544  }
  0x20   :  { %5529 = vsyncadd [#allocation6], 4294966752 }
  0x21   :  { %5530 = dma.done.wait [#allocation9], 8256  }
  0x22   :  { %5531 = vsyncadd [#allocation9], 4294959040 }
  0x23   :  { %5532 = dma.done.wait [#allocation12], 32896  }
  0x24   :  { %5533 = vsyncadd [#allocation12], 4294934400 }
  0x25   :  { %5534 = dma.done.wait [#allocation15], 8192  }
  0x26   :  { %5535 = vsyncadd [#allocation15], 4294959104  ;;  %v3360_v0 = vld [vmem:[#allocation5 + $0x10] sm:$0xf]  ;;  %v4907_v1 = vld [vmem:[#allocation5 + $0x14] sm:$0xf0] }
  0x27   :  { %v4906_v2 = vld [vmem:[#allocation5 + $0x14] sm:$0xf]  ;;  %v3361_v3 = vor.u32 %v4907_v1, %v3360_v0  ;;  %v3362_v4 = vld [vmem:[#allocation5 + $0x18] sm:$0xf0]  ;;  %v3352_v5 = vld [vmem:[#allocation5] sm:$0xf] }
  0x28   :  { %v4905_v6 = vld [vmem:[#allocation5 + $0x4] sm:$0xf0]  ;;  %v3365_v7 = vor.u32 %v4906_v2, %v3362_v4  ;;  %v4904_v8 = vld [vmem:[#allocation5 + $0x4] sm:$0xf]  ;;  %v3354_v9 = vld [vmem:[#allocation5 + $0x8] sm:$0xf0] }
  0x29   :  { %vm182_vm0 = vcmask 261120   ;;  %192 = vmatpush.bf16.msra.mxu0 %v3361_v3  ;;  %v3353_v10 = vor.u32 %v4905_v6, %v3352_v5  ;;  %v3482_v11 = vld [vmem:[#allocation8 + $0xe0] sm:$0xf]  ;;  %v4938_v12 = vld [vmem:[#allocation8 + $0xec] sm:$0xf0]  ;;  %v3357_v14 = vor.u32 %v4904_v8, %v3354_v9  ;;  %s3336_s10 = sshll.u32 %s5741_s9, 4  ;;  %s3337_s10 = int_to_ptr.hbm [resolvable:$true] %s3336_s10 }
  0x2a   :  { %v3610_v13 = vld [vmem:[#allocation8 + $0x1e0] sm:$0xf]  ;;  %205 = vmatpush.bf16.msra.mxu1 %v3365_v7  ;;  %v3483_v15 = vor.u32 %v4938_v12, %v3482_v11  ;;  %v4970_v16 = vld [vmem:[#allocation8 + $0x1ec] sm:$0xf0]  ;;  %v4936_v17 = vld [vmem:[#allocation8 + $0xe4] sm:$0xf] }
  0x2b   :  { %v3484_v18 = vld [vmem:[#allocation8 + $0xf0] sm:$0xf0]  ;;  %v151_v19 = vld [vmem:[#allocation2] sm:$0xf]  ;;  %v3611_v20 = vor.u32 %v4970_v16, %v3610_v13  ;;  %v4968_v22 = vld [vmem:[#allocation8 + $0x1e4] sm:$0xf] }
  0x2c   :  { %v3487_v21 = vor.u32 %v4936_v17, %v3484_v18  ;;  %v3612_v23 = vld [vmem:[#allocation8 + $0x1f0] sm:$0xf0]  ;;  %v3466_v24 = vld [vmem:[#allocation8 + $0xc0] sm:$0xf]  ;;  %610 = vmatpush.bf16.msra.mxu2 %v3483_v15  ;;  %v4934_v26 = vld [vmem:[#allocation8 + $0xcc] sm:$0xf0] }
  0x2d   :  { %v3615_v25 = vor.u32 %v4968_v22, %v3612_v23  ;;  %v3594_v27 = vld [vmem:[#allocation8 + $0x1c0] sm:$0xf]  ;;  %v4966_v28 = vld [vmem:[#allocation8 + $0x1cc] sm:$0xf0]  ;;  %193 = vmatpush.bf16.msra.mxu0 %v3353_v10  ;;  %623 = vmatpush.bf16.msra.mxu3 %v3611_v20  ;;  %v3467_v29 = vor.u32 %v4934_v26, %v3466_v24  ;;  %v4932_v31 = vld [vmem:[#allocation8 + $0xc4] sm:$0xf] }
  0x2e   :  { %v3595_v30 = vor.u32 %v4966_v28, %v3594_v27  ;;  %v3468_v32 = vld [vmem:[#allocation8 + $0xd0] sm:$0xf0]  ;;  %v4964_v33 = vld [vmem:[#allocation8 + $0x1c4] sm:$0xf]  ;;  %206 = vmatpush.bf16.msra.mxu1 %v3357_v14  ;;  %v3450_v36 = vld [vmem:[#allocation8 + $0xa0] sm:$0xf] }
  0x2f   :  { %v3471_v34 = vor.u32 %v4932_v31, %v3468_v32  ;;  %v3596_v35 = vld [vmem:[#allocation8 + $0x1d0] sm:$0xf0]  ;;  %v4930_v37 = vld [vmem:[#allocation8 + $0xac] sm:$0xf0]  ;;  %v3578_v39 = vld [vmem:[#allocation8 + $0x1a0] sm:$0xf] }
  0x30   :  { %v3599_v38 = vor.u32 %v4964_v33, %v3596_v35  ;;  %v4962_v40 = vld [vmem:[#allocation8 + $0x1ac] sm:$0xf0]  ;;  %v4928_v41 = vld [vmem:[#allocation8 + $0xa4] sm:$0xf]  ;;  %3366 = vmatmul.msk.bf16.vlgmr.msra.gmra.mxu0 %vm182_vm0, %v151_v19  ;;  %611 = vmatpush.bf16.msra.mxu2 %v3467_v29  ;;  %v3451_v42 = vor.u32 %v4930_v37, %v3450_v36  ;;  %v3452_v43 = vld [vmem:[#allocation8 + $0xb0] sm:$0xf0] }
  0x31   :  { %636 = vmatpush.bf16.msrb.mxu0 %v3487_v21  ;;  %v4960_v44 = vld [vmem:[#allocation8 + $0x1a4] sm:$0xf]  ;;  %v3580_v45 = vld [vmem:[#allocation8 + $0x1b0] sm:$0xf0]  ;;  %3367 = vmatmul.msk.bf16.vlgmr.msra.gmra.mxu1 %vm182_vm0, %v151_v19  ;;  %v3579_v46 = vor.u32 %v4962_v40, %v3578_v39  ;;  %v3434_v47 = vld [vmem:[#allocation8 + $0x80] sm:$0xf]  ;;  %v3455_v49 = vor.u32 %v4928_v41, %v3452_v43 }
  0x32   :  { %649 = vmatpush.bf16.msrb.mxu1 %v3615_v25  ;;  %624 = vmatpush.bf16.msra.mxu3 %v3595_v30  ;;  %v4926_v48 = vld [vmem:[#allocation8 + $0x8c] sm:$0xf0]  ;;  %v3562_v50 = vld [vmem:[#allocation8 + $0x180] sm:$0xf]  ;;  %v3583_v52 = vor.u32 %v4960_v44, %v3580_v45  ;;  %v4924_v53 = vld [vmem:[#allocation8 + $0x84] sm:$0xf] }
  0x33   :  { %v4958_v51 = vld [vmem:[#allocation8 + $0x18c] sm:$0xf0]  ;;  %v3436_v54 = vld [vmem:[#allocation8 + $0x90] sm:$0xf0]  ;;  %v3435_v55 = vor.u32 %v4926_v48, %v3434_v47  ;;  %v4956_v56 = vld [vmem:[#allocation8 + $0x184] sm:$0xf] }
  0x34   :  { %612 = vmatpush.bf16.msra.mxu2 %v3451_v42  ;;  %v3564_v57 = vld [vmem:[#allocation8 + $0x190] sm:$0xf0]  ;;  %v3563_v58 = vor.u32 %v4958_v51, %v3562_v50  ;;  %v3418_v59 = vld [vmem:[#allocation8 + $0x60] sm:$0xf]  ;;  %v4922_v60 = vld [vmem:[#allocation8 + $0x6c] sm:$0xf0]  ;;  %v3439_v61 = vor.u32 %v4924_v53, %v3436_v54 }
  0x35   :  { %637 = vmatpush.bf16.msrb.mxu0 %v3471_v34  ;;  %v3546_v62 = vld [vmem:[#allocation8 + $0x160] sm:$0xf]  ;;  %v4954_v63 = vld [vmem:[#allocation8 + $0x16c] sm:$0xf0]  ;;  %v3567_v0 = vor.u32 %v4956_v56, %v3564_v57  ;;  %v4920_v1 = vld [vmem:[#allocation8 + $0x64] sm:$0xf]  ;;  %v3419_v3 = vor.u32 %v4922_v60, %v3418_v59 }
  0x36   :  { %650 = vmatpush.bf16.msrb.mxu1 %v3599_v38  ;;  %625 = vmatpush.bf16.msra.mxu3 %v3579_v46  ;;  %v3420_v2 = vld [vmem:[#allocation8 + $0x70] sm:$0xf0]  ;;  %v4952_v4 = vld [vmem:[#allocation8 + $0x164] sm:$0xf]  ;;  %v3547_v6 = vor.u32 %v4954_v63, %v3546_v62  ;;  %v3402_v7 = vld [vmem:[#allocation8 + $0x40] sm:$0xf] }
  0x37   :  { %v3548_v5 = vld [vmem:[#allocation8 + $0x170] sm:$0xf0]  ;;  %v4918_v8 = vld [vmem:[#allocation8 + $0x4c] sm:$0xf0]  ;;  %v3423_v9 = vor.u32 %v4920_v1, %v3420_v2  ;;  %v3530_v10 = vld [vmem:[#allocation8 + $0x140] sm:$0xf] }
  0x38   :  { %613 = vmatpush.bf16.msra.mxu2 %v3435_v55  ;;  %v4950_v11 = vld [vmem:[#allocation8 + $0x14c] sm:$0xf0]  ;;  %v3551_v12 = vor.u32 %v4952_v4, %v3548_v5  ;;  %v4916_v13 = vld [vmem:[#allocation8 + $0x44] sm:$0xf]  ;;  %v3404_v14 = vld [vmem:[#allocation8 + $0x50] sm:$0xf0]  ;;  %v3403_v15 = vor.u32 %v4918_v8, %v3402_v7 }
  0x39   :  { %638 = vmatpush.bf16.msrb.mxu0 %v3455_v49  ;;  %v4948_v16 = vld [vmem:[#allocation8 + $0x144] sm:$0xf]  ;;  %v3532_v17 = vld [vmem:[#allocation8 + $0x150] sm:$0xf0]  ;;  %v3531_v18 = vor.u32 %v4950_v11, %v3530_v10  ;;  %v3386_v19 = vld [vmem:[#allocation8 + $0x20] sm:$0xf]  ;;  %v3407_v21 = vor.u32 %v4916_v13, %v3404_v14 }
  0x3a   :  { %651 = vmatpush.bf16.msrb.mxu1 %v3583_v52  ;;  %626 = vmatpush.bf16.msra.mxu3 %v3563_v58  ;;  %v4914_v20 = vld [vmem:[#allocation8 + $0x2c] sm:$0xf0]  ;;  %v3514_v22 = vld [vmem:[#allocation8 + $0x120] sm:$0xf]  ;;  %v4912_v24 = vld [vmem:[#allocation8 + $0x24] sm:$0xf]  ;;  %v3535_v25 = vor.u32 %v4948_v16, %v3532_v17 }
  0x3b   :  { %v4946_v23 = vld [vmem:[#allocation8 + $0x12c] sm:$0xf0]  ;;  %v3388_v26 = vld [vmem:[#allocation8 + $0x30] sm:$0xf0]  ;;  %v4944_v27 = vld [vmem:[#allocation8 + $0x124] sm:$0xf]  ;;  %v3387_v29 = vor.u32 %v4914_v20, %v3386_v19 }
  0x3c   :  { %614 = vmatpush.bf16.msra.mxu2 %v3419_v3  ;;  %v3516_v28 = vld [vmem:[#allocation8 + $0x130] sm:$0xf0]  ;;  %v3370_v30 = vld [vmem:[#allocation8] sm:$0xf]  ;;  %v4910_v31 = vld [vmem:[#allocation8 + $0xc] sm:$0xf0]  ;;  %v3515_v33 = vor.u32 %v4946_v23, %v3514_v22  ;;  %v3391_v37 = vor.u32 %v4912_v24, %v3388_v26 }
  0x3d   :  { %639 = vmatpush.bf16.msrb.mxu0 %v3439_v61  ;;  %v3498_v32 = vld [vmem:[#allocation8 + $0x100] sm:$0xf]  ;;  %v4942_v34 = vld [vmem:[#allocation8 + $0x10c] sm:$0xf0]  ;;  %v4908_v35 = vld [vmem:[#allocation8 + $0x4] sm:$0xf]  ;;  %v3519_v41 = vor.u32 %v4944_v27, %v3516_v28  ;;  %v3371_v45 = vor.u32 %v4910_v31, %v3370_v30 }
  0x3e   :  { %652 = vmatpush.bf16.msrb.mxu1 %v3567_v0  ;;  %627 = vmatpush.bf16.msra.mxu3 %v3547_v6  ;;  %v3372_v36 = vld [vmem:[#allocation8 + $0x10] sm:$0xf0]  ;;  %v4940_v38 = vld [vmem:[#allocation8 + $0x104] sm:$0xf]  ;;  %v3490_v39 = vld [vmem:[#allocation8 + $0xe8] sm:$0xf]  ;;  %v3499_v48 = vor.u32 %v4942_v34, %v3498_v32 }
  0x3f   :  { %v4939_v40 = vld [vmem:[#allocation8 + $0xf4] sm:$0xf0]  ;;  %v3500_v42 = vld [vmem:[#allocation8 + $0x110] sm:$0xf0]  ;;  %v3618_v43 = vld [vmem:[#allocation8 + $0x1e8] sm:$0xf]  ;;  %v3375_v52 = vor.u32 %v4908_v35, %v3372_v36 }
  0x40   :  { %615 = vmatpush.bf16.msra.mxu2 %v3403_v15  ;;  %v4971_v44 = vld [vmem:[#allocation8 + $0x1f4] sm:$0xf0]  ;;  %v4937_v46 = vld [vmem:[#allocation8 + $0xec] sm:$0xf]  ;;  %v3492_v47 = vld [vmem:[#allocation8 + $0xf8] sm:$0xf0]  ;;  %v3491_v49 = vor.u32 %v4939_v40, %v3490_v39  ;;  %v3503_v56 = vor.u32 %v4940_v38, %v3500_v42 }
  0x41   :  { %640 = vmatpush.bf16.msrb.mxu0 %v3423_v9  ;;  %v4969_v50 = vld [vmem:[#allocation8 + $0x1ec] sm:$0xf]  ;;  %v3620_v51 = vld [vmem:[#allocation8 + $0x1f8] sm:$0xf0]  ;;  %v3619_v53 = vor.u32 %v4971_v44, %v3618_v43  ;;  %v3474_v54 = vld [vmem:[#allocation8 + $0xc8] sm:$0xf]  ;;  %v3495_v57 = vor.u32 %v4937_v46, %v3492_v47 }
  0x42   :  { %653 = vmatpush.bf16.msrb.mxu1 %v3551_v12  ;;  %628 = vmatpush.bf16.msra.mxu3 %v3531_v18  ;;  %v4935_v55 = vld [vmem:[#allocation8 + $0xd4] sm:$0xf0]  ;;  %v3602_v58 = vld [vmem:[#allocation8 + $0x1c8] sm:$0xf]  ;;  %v3623_v60 = vor.u32 %v4969_v50, %v3620_v51  ;;  %v4933_v61 = vld [vmem:[#allocation8 + $0xcc] sm:$0xf] }
  0x43   :  { %v4967_v59 = vld [vmem:[#allocation8 + $0x1d4] sm:$0xf0]  ;;  %v3476_v62 = vld [vmem:[#allocation8 + $0xd8] sm:$0xf0]  ;;  %v3475_v63 = vor.u32 %v4935_v55, %v3474_v54  ;;  %v4965_v0 = vld [vmem:[#allocation8 + $0x1cc] sm:$0xf] }
  0x44   :  { %616 = vmatpush.bf16.msra.mxu2 %v3387_v29  ;;  %v3604_v1 = vld [vmem:[#allocation8 + $0x1d8] sm:$0xf0]  ;;  %v3603_v2 = vor.u32 %v4967_v59, %v3602_v58  ;;  %v3479_v3 = vor.u32 %v4933_v61, %v3476_v62  ;;  %v3458_v5 = vld [vmem:[#allocation8 + $0xa8] sm:$0xf]  ;;  %v4931_v6 = vld [vmem:[#allocation8 + $0xb4] sm:$0xf0] }
  0x45   :  { %641 = vmatpush.bf16.msrb.mxu0 %v3407_v21  ;;  %v3607_v4 = vor.u32 %v4965_v0, %v3604_v1  ;;  %v3586_v7 = vld [vmem:[#allocation8 + $0x1a8] sm:$0xf]  ;;  %v3459_v8 = vor.u32 %v4931_v6, %v3458_v5  ;;  %v4963_v9 = vld [vmem:[#allocation8 + $0x1b4] sm:$0xf0]  ;;  %v4929_v10 = vld [vmem:[#allocation8 + $0xac] sm:$0xf] }
  0x46   :  { %654 = vmatpush.bf16.msrb.mxu1 %v3535_v25  ;;  %629 = vmatpush.bf16.msra.mxu3 %v3515_v33  ;;  %v3460_v11 = vld [vmem:[#allocation8 + $0xb8] sm:$0xf0]  ;;  %v3587_v12 = vor.u32 %v4963_v9, %v3586_v7  ;;  %v4961_v14 = vld [vmem:[#allocation8 + $0x1ac] sm:$0xf]  ;;  %v3442_v17 = vld [vmem:[#allocation8 + $0x88] sm:$0xf] }
  0x47   :  { %v3463_v13 = vor.u32 %v4929_v10, %v3460_v11  ;;  %v3588_v15 = vld [vmem:[#allocation8 + $0x1b8] sm:$0xf0]  ;;  %v4927_v18 = vld [vmem:[#allocation8 + $0x94] sm:$0xf0]  ;;  %v3570_v19 = vld [vmem:[#allocation8 + $0x188] sm:$0xf] }
  0x48   :  { %617 = vmatpush.bf16.msra.mxu2 %v3371_v45  ;;  %v3591_v16 = vor.u32 %v4961_v14, %v3588_v15  ;;  %v3443_v20 = vor.u32 %v4927_v18, %v3442_v17  ;;  %v4959_v21 = vld [vmem:[#allocation8 + $0x194] sm:$0xf0]  ;;  %v4925_v22 = vld [vmem:[#allocation8 + $0x8c] sm:$0xf]  ;;  %v3444_v23 = vld [vmem:[#allocation8 + $0x98] sm:$0xf0] }
  0x49   :  { %642 = vmatpush.bf16.msrb.mxu0 %v3391_v37  ;;  %v3571_v24 = vor.u32 %v4959_v21, %v3570_v19  ;;  %v3447_v25 = vor.u32 %v4925_v22, %v3444_v23  ;;  %v4957_v26 = vld [vmem:[#allocation8 + $0x18c] sm:$0xf]  ;;  %v3572_v27 = vld [vmem:[#allocation8 + $0x198] sm:$0xf0]  ;;  %v3426_v29 = vld [vmem:[#allocation8 + $0x68] sm:$0xf] }
  0x4a   :  { %655 = vmatpush.bf16.msrb.mxu1 %v3519_v41  ;;  %630 = vmatpush.bf16.msra.mxu3 %v3499_v48  ;;  %v3575_v28 = vor.u32 %v4957_v26, %v3572_v27  ;;  %v4923_v30 = vld [vmem:[#allocation8 + $0x74] sm:$0xf0]  ;;  %v3554_v31 = vld [vmem:[#allocation8 + $0x168] sm:$0xf]  ;;  %v4921_v34 = vld [vmem:[#allocation8 + $0x6c] sm:$0xf] }
  0x4b   :  { %v3427_v32 = vor.u32 %v4923_v30, %v3426_v29  ;;  %v4955_v33 = vld [vmem:[#allocation8 + $0x174] sm:$0xf0]  ;;  %v3428_v35 = vld [vmem:[#allocation8 + $0x78] sm:$0xf0]  ;;  %v4953_v38 = vld [vmem:[#allocation8 + $0x16c] sm:$0xf] }
  0x4c   :  { %662 = vmatpush.bf16.msrb.mxu2 %v3491_v49  ;;  %v3555_v36 = vor.u32 %v4955_v33, %v3554_v31  ;;  %v3431_v37 = vor.u32 %v4921_v34, %v3428_v35  ;;  %v3556_v39 = vld [vmem:[#allocation8 + $0x178] sm:$0xf0]  ;;  %v3410_v41 = vld [vmem:[#allocation8 + $0x48] sm:$0xf]  ;;  %v4919_v42 = vld [vmem:[#allocation8 + $0x54] sm:$0xf0] }
  0x4d   :  { %643 = vmatpush.bf16.msrb.mxu0 %v3375_v52  ;;  %v3559_v40 = vor.u32 %v4953_v38, %v3556_v39  ;;  %v3538_v43 = vld [vmem:[#allocation8 + $0x148] sm:$0xf]  ;;  %v3411_v44 = vor.u32 %v4919_v42, %v3410_v41  ;;  %v4951_v45 = vld [vmem:[#allocation8 + $0x154] sm:$0xf0]  ;;  %v4917_v46 = vld [vmem:[#allocation8 + $0x4c] sm:$0xf] }
  0x4e   :  { %675 = vmatpush.bf16.msrb.mxu3 %v3619_v53  ;;  %656 = vmatpush.bf16.msrb.mxu1 %v3503_v56  ;;  %v3412_v47 = vld [vmem:[#allocation8 + $0x58] sm:$0xf0]  ;;  %v3539_v48 = vor.u32 %v4951_v45, %v3538_v43  ;;  %v4949_v50 = vld [vmem:[#allocation8 + $0x14c] sm:$0xf]  ;;  %v3394_v52 = vld [vmem:[#allocation8 + $0x28] sm:$0xf] }
  0x4f   :  { %v3415_v49 = vor.u32 %v4917_v46, %v3412_v47  ;;  %v3540_v51 = vld [vmem:[#allocation8 + $0x158] sm:$0xf0]  ;;  %v4915_v54 = vld [vmem:[#allocation8 + $0x34] sm:$0xf0]  ;;  %v3522_v55 = vld [vmem:[#allocation8 + $0x128] sm:$0xf] }
  0x50   :  { %663 = vmatpush.bf16.msrb.mxu2 %v3475_v63  ;;  %v3543_v53 = vor.u32 %v4949_v50, %v3540_v51  ;;  %v4947_v56 = vld [vmem:[#allocation8 + $0x134] sm:$0xf0]  ;;  %v4913_v58 = vld [vmem:[#allocation8 + $0x2c] sm:$0xf]  ;;  %v3396_v59 = vld [vmem:[#allocation8 + $0x38] sm:$0xf0] }
  0x51   :  { %688 = vmatpush.bf16.msra.mxu0 %v3495_v57  ;;  %v3395_v57 = vor.u32 %v4915_v54, %v3394_v52  ;;  %v3523_v61 = vor.u32 %v4947_v56, %v3522_v55  ;;  %v3399_v62 = vor.u32 %v4913_v58, %v3396_v59  ;;  %v3524_v63 = vld [vmem:[#allocation8 + $0x138] sm:$0xf0]  ;;  %v3378_v0 = vld [vmem:[#allocation8 + $0x8] sm:$0xf]  ;;  %v4911_v1 = vld [vmem:[#allocation8 + $0x14] sm:$0xf0] }
  0x52   :  { %701 = vmatpush.bf16.msra.mxu1 %v3623_v60  ;;  %676 = vmatpush.bf16.msrb.mxu3 %v3603_v2  ;;  %v4945_v60 = vld [vmem:[#allocation8 + $0x12c] sm:$0xf]  ;;  %v3380_v6 = vld [vmem:[#allocation8 + $0x18] sm:$0xf0]  ;;  %v3379_v9 = vor.u32 %v4911_v1, %v3378_v0  ;;  %v4106_v19 = vld [vmem:[#allocation11 + $0x3c0] sm:$0xf] }
  0x53   :  { %v3527_v2 = vor.u32 %v4945_v60, %v3524_v63  ;;  %v4909_v5 = vld [vmem:[#allocation8 + $0xc] sm:$0xf]  ;;  %v3850_v21 = vld [vmem:[#allocation11 + $0x1c0] sm:$0xf] }
  0x54   :  { %664 = vmatpush.bf16.msrb.mxu2 %v3459_v8  ;;  %v4941_v7 = vld [vmem:[#allocation8 + $0x10c] sm:$0xf]  ;;  %v3508_v8 = vld [vmem:[#allocation8 + $0x118] sm:$0xf0]  ;;  %v3383_v11 = vor.u32 %v4909_v5, %v3380_v6  ;;  %v5032_v23 = vld [vmem:[#allocation11 + $0x1dc] sm:$0xf0] }
  0x55   :  { %689 = vmatpush.bf16.msra.mxu0 %v3479_v3  ;;  %v3506_v3 = vld [vmem:[#allocation8 + $0x108] sm:$0xf]  ;;  %v4362_v27 = vld [vmem:[#allocation11 + $0x5c0] sm:$0xf]  ;;  %v3851_v34 = vor.u32 %v5032_v23, %v3850_v21 }
  0x56   :  { %702 = vmatpush.bf16.msra.mxu1 %v3607_v4  ;;  %677 = vmatpush.bf16.msrb.mxu3 %v3587_v12  ;;  %v4943_v4 = vld [vmem:[#allocation8 + $0x114] sm:$0xf0]  ;;  %v3511_v12 = vor.u32 %v4941_v7, %v3508_v8  ;;  %v5088_v33 = vld [vmem:[#allocation11 + $0x39c] sm:$0xf0] }
  0x57   :  { %v3507_v10 = vor.u32 %v4943_v4, %v3506_v3  ;;  %v4586_v39 = vld [vmem:[#allocation11 + $0x780] sm:$0xf] }
  0x58   :  { %665 = vmatpush.bf16.msrb.mxu2 %v3443_v20  ;;  %v5096_v20 = vld [vmem:[#allocation11 + $0x3dc] sm:$0xf0] }
  0x59   :  { %690 = vmatpush.bf16.msra.mxu0 %v3463_v13  ;;  %v156_v13 = vld [vmem:[#allocation7] sm:$0x3]  ;;  %v4107_v31 = vor.u32 %v5096_v20, %v4106_v19  ;;  %v5216_v41 = vld [vmem:[#allocation11 + $0x79c] sm:$0xf0] }
  0x5a   :  { %703 = vmatpush.bf16.msra.mxu1 %v3591_v16  ;;  %678 = vmatpush.bf16.msrb.mxu3 %v3571_v24  ;;  %v158_v14 = vperm.slane %v156_v13, 0  ;;  %v159_v15 = vperm.slane %v156_v13, 1  ;;  %v4618_v24 = vld [vmem:[#allocation11 + $0x7c0] sm:$0xf]  ;;  %v4587_v52 = vor.u32 %v5216_v41, %v4586_v39 }
  0x5b   :  { %v4330_v42 = vld [vmem:[#allocation11 + $0x580] sm:$0xf] }
  0x5c   :  { %666 = vmatpush.bf16.msrb.mxu2 %v3427_v32  ;;  %v4074_v32 = vld [vmem:[#allocation11 + $0x380] sm:$0xf] }
  0x5d   :  { %691 = vmatpush.bf16.msra.mxu0 %v3447_v25  ;;  %v5224_v25 = vld [vmem:[#allocation11 + $0x7dc] sm:$0xf0]  ;;  %v4075_v46 = vor.u32 %v5088_v33, %v4074_v32 }
  0x5e   :  { %704 = vmatpush.bf16.msra.mxu1 %v3575_v28  ;;  %679 = vmatpush.bf16.msrb.mxu3 %v3555_v36  ;;  %v5160_v28 = vld [vmem:[#allocation11 + $0x5dc] sm:$0xf0]  ;;  %v4619_v38 = vor.u32 %v5224_v25, %v4618_v24 }
  0x5f   :  { %v3818_v36 = vld [vmem:[#allocation11 + $0x180] sm:$0xf] }
  0x60   :  { %667 = vmatpush.bf16.msrb.mxu2 %v3411_v44  ;;  %v5152_v43 = vld [vmem:[#allocation11 + $0x59c] sm:$0xf0] }
  0x61   :  { %692 = vmatpush.bf16.msra.mxu0 %v3431_v37  ;;  %v5024_v37 = vld [vmem:[#allocation11 + $0x19c] sm:$0xf0]  ;;  %v4331_v54 = vor.u32 %v5152_v43, %v4330_v42 }
  0x62   :  { %705 = vmatpush.bf16.msra.mxu1 %v3559_v40  ;;  %680 = vmatpush.bf16.msrb.mxu3 %v3539_v48  ;;  %v4363_v40 = vor.u32 %v5160_v28, %v4362_v27  ;;  %v4042_v47 = vld [vmem:[#allocation11 + $0x340] sm:$0xf] }
  0x63   :  { %v5080_v48 = vld [vmem:[#allocation11 + $0x35c] sm:$0xf0] }
  0x64   :  { %668 = vmatpush.bf16.msrb.mxu2 %v3395_v57  ;;  %v3786_v50 = vld [vmem:[#allocation11 + $0x140] sm:$0xf]  ;;  %v4043_v58 = vor.u32 %v5080_v48, %v4042_v47 }
  0x65   :  { %693 = vmatpush.bf16.msra.mxu0 %v3415_v49  ;;  %v3819_v49 = vor.u32 %v5024_v37, %v3818_v36  ;;  %v5016_v51 = vld [vmem:[#allocation11 + $0x15c] sm:$0xf0] }
  0x66   :  { %706 = vmatpush.bf16.msra.mxu1 %v3543_v53  ;;  %681 = vmatpush.bf16.msrb.mxu3 %v3523_v61  ;;  %v4554_v53 = vld [vmem:[#allocation11 + $0x740] sm:$0xf]  ;;  %v3787_v61 = vor.u32 %v5016_v51, %v3786_v50  ;;  %v4108_v51 = vld [vmem:[#allocation11 + $0x3e0] sm:$0xf0] }
  0x67   :  { %v5208_v55 = vld [vmem:[#allocation11 + $0x75c] sm:$0xf0] }
  0x68   :  { %669 = vmatpush.bf16.msrb.mxu2 %v3379_v9  ;;  %v4298_v56 = vld [vmem:[#allocation11 + $0x540] sm:$0xf]  ;;  %v4555_v0 = vor.u32 %v5208_v55, %v4554_v53  ;;  %v3852_v53 = vld [vmem:[#allocation11 + $0x1e0] sm:$0xf0] }
  0x69   :  { %694 = vmatpush.bf16.msra.mxu0 %v3399_v62  ;;  %v5144_v57 = vld [vmem:[#allocation11 + $0x55c] sm:$0xf0] }
  0x6a   :  { %707 = vmatpush.bf16.msra.mxu1 %v3527_v2  ;;  %682 = vmatpush.bf16.msrb.mxu3 %v3507_v10  ;;  %v4010_v59 = vld [vmem:[#allocation11 + $0x300] sm:$0xf]  ;;  %v4299_v2 = vor.u32 %v5144_v57, %v4298_v56 }
  0x6b   :  { %v5072_v60 = vld [vmem:[#allocation11 + $0x31c] sm:$0xf0] }
  0x6c   :  { %v3754_v62 = vld [vmem:[#allocation11 + $0x100] sm:$0xf]  ;;  %v4011_v6 = vor.u32 %v5072_v60, %v4010_v59  ;;  %v4620_v59 = vld [vmem:[#allocation11 + $0x7e0] sm:$0xf0] }
  0x6d   :  { %695 = vmatpush.bf16.msra.mxu0 %v3383_v11  ;;  %v5008_v63 = vld [vmem:[#allocation11 + $0x11c] sm:$0xf0] }
  0x6e   :  { %708 = vmatpush.bf16.msra.mxu1 %v3511_v12  ;;  %v4522_v1 = vld [vmem:[#allocation11 + $0x700] sm:$0xf]  ;;  %v3755_v9 = vor.u32 %v5008_v63, %v3754_v62  ;;  %v4076_v63 = vld [vmem:[#allocation11 + $0x3a0] sm:$0xf0] }
  0x6f   :  { %v5200_v3 = vld [vmem:[#allocation11 + $0x71c] sm:$0xf0] }
  0x70   :  { %v4266_v4 = vld [vmem:[#allocation11 + $0x500] sm:$0xf]  ;;  %v4523_v12 = vor.u32 %v5200_v3, %v4522_v1  ;;  %v3820_v1 = vld [vmem:[#allocation11 + $0x1a0] sm:$0xf0] }
  0x71   :  { %v5136_v5 = vld [vmem:[#allocation11 + $0x51c] sm:$0xf0] }
  0x72   :  { %v3978_v7 = vld [vmem:[#allocation11 + $0x2c0] sm:$0xf] }
  0x73   :  { %v5064_v8 = vld [vmem:[#allocation11 + $0x2dc] sm:$0xf0] }
  0x74   :  { %v3722_v10 = vld [vmem:[#allocation11 + $0xc0] sm:$0xf] }
  0x75   :  { %v5000_v11 = vld [vmem:[#allocation11 + $0xdc] sm:$0xf0] }
  0x76   :  { %v4490_v13 = vld [vmem:[#allocation11 + $0x6c0] sm:$0xf]  ;;  %v3723_v21 = vor.u32 %v5000_v11, %v3722_v10  ;;  %v5068_v11 = vld [vmem:[#allocation11 + $0x304] sm:$0xf] }
  0x77   :  { %v3946_v19 = vld [vmem:[#allocation11 + $0x280] sm:$0xf] }
  0x78   :  { %v5056_v20 = vld [vmem:[#allocation11 + $0x29c] sm:$0xf0] }
  0x79   :  { %v4992_v23 = vld [vmem:[#allocation11 + $0x9c] sm:$0xf0] }
  0x7a   :  { %v4458_v25 = vld [vmem:[#allocation11 + $0x680] sm:$0xf] }
  0x7b   :  { %v5184_v27 = vld [vmem:[#allocation11 + $0x69c] sm:$0xf0] }
  0x7c   :  { %v4202_v28 = vld [vmem:[#allocation11 + $0x480] sm:$0xf] }
  0x7d   :  { %v3914_v32 = vld [vmem:[#allocation11 + $0x240] sm:$0xf] }
  0x7e   :  { %v5048_v33 = vld [vmem:[#allocation11 + $0x25c] sm:$0xf0] }
  0x7f   :  { %v3658_v36 = vld [vmem:[#allocation11 + $0x40] sm:$0xf]  ;;  %v3915_v43 = vor.u32 %v5048_v33, %v3914_v32  ;;  %v3724_v32 = vld [vmem:[#allocation11 + $0xe0] sm:$0xf0] }
  0x80   :  { %v4984_v37 = vld [vmem:[#allocation11 + $0x5c] sm:$0xf0]  ;;  %v5156_v33 = vld [vmem:[#allocation11 + $0x5c4] sm:$0xf] }
  0x81   :  { %v4426_v39 = vld [vmem:[#allocation11 + $0x640] sm:$0xf] }
  0x82   :  { %v4170_v41 = vld [vmem:[#allocation11 + $0x440] sm:$0xf] }
  0x83   :  { %v5112_v42 = vld [vmem:[#allocation11 + $0x45c] sm:$0xf0] }
  0x84   :  { %v3626_v47 = vld [vmem:[#allocation11] sm:$0xf]  ;;  %v4171_v50 = vor.u32 %v5112_v42, %v4170_v41  ;;  %v4556_v41 = vld [vmem:[#allocation11 + $0x760] sm:$0xf0] }
  0x85   :  { %v4976_v48 = vld [vmem:[#allocation11 + $0x1c] sm:$0xf0] }
  0x86   :  { %v5168_v55 = vld [vmem:[#allocation11 + $0x61c] sm:$0xf0]  ;;  %v3627_v57 = vor.u32 %v4976_v48, %v3626_v47  ;;  %v5036_v48 = vld [vmem:[#allocation11 + $0x204] sm:$0xf] }
  0xad   :  { %v195_v16 = vpop.f32.mrf.mxu0 }
  0xae   :  { %v196_v17 = vadd.f32 %v195_v16, %v158_v14  ;;  %v208_v18 = vpop.f32.mrf.mxu1  ;;  %v4267_v14 = vor.u32 %v5136_v5, %v4266_v4  ;;  %v4234_v16 = vld [vmem:[#allocation11 + $0x4c0] sm:$0xf]  ;;  %v5076_v5 = vld [vmem:[#allocation11 + $0x344] sm:$0xf] }
  0xaf   :  { %v209_v22 = vadd.f32 %v208_v18, %v159_v15  ;;  %v5192_v15 = vld [vmem:[#allocation11 + $0x6dc] sm:$0xf0]  ;;  %v3979_v18 = vor.u32 %v5064_v8, %v3978_v7  ;;  %v4044_v7 = vld [vmem:[#allocation11 + $0x360] sm:$0xf0] }
  0xb0   :  { %v212_v26 = vmax.f32 %v196_v17, 0.0  ;;  %v5128_v17 = vld [vmem:[#allocation11 + $0x4dc] sm:$0xf0]  ;;  %v4491_v24 = vor.u32 %v5192_v15, %v4490_v13  ;;  %v5012_v8 = vld [vmem:[#allocation11 + $0x144] sm:$0xf]  ;;  %v4047_v10 = vor.u32 %v5076_v5, %v4044_v7 }
  0xb1   :  { %v213_v29 = vmax.f32 %v209_v22, 0.0  ;;  %v3690_v22 = vld [vmem:[#allocation11 + $0x80] sm:$0xf]  ;;  %v4012_v13 = vld [vmem:[#allocation11 + $0x320] sm:$0xf0] }
  0xb2   :  { %v5631_v30 = vpack.c.bf16 %v212_v26, %v212_v26  ;;  %v4235_v26 = vor.u32 %v5128_v17, %v4234_v16  ;;  %v3756_v15 = vld [vmem:[#allocation11 + $0x120] sm:$0xf0]  ;;  %v4015_v16 = vor.u32 %v5068_v11, %v4012_v13 }
  0xb3   :  { %v5633_v35 = vpack.c.bf16 %v213_v29, %v213_v29  ;;  %v5120_v29 = vld [vmem:[#allocation11 + $0x49c] sm:$0xf0]  ;;  %v5180_v5 = vld [vmem:[#allocation11 + $0x684] sm:$0xf] }
  0xb4   :  { %618 = vmatmul.bf16.vlgmr.msra.gmra.mxu2 %v5631_v30  ;;  %644 = vmatmul.bf16.vlgmr.msrb.gmra.mxu0 %v5631_v30  ;;  %v5172_v11 = vld [vmem:[#allocation11 + $0x644] sm:$0xf] }
  0xb5   :  { %631 = vmatmul.bf16.vlgmr.msra.gmra.mxu3 %v5633_v35  ;;  %657 = vmatmul.bf16.vlgmr.msrb.gmra.mxu1 %v5633_v35  ;;  %v197_v44 = vpop.f32.mrf.mxu0 }
  0xb6   :  { %v210_v45 = vpop.f32.mrf.mxu1  ;;  %2289 = vmatpush.bf16.msra.mxu3 %v4107_v31  ;;  %2276 = vmatpush.bf16.msra.mxu2 %v3851_v34  ;;  %v3947_v31 = vor.u32 %v5056_v20, %v3946_v19  ;;  %v3691_v34 = vor.u32 %v4992_v23, %v3690_v22  ;;  %v5040_v44 = vld [vmem:[#allocation11 + $0x21c] sm:$0xf0]  ;;  %v3980_v19 = vld [vmem:[#allocation11 + $0x2e0] sm:$0xf0] }
  0xb7   :  { %2315 = vmatpush.bf16.msrb.mxu1 %v4619_v38  ;;  %2302 = vmatpush.bf16.msrb.mxu0 %v4363_v40  ;;  %v4459_v38 = vor.u32 %v5184_v27, %v4458_v25  ;;  %v5176_v40 = vld [vmem:[#allocation11 + $0x65c] sm:$0xf0]  ;;  %v3659_v45 = vor.u32 %v4984_v37, %v3658_v36  ;;  %v3948_v22 = vld [vmem:[#allocation11 + $0x2a0] sm:$0xf0] }
  0xb8   :  { %v5212_v23 = vld [vmem:[#allocation11 + $0x784] sm:$0xf]  ;;  %v5104_v27 = vld [vmem:[#allocation11 + $0x41c] sm:$0xf0] }
  0xb9   :  { %v4588_v25 = vld [vmem:[#allocation11 + $0x7a0] sm:$0xf0] }
  0xba   :  { %2290 = vmatpush.bf16.msra.mxu3 %v4075_v46  ;;  %2277 = vmatpush.bf16.msra.mxu2 %v3819_v49  ;;  %v5092_v46 = vld [vmem:[#allocation11 + $0x3c4] sm:$0xf]  ;;  %v4427_v49 = vor.u32 %v5176_v40, %v4426_v39 }
  0xbb   :  { %2316 = vmatpush.bf16.msrb.mxu1 %v4587_v52  ;;  %2303 = vmatpush.bf16.msrb.mxu0 %v4331_v54  ;;  %v5028_v52 = vld [vmem:[#allocation11 + $0x1c4] sm:$0xf]  ;;  %v4394_v54 = vld [vmem:[#allocation11 + $0x600] sm:$0xf]  ;;  %v4111_v60 = vor.u32 %v5092_v46, %v4108_v51 }
  0xbc   :  { %v3855_v62 = vor.u32 %v5028_v52, %v3852_v53  ;;  %v4364_v36 = vld [vmem:[#allocation11 + $0x5e0] sm:$0xf0] }
  0xbd   :  { %v4367_v37 = vor.u32 %v5156_v33, %v4364_v36  ;;  %v3916_v39 = vld [vmem:[#allocation11 + $0x260] sm:$0xf0]  ;;  %v5097_v36 = vld [vmem:[#allocation11 + $0x3e4] sm:$0xf0] }
  0xbe   :  { %2291 = vmatpush.bf16.msra.mxu3 %v4043_v58  ;;  %2278 = vmatpush.bf16.msra.mxu2 %v3787_v61  ;;  %v5220_v58 = vld [vmem:[#allocation11 + $0x7c4] sm:$0xf] }
  0xbf   :  { %2317 = vmatpush.bf16.msrb.mxu1 %v4555_v0  ;;  %2304 = vmatpush.bf16.msrb.mxu0 %v4299_v2  ;;  %v5084_v61 = vld [vmem:[#allocation11 + $0x384] sm:$0xf]  ;;  %v4395_v2 = vor.u32 %v5168_v55, %v4394_v54  ;;  %v4623_v3 = vor.u32 %v5220_v58, %v4620_v59 }
  0xc0   :  { %v5020_v0 = vld [vmem:[#allocation11 + $0x184] sm:$0xf]  ;;  %v4079_v4 = vor.u32 %v5084_v61, %v4076_v63 }
  0xc1   :  { %v4332_v46 = vld [vmem:[#allocation11 + $0x5a0] sm:$0xf0] }
  0xc2   :  { %2292 = vmatpush.bf16.msra.mxu3 %v4011_v6  ;;  %2279 = vmatpush.bf16.msra.mxu2 %v3755_v9  ;;  %v3823_v6 = vor.u32 %v5020_v0, %v3820_v1  ;;  %v3788_v9 = vld [vmem:[#allocation11 + $0x160] sm:$0xf0] }
  0xc3   :  { %2318 = vmatpush.bf16.msrb.mxu1 %v4523_v12  ;;  %2305 = vmatpush.bf16.msrb.mxu0 %v4267_v14  ;;  %v3791_v12 = vor.u32 %v5012_v8, %v3788_v9  ;;  %v5004_v14 = vld [vmem:[#allocation11 + $0x104] sm:$0xf] }
  0xc4   :  { %670 = vmatmul.bf16.vlgmr.msrb.gmra.mxu2 %v5631_v30  ;;  %696 = vmatmul.bf16.vlgmr.msra.gmra.mxu0 %v5631_v30  ;;  %v4203_v30 = vor.u32 %v5120_v29, %v4202_v28  ;;  %v3759_v17 = vor.u32 %v5004_v14, %v3756_v15  ;;  %v4591_v28 = vor.u32 %v5212_v23, %v4588_v25  ;;  %v5196_v51 = vld [vmem:[#allocation11 + $0x704] sm:$0xf]  ;;  %v5643_v23 = vld [vmem:[#allocation10] sm:$0xf] }
  0xc5   :  { %683 = vmatmul.bf16.vlgmr.msrb.gmra.mxu3 %v5633_v35  ;;  %709 = vmatmul.bf16.vlgmr.msra.gmra.mxu1 %v5633_v35  ;;  %v3882_v35 = vld [vmem:[#allocation11 + $0x200] sm:$0xf]  ;;  %v4524_v52 = vld [vmem:[#allocation11 + $0x720] sm:$0xf0]  ;;  %v282_v33 = vperm.slane %v5643_v23, 0 }
  0xc6   :  { %2293 = vmatpush.bf16.msra.mxu3 %v3979_v18  ;;  %2280 = vmatpush.bf16.msra.mxu2 %v3723_v21  ;;  %v3883_v56 = vor.u32 %v5040_v44, %v3882_v35  ;;  %v5060_v18 = vld [vmem:[#allocation11 + $0x2c4] sm:$0xf]  ;;  %v4527_v53 = vor.u32 %v5196_v51, %v4524_v52  ;;  %v5081_v51 = vld [vmem:[#allocation11 + $0x364] sm:$0xf0] }
  0xc7   :  { %2319 = vmatpush.bf16.msrb.mxu1 %v4491_v24  ;;  %2306 = vmatpush.bf16.msrb.mxu0 %v4235_v26  ;;  %v3983_v20 = vor.u32 %v5060_v18, %v3980_v19  ;;  %v5052_v21 = vld [vmem:[#allocation11 + $0x284] sm:$0xf]  ;;  %v4138_v26 = vld [vmem:[#allocation11 + $0x400] sm:$0xf] }
  0xc8   :  { %v3951_v24 = vor.u32 %v5052_v21, %v3948_v22  ;;  %v4139_v29 = vor.u32 %v5104_v27, %v4138_v26  ;;  %v3692_v35 = vld [vmem:[#allocation11 + $0xa0] sm:$0xf0]  ;;  %v283_v26 = vperm.slane %v5643_v23, 1 }
  0xc9   :  { %v5148_v44 = vld [vmem:[#allocation11 + $0x584] sm:$0xf] }
  0xca   :  { %2294 = vmatpush.bf16.msra.mxu3 %v3947_v31  ;;  %2281 = vmatpush.bf16.msra.mxu2 %v3691_v34  ;;  %v4996_v31 = vld [vmem:[#allocation11 + $0xc4] sm:$0xf]  ;;  %v4335_v47 = vor.u32 %v5148_v44, %v4332_v46  ;;  %v3858_v46 = vld [vmem:[#allocation11 + $0x1c8] sm:$0xf] }
  0xcb   :  { %2320 = vmatpush.bf16.msrb.mxu1 %v4459_v38  ;;  %2307 = vmatpush.bf16.msrb.mxu0 %v4203_v30  ;;  %v3727_v34 = vor.u32 %v4996_v31, %v3724_v32  ;;  %v5044_v38 = vld [vmem:[#allocation11 + $0x244] sm:$0xf] }
  0xcc   :  { %v5204_v30 = vld [vmem:[#allocation11 + $0x744] sm:$0xf]  ;;  %v3919_v40 = vor.u32 %v5044_v38, %v3916_v39 }
  0xcd   :  { %v4559_v42 = vor.u32 %v5204_v30, %v4556_v41  ;;  %v4980_v54 = vld [vmem:[#allocation11 + $0x44] sm:$0xf] }
  0xce   :  { %2295 = vmatpush.bf16.msra.mxu3 %v3915_v43  ;;  %2282 = vmatpush.bf16.msra.mxu2 %v3659_v45  ;;  %v4988_v43 = vld [vmem:[#allocation11 + $0x84] sm:$0xf] }
  0xcf   :  { %2321 = vmatpush.bf16.msrb.mxu1 %v4427_v49  ;;  %2308 = vmatpush.bf16.msrb.mxu0 %v4171_v50  ;;  %v3695_v45 = vor.u32 %v4988_v43, %v3692_v35  ;;  %v3884_v49 = vld [vmem:[#allocation11 + $0x220] sm:$0xf0]  ;;  %v5089_v43 = vld [vmem:[#allocation11 + $0x3a4] sm:$0xf0] }
  0xd0   :  { %v3887_v50 = vor.u32 %v5036_v48, %v3884_v49  ;;  %v3660_v55 = vld [vmem:[#allocation11 + $0x60] sm:$0xf0] }
  0xd1   :  { %v4300_v58 = vld [vmem:[#allocation11 + $0x560] sm:$0xf0] }
  0xd2   :  { %2296 = vmatpush.bf16.msra.mxu3 %v3883_v56  ;;  %2283 = vmatpush.bf16.msra.mxu2 %v3627_v57  ;;  %v3663_v56 = vor.u32 %v4980_v54, %v3660_v55  ;;  %v5140_v57 = vld [vmem:[#allocation11 + $0x544] sm:$0xf]  ;;  %v285_v54 = vperm.slane %v5643_v23, 3  ;;  %v3826_v55 = vld [vmem:[#allocation11 + $0x188] sm:$0xf] }
  0xd3   :  { %2322 = vmatpush.bf16.msrb.mxu1 %v4395_v2  ;;  %2309 = vmatpush.bf16.msrb.mxu0 %v4139_v29  ;;  %v4303_v59 = vor.u32 %v5140_v57, %v4300_v58  ;;  %v4492_v61 = vld [vmem:[#allocation11 + $0x6e0] sm:$0xf0] }
  0xd4   :  { %v4972_v63 = vld [vmem:[#allocation11 + $0x4] sm:$0xf] }
  0xd5   :  { %v3628_v0 = vld [vmem:[#allocation11 + $0x20] sm:$0xf0] }
  0xd6   :  { %2341 = vmatpush.bf16.msrb.mxu3 %v4111_v60  ;;  %2328 = vmatpush.bf16.msrb.mxu2 %v3855_v62  ;;  %v5188_v60 = vld [vmem:[#allocation11 + $0x6c4] sm:$0xf]  ;;  %v3631_v2 = vor.u32 %v4972_v63, %v3628_v0 }
  0xd7   :  { %2367 = vmatpush.bf16.msra.mxu1 %v4623_v3  ;;  %2354 = vmatpush.bf16.msra.mxu0 %v4367_v37  ;;  %v4495_v62 = vor.u32 %v5188_v60, %v4492_v61  ;;  %v5132_v1 = vld [vmem:[#allocation11 + $0x504] sm:$0xf]  ;;  %v4018_v60 = vld [vmem:[#allocation11 + $0x308] sm:$0xf] }
  0xd8   :  { %v4268_v3 = vld [vmem:[#allocation11 + $0x520] sm:$0xf0]  ;;  %v5073_v61 = vld [vmem:[#allocation11 + $0x324] sm:$0xf0] }
  0xd9   :  { %v5124_v8 = vld [vmem:[#allocation11 + $0x4c4] sm:$0xf] }
  0xda   :  { %2342 = vmatpush.bf16.msrb.mxu3 %v4079_v4  ;;  %2329 = vmatpush.bf16.msrb.mxu2 %v3823_v6  ;;  %v4271_v4 = vor.u32 %v5132_v1, %v4268_v3  ;;  %v4460_v6 = vld [vmem:[#allocation11 + $0x6a0] sm:$0xf0]  ;;  %v5017_v3 = vld [vmem:[#allocation11 + $0x164] sm:$0xf0] }
  0xdb   :  { %2368 = vmatpush.bf16.msra.mxu1 %v4591_v28  ;;  %2355 = vmatpush.bf16.msra.mxu0 %v4335_v47  ;;  %v4463_v7 = vor.u32 %v5180_v5, %v4460_v6  ;;  %v4236_v9 = vld [vmem:[#allocation11 + $0x4e0] sm:$0xf0]  ;;  %v5033_v47 = vld [vmem:[#allocation11 + $0x1e4] sm:$0xf0]  ;;  %v284_v5 = vperm.slane %v5643_v23, 2 }
  0xdc   :  { %v5116_v14 = vld [vmem:[#allocation11 + $0x484] sm:$0xf]  ;;  %v3859_v52 = vor.u32 %v5033_v47, %v3858_v46  ;;  %v3986_v6 = vld [vmem:[#allocation11 + $0x2c8] sm:$0xf] }
  0xdd   :  { %v4204_v15 = vld [vmem:[#allocation11 + $0x4a0] sm:$0xf0]  ;;  %v4594_v23 = vld [vmem:[#allocation11 + $0x788] sm:$0xf] }
  0xde   :  { %2343 = vmatpush.bf16.msrb.mxu3 %v4047_v10  ;;  %2330 = vmatpush.bf16.msrb.mxu2 %v3791_v12  ;;  %v4239_v10 = vor.u32 %v5124_v8, %v4236_v9  ;;  %v4428_v12 = vld [vmem:[#allocation11 + $0x660] sm:$0xf0]  ;;  %v5065_v8 = vld [vmem:[#allocation11 + $0x2e4] sm:$0xf0] }
  0xdf   :  { %2369 = vmatpush.bf16.msra.mxu1 %v4559_v42  ;;  %2356 = vmatpush.bf16.msra.mxu0 %v4303_v59  ;;  %v4431_v13 = vor.u32 %v5172_v11, %v4428_v12  ;;  %v4396_v18 = vld [vmem:[#allocation11 + $0x620] sm:$0xf0]  ;;  %v4082_v42 = vld [vmem:[#allocation11 + $0x388] sm:$0xf] }
  0xe0   :  { %v4172_v21 = vld [vmem:[#allocation11 + $0x460] sm:$0xf0]  ;;  %v4083_v48 = vor.u32 %v5089_v43, %v4082_v42  ;;  %v4626_v9 = vld [vmem:[#allocation11 + $0x7c8] sm:$0xf] }
  0xe1   :  { %v4140_v25 = vld [vmem:[#allocation11 + $0x420] sm:$0xf0]  ;;  %v4338_v46 = vld [vmem:[#allocation11 + $0x588] sm:$0xf] }
  0xe2   :  { %2344 = vmatpush.bf16.msrb.mxu3 %v4015_v16  ;;  %2331 = vmatpush.bf16.msrb.mxu2 %v3759_v17  ;;  %v4207_v16 = vor.u32 %v5116_v14, %v4204_v15  ;;  %v5164_v17 = vld [vmem:[#allocation11 + $0x604] sm:$0xf]  ;;  %v5009_v14 = vld [vmem:[#allocation11 + $0x124] sm:$0xf0] }
  0xe3   :  { %2370 = vmatpush.bf16.msra.mxu1 %v4527_v53  ;;  %2357 = vmatpush.bf16.msra.mxu0 %v4271_v4  ;;  %v4399_v19 = vor.u32 %v5164_v17, %v4396_v18  ;;  %v4019_v4 = vor.u32 %v5073_v61, %v4018_v60  ;;  %v3954_v18 = vld [vmem:[#allocation11 + $0x288] sm:$0xf]  ;;  %v4116_v60 = vld [vmem:[#allocation11 + $0x3e8] sm:$0xf0] }
  0xe4   :  { %v5153_v47 = vld [vmem:[#allocation11 + $0x5a4] sm:$0xf0] }
  0xe5   :  { %v3666_v61 = vld [vmem:[#allocation11 + $0x48] sm:$0xf] }
  0xe6   :  { %2345 = vmatpush.bf16.msrb.mxu3 %v3983_v20  ;;  %2332 = vmatpush.bf16.msrb.mxu2 %v3727_v34  ;;  %v5108_v20 = vld [vmem:[#allocation11 + $0x444] sm:$0xf]  ;;  %v4114_v34 = vld [vmem:[#allocation11 + $0x3c8] sm:$0xf] }
  0xe7   :  { %2371 = vmatpush.bf16.msra.mxu1 %v4495_v62  ;;  %2358 = vmatpush.bf16.msra.mxu0 %v4239_v10  ;;  %v4175_v22 = vor.u32 %v5108_v20, %v4172_v21  ;;  %v4115_v39 = vor.u32 %v5097_v36, %v4114_v34  ;;  %v5225_v10 = vld [vmem:[#allocation11 + $0x7e4] sm:$0xf0] }
  0xe8   :  { %v4627_v17 = vor.u32 %v5225_v10, %v4626_v9  ;;  %v4084_v9 = vld [vmem:[#allocation11 + $0x3a8] sm:$0xf0]  ;;  %v3634_v10 = vld [vmem:[#allocation11 + $0x8] sm:$0xf] }
  0xea   :  { %2346 = vmatpush.bf16.msrb.mxu3 %v3951_v24  ;;  %2333 = vmatpush.bf16.msrb.mxu2 %v3695_v45  ;;  %v5100_v24 = vld [vmem:[#allocation11 + $0x404] sm:$0xf] }
  0xeb   :  { %2372 = vmatpush.bf16.msra.mxu1 %v4463_v7  ;;  %2359 = vmatpush.bf16.msra.mxu0 %v4207_v16  ;;  %v4143_v27 = vor.u32 %v5100_v24, %v4140_v25  ;;  %v3987_v16 = vor.u32 %v5065_v8, %v3986_v6  ;;  %v5217_v24 = vld [vmem:[#allocation11 + $0x7a4] sm:$0xf0]  ;;  %v5085_v8 = vld [vmem:[#allocation11 + $0x38c] sm:$0xf] }
  0xec   :  { %v4595_v36 = vor.u32 %v5217_v24, %v4594_v23  ;;  %v5077_v23 = vld [vmem:[#allocation11 + $0x34c] sm:$0xf] }
  0xed   :  { %v4052_v24 = vld [vmem:[#allocation11 + $0x368] sm:$0xf0] }
  0xee   :  { %2347 = vmatpush.bf16.msrb.mxu3 %v3919_v40  ;;  %2334 = vmatpush.bf16.msrb.mxu2 %v3663_v56  ;;  %v5025_v56 = vld [vmem:[#allocation11 + $0x1a4] sm:$0xf0] }
  0xef   :  { %2373 = vmatpush.bf16.msra.mxu1 %v4431_v13  ;;  %2360 = vmatpush.bf16.msra.mxu0 %v4175_v22  ;;  %v3827_v63 = vor.u32 %v5025_v56, %v3826_v55  ;;  %v3762_v13 = vld [vmem:[#allocation11 + $0x108] sm:$0xf] }
  0xf0   :  { %v5057_v22 = vld [vmem:[#allocation11 + $0x2a4] sm:$0xf0] }
  0xf1   :  { %v3955_v34 = vor.u32 %v5057_v22, %v3954_v18  ;;  %v4530_v55 = vld [vmem:[#allocation11 + $0x708] sm:$0xf] }
  0xf2   :  { %2348 = vmatpush.bf16.msrb.mxu3 %v3887_v50  ;;  %2335 = vmatpush.bf16.msrb.mxu2 %v3631_v2  ;;  %v4050_v50 = vld [vmem:[#allocation11 + $0x348] sm:$0xf] }
  0xf3   :  { %2374 = vmatpush.bf16.msra.mxu1 %v4399_v19  ;;  %2361 = vmatpush.bf16.msra.mxu0 %v4143_v27  ;;  %v4051_v58 = vor.u32 %v5081_v51, %v4050_v50  ;;  %v3794_v2 = vld [vmem:[#allocation11 + $0x148] sm:$0xf] }
  0xf4   :  { %v3795_v11 = vor.u32 %v5017_v3, %v3794_v2  ;;  %v3730_v27 = vld [vmem:[#allocation11 + $0xc8] sm:$0xf] }
  0xf5   :  { %v3890_v51 = vld [vmem:[#allocation11 + $0x208] sm:$0xf] }
  0xf6   :  { %v5201_v56 = vld [vmem:[#allocation11 + $0x724] sm:$0xf0] }
  0xf7   :  { %v4531_v2 = vor.u32 %v5201_v56, %v4530_v55  ;;  %v4466_v18 = vld [vmem:[#allocation11 + $0x688] sm:$0xf] }
  0xf8   :  { %v4178_v55 = vld [vmem:[#allocation11 + $0x448] sm:$0xf] }
  0xf9   :  { %v5113_v56 = vld [vmem:[#allocation11 + $0x464] sm:$0xf0] }
 0x131   :  { %v645_v28 = vpop.f32.mrf.mxu0 }
 0x132   :  { %v646_v29 = vadd.f32 %v645_v28, %v283_v26  ;;  %v658_v31 = vpop.f32.mrf.mxu1  ;;  %v3763_v26 = vor.u32 %v5009_v14, %v3762_v13  ;;  %v5137_v13 = vld [vmem:[#allocation11 + $0x524] sm:$0xf0] }
 0x134   :  { %v659_v32 = vadd.f32 %v658_v31, %v646_v29  ;;  %v5001_v31 = vld [vmem:[#allocation11 + $0xe4] sm:$0xf0] }
 0x135   :  { %v3731_v42 = vor.u32 %v5001_v31, %v3730_v27  ;;  %v5129_v27 = vld [vmem:[#allocation11 + $0x4e4] sm:$0xf0]  ;;  %v3828_v31 = vld [vmem:[#allocation11 + $0x1a8] sm:$0xf0] }
 0x136   :  { %v715_v37 = vmax.f32 %v659_v32, 0.0  ;;  %v4370_v32 = vld [vmem:[#allocation11 + $0x5c8] sm:$0xf] }
 0x137   :  { %v619_v38 = vpop.f32.mrf.mxu2 }
 0x138   :  { %v5647_v30 = vpack.c.bf16 %v715_v37, %v715_v37  ;;  %v620_v40 = vadd.f32 %v619_v38, %v282_v33  ;;  %v632_v41 = vpop.f32.mrf.mxu3  ;;  %v5161_v33 = vld [vmem:[#allocation11 + $0x5e4] sm:$0xf0] }
 0x139   :  { %v647_v35 = vpop.f32.mrf.mxu0  ;;  %v3922_v37 = vld [vmem:[#allocation11 + $0x248] sm:$0xf]  ;;  %v4371_v43 = vor.u32 %v5161_v33, %v4370_v32  ;;  %v4055_v32 = vor.u32 %v5077_v23, %v4052_v24  ;;  %v4340_v23 = vld [vmem:[#allocation11 + $0x5a8] sm:$0xf0] }
 0x13a   :  { %v633_v44 = vadd.f32 %v632_v41, %v620_v40  ;;  %v660_v45 = vpop.f32.mrf.mxu1  ;;  %2297 = vmatmul.bf16.vlgmr.msra.gmra.mxu3 %v5647_v30  ;;  %v5049_v38 = vld [vmem:[#allocation11 + $0x264] sm:$0xf0] }
 0x13b   :  { %2393 = vmatpush.bf16.msra.mxu3 %v4115_v39  ;;  %v4562_v40 = vld [vmem:[#allocation11 + $0x748] sm:$0xf] }
 0x13c   :  { %v714_v49 = vmax.f32 %v633_v44, 0.0  ;;  %v5209_v41 = vld [vmem:[#allocation11 + $0x764] sm:$0xf0] }
 0x13d   :  { %v3698_v35 = vld [vmem:[#allocation11 + $0x88] sm:$0xf]  ;;  %v4563_v50 = vor.u32 %v5209_v41, %v4562_v40 }
 0x13e   :  { %v5650_v53 = vpack.c.bf16 %v714_v49, %v714_v49  ;;  %v4993_v45 = vld [vmem:[#allocation11 + $0xa4] sm:$0xf0]  ;;  %v3923_v49 = vor.u32 %v5049_v38, %v3922_v37  ;;  %v5069_v37 = vld [vmem:[#allocation11 + $0x30c] sm:$0xf] }
 0x13f   :  { %2394 = vmatpush.bf16.msra.mxu3 %v4083_v48  ;;  %v621_v57 = vpop.f32.mrf.mxu2  ;;  %v4434_v33 = vld [vmem:[#allocation11 + $0x648] sm:$0xf]  ;;  %v4020_v38 = vld [vmem:[#allocation11 + $0x328] sm:$0xf0] }
 0x140   :  { %v634_v59 = vpop.f32.mrf.mxu3  ;;  %2284 = vmatmul.bf16.vlgmr.msra.gmra.mxu2 %v5650_v53  ;;  %v3699_v57 = vor.u32 %v4993_v45, %v3698_v35  ;;  %v4210_v40 = vld [vmem:[#allocation11 + $0x488] sm:$0xf]  ;;  %v3796_v35 = vld [vmem:[#allocation11 + $0x168] sm:$0xf0]  ;;  %v4023_v45 = vor.u32 %v5069_v37, %v4020_v38 }
 0x141   :  { %2380 = vmatpush.bf16.msra.mxu2 %v3859_v52  ;;  %v697_v62 = vpop.f32.mrf.mxu0  ;;  %v5093_v59 = vld [vmem:[#allocation11 + $0x3cc] sm:$0xf]  ;;  %v5121_v41 = vld [vmem:[#allocation11 + $0x4a4] sm:$0xf0] }
 0x142   :  { %v698_v0 = vadd.f32 %v697_v62, %v285_v54  ;;  %v710_v1 = vpop.f32.mrf.mxu1  ;;  %v5041_v54 = vld [vmem:[#allocation11 + $0x224] sm:$0xf0]  ;;  %v4119_v3 = vor.u32 %v5093_v59, %v4116_v60  ;;  %v3764_v59 = vld [vmem:[#allocation11 + $0x128] sm:$0xf0] }
 0x143   :  { %2395 = vmatpush.bf16.msra.mxu3 %v4051_v58  ;;  %v4339_v58 = vor.u32 %v5153_v47, %v4338_v46  ;;  %v4985_v62 = vld [vmem:[#allocation11 + $0x64] sm:$0xf0]  ;;  %v3668_v37 = vld [vmem:[#allocation11 + $0x68] sm:$0xf0] }
 0x144   :  { %v711_v7 = vadd.f32 %v710_v1, %v698_v0  ;;  %v5145_v0 = vld [vmem:[#allocation11 + $0x564] sm:$0xf0]  ;;  %v3891_v1 = vor.u32 %v5041_v54, %v3890_v51  ;;  %v3667_v6 = vor.u32 %v4985_v62, %v3666_v61  ;;  %v5221_v51 = vld [vmem:[#allocation11 + $0x7cc] sm:$0xf] }
 0x145   :  { %2381 = vmatpush.bf16.msra.mxu2 %v3827_v63  ;;  %v4306_v63 = vld [vmem:[#allocation11 + $0x548] sm:$0xf]  ;;  %v5053_v62 = vld [vmem:[#allocation11 + $0x28c] sm:$0xf] }
 0x146   :  { %v717_v12 = vmax.f32 %v711_v7, 0.0  ;;  %v4307_v7 = vor.u32 %v5145_v0, %v4306_v63  ;;  %v4402_v46 = vld [vmem:[#allocation11 + $0x608] sm:$0xf]  ;;  %v4179_v63 = vor.u32 %v5113_v56, %v4178_v55  ;;  %v3956_v0 = vld [vmem:[#allocation11 + $0x2a8] sm:$0xf0] }
 0x147   :  { %2396 = vmatpush.bf16.msra.mxu3 %v4019_v4  ;;  %v671_v15 = vpop.f32.mrf.mxu2  ;;  %v4498_v4 = vld [vmem:[#allocation11 + $0x6c8] sm:$0xf]  ;;  %v5141_v38 = vld [vmem:[#allocation11 + $0x54c] sm:$0xf]  ;;  %v3866_v55 = vld [vmem:[#allocation11 + $0x1d0] sm:$0xf] }
 0x148   :  { %v5655_v19 = vpack.c.bf16 %v717_v12, %v717_v12  ;;  %v672_v20 = vadd.f32 %v671_v15, %v284_v5  ;;  %v684_v21 = vpop.f32.mrf.mxu3  ;;  %v5193_v5 = vld [vmem:[#allocation11 + $0x6e4] sm:$0xf0]  ;;  %v5029_v15 = vld [vmem:[#allocation11 + $0x1cc] sm:$0xf]  ;;  %v5034_v56 = vld [vmem:[#allocation11 + $0x1ec] sm:$0xf0] }
 0x149   :  { %2382 = vmatpush.bf16.msra.mxu2 %v3795_v11  ;;  %v699_v25 = vpop.f32.mrf.mxu0  ;;  %v4977_v11 = vld [vmem:[#allocation11 + $0x24] sm:$0xf0]  ;;  %v4499_v14 = vor.u32 %v5193_v5, %v4498_v4 }
 0x14a   :  { %v685_v28 = vadd.f32 %v684_v21, %v672_v20  ;;  %v712_v29 = vpop.f32.mrf.mxu1  ;;  %2323 = vmatmul.bf16.vlgmr.msrb.gmra.mxu1 %v5655_v19  ;;  %2349 = vmatmul.bf16.vlgmr.msrb.gmra.mxu3 %v5647_v30  ;;  %v4274_v12 = vld [vmem:[#allocation11 + $0x508] sm:$0xf]  ;;  %v3635_v21 = vor.u32 %v4977_v11, %v3634_v10  ;;  %v3959_v10 = vor.u32 %v5053_v62, %v3956_v0  ;;  %v4058_v62 = vld [vmem:[#allocation11 + $0x350] sm:$0xf] }
 0x14b   :  { %2397 = vmatpush.bf16.msra.mxu3 %v3987_v16  ;;  %2419 = vmatpush.bf16.msrb.mxu1 %v4627_v17  ;;  %v3860_v16 = vld [vmem:[#allocation11 + $0x1e8] sm:$0xf0]  ;;  %v4087_v17 = vor.u32 %v5085_v8, %v4084_v9  ;;  %v5185_v20 = vld [vmem:[#allocation11 + $0x6a4] sm:$0xf0]  ;;  %v4275_v22 = vor.u32 %v5137_v13, %v4274_v12  ;;  %v3867_v0 = vor.u32 %v5034_v56, %v3866_v55 }
 0x14c   :  { %v716_v39 = vmax.f32 %v685_v28, 0.0  ;;  %v3863_v25 = vor.u32 %v5029_v15, %v3860_v16  ;;  %v4467_v28 = vor.u32 %v5185_v20, %v4466_v18  ;;  %v5021_v29 = vld [vmem:[#allocation11 + $0x18c] sm:$0xf]  ;;  %v5169_v47 = vld [vmem:[#allocation11 + $0x624] sm:$0xf0] }
 0x14d   :  { %2383 = vmatpush.bf16.msra.mxu2 %v3763_v26  ;;  %v4242_v26 = vld [vmem:[#allocation11 + $0x4c8] sm:$0xf]  ;;  %v5157_v8 = vld [vmem:[#allocation11 + $0x5cc] sm:$0xf] }
 0x14e   :  { %v5659_v44 = vpack.c.bf16 %v716_v39, %v716_v39  ;;  %v3831_v39 = vor.u32 %v5021_v29, %v3828_v31  ;;  %v4146_v4 = vld [vmem:[#allocation11 + $0x408] sm:$0xf]  ;;  %v4372_v9 = vld [vmem:[#allocation11 + $0x5e8] sm:$0xf0] }
 0x14f   :  { %2398 = vmatpush.bf16.msra.mxu3 %v3955_v34  ;;  %2420 = vmatpush.bf16.msrb.mxu1 %v4595_v36  ;;  %v673_v48 = vpop.f32.mrf.mxu2  ;;  %v5177_v34 = vld [vmem:[#allocation11 + $0x664] sm:$0xf0]  ;;  %v4243_v36 = vor.u32 %v5129_v27, %v4242_v26  ;;  %v5045_v12 = vld [vmem:[#allocation11 + $0x24c] sm:$0xf]  ;;  %v4375_v18 = vor.u32 %v5157_v8, %v4372_v9 }
 0x150   :  { %v686_v52 = vpop.f32.mrf.mxu3  ;;  %2310 = vmatmul.bf16.vlgmr.msrb.gmra.mxu0 %v5659_v44  ;;  %2336 = vmatmul.bf16.vlgmr.msrb.gmra.mxu2 %v5650_v53  ;;  %v5061_v48 = vld [vmem:[#allocation11 + $0x2cc] sm:$0xf]  ;;  %v5105_v5 = vld [vmem:[#allocation11 + $0x424] sm:$0xf0] }
 0x151   :  { %2384 = vmatpush.bf16.msra.mxu2 %v3731_v42  ;;  %2406 = vmatpush.bf16.msrb.mxu0 %v4371_v43  ;;  %v4435_v42 = vor.u32 %v5177_v34, %v4434_v33  ;;  %v5013_v43 = vld [vmem:[#allocation11 + $0x14c] sm:$0xf]  ;;  %v4147_v13 = vor.u32 %v5105_v5, %v4146_v4  ;;  %v4122_v33 = vld [vmem:[#allocation11 + $0x3d0] sm:$0xf] }
 0x152   :  { %v4628_v52 = vld [vmem:[#allocation11 + $0x7e8] sm:$0xf0]  ;;  %v3799_v54 = vor.u32 %v5013_v43, %v3796_v35  ;;  %v5098_v34 = vld [vmem:[#allocation11 + $0x3ec] sm:$0xf0] }
 0x153   :  { %2399 = vmatpush.bf16.msra.mxu3 %v3923_v49  ;;  %2421 = vmatpush.bf16.msrb.mxu1 %v4563_v50  ;;  %v4211_v49 = vor.u32 %v5121_v41, %v4210_v40  ;;  %v3988_v50 = vld [vmem:[#allocation11 + $0x2e8] sm:$0xf0]  ;;  %v4631_v61 = vor.u32 %v5221_v51, %v4628_v52  ;;  %v3834_v4 = vld [vmem:[#allocation11 + $0x190] sm:$0xf] }
 0x154   :  { %v3991_v60 = vor.u32 %v5061_v48, %v3988_v50  ;;  %v5205_v15 = vld [vmem:[#allocation11 + $0x74c] sm:$0xf]  ;;  %v5090_v48 = vld [vmem:[#allocation11 + $0x3ac] sm:$0xf0] }
 0x155   :  { %2385 = vmatpush.bf16.msra.mxu2 %v3699_v57  ;;  %2407 = vmatpush.bf16.msrb.mxu0 %v4339_v58  ;;  %v4403_v57 = vor.u32 %v5169_v47, %v4402_v46  ;;  %v5005_v58 = vld [vmem:[#allocation11 + $0x10c] sm:$0xf]  ;;  %v4090_v47 = vld [vmem:[#allocation11 + $0x390] sm:$0xf] }
 0x156   :  { %v4564_v16 = vld [vmem:[#allocation11 + $0x768] sm:$0xf0]  ;;  %v5026_v5 = vld [vmem:[#allocation11 + $0x1ac] sm:$0xf0] }
 0x157   :  { %2400 = vmatpush.bf16.msra.mxu3 %v3891_v1  ;;  %2422 = vmatpush.bf16.msrb.mxu1 %v4531_v2  ;;  %v5213_v1 = vld [vmem:[#allocation11 + $0x78c] sm:$0xf] }
 0x158   :  { %v4596_v2 = vld [vmem:[#allocation11 + $0x7a8] sm:$0xf0] }
 0x159   :  { %2386 = vmatpush.bf16.msra.mxu2 %v3667_v6  ;;  %2408 = vmatpush.bf16.msrb.mxu0 %v4307_v7  ;;  %v4997_v6 = vld [vmem:[#allocation11 + $0xcc] sm:$0xf]  ;;  %v4599_v11 = vor.u32 %v5213_v1, %v4596_v2 }
 0x15a   :  { %2375 = vmatmul.bf16.vlgmr.msra.gmra.mxu1 %v5655_v19  ;;  %2401 = vmatmul.bf16.vlgmr.msra.gmra.mxu3 %v5647_v30  ;;  %v3732_v7 = vld [vmem:[#allocation11 + $0xe8] sm:$0xf0] }
 0x15b   :  { %2445 = vmatpush.bf16.msrb.mxu3 %v4119_v3  ;;  %2423 = vmatpush.bf16.msrb.mxu1 %v4499_v14  ;;  %v3767_v3 = vor.u32 %v5005_v58, %v3764_v59  ;;  %v3924_v14 = vld [vmem:[#allocation11 + $0x268] sm:$0xf0] }
 0x15c   :  { %v4989_v20 = vld [vmem:[#allocation11 + $0x8c] sm:$0xf]  ;;  %v3927_v24 = vor.u32 %v5045_v12, %v3924_v14  ;;  %v3835_v12 = vor.u32 %v5026_v5, %v3834_v4  ;;  %v5202_v4 = vld [vmem:[#allocation11 + $0x72c] sm:$0xf0] }
 0x15d   :  { %2387 = vmatpush.bf16.msra.mxu2 %v3635_v21  ;;  %2409 = vmatpush.bf16.msrb.mxu0 %v4275_v22  ;;  %v3700_v21 = vld [vmem:[#allocation11 + $0xa8] sm:$0xf0] }
 0x15e   :  { %v5149_v22 = vld [vmem:[#allocation11 + $0x58c] sm:$0xf]  ;;  %v3703_v31 = vor.u32 %v4989_v20, %v3700_v21 }
 0x15f   :  { %2446 = vmatpush.bf16.msrb.mxu3 %v4087_v17  ;;  %2424 = vmatpush.bf16.msrb.mxu1 %v4467_v28  ;;  %v3735_v17 = vor.u32 %v4997_v6, %v3732_v7  ;;  %v5037_v26 = vld [vmem:[#allocation11 + $0x20c] sm:$0xf] }
 0x160   :  { %2362 = vmatmul.bf16.vlgmr.msra.gmra.mxu0 %v5659_v44  ;;  %2388 = vmatmul.bf16.vlgmr.msra.gmra.mxu2 %v5650_v53  ;;  %v3892_v27 = vld [vmem:[#allocation11 + $0x228] sm:$0xf0] }
 0x161   :  { %2432 = vmatpush.bf16.msrb.mxu2 %v3863_v25  ;;  %2410 = vmatpush.bf16.msrb.mxu0 %v4243_v36  ;;  %v4567_v25 = vor.u32 %v5205_v15, %v4564_v16  ;;  %v5197_v28 = vld [vmem:[#allocation11 + $0x70c] sm:$0xf]  ;;  %v3895_v40 = vor.u32 %v5037_v26, %v3892_v27  ;;  %v3802_v16 = vld [vmem:[#allocation11 + $0x150] sm:$0xf] }
 0x162   :  { %v4532_v29 = vld [vmem:[#allocation11 + $0x728] sm:$0xf0]  ;;  %v5226_v26 = vld [vmem:[#allocation11 + $0x7ec] sm:$0xf0] }
 0x163   :  { %2447 = vmatpush.bf16.msrb.mxu3 %v4055_v32  ;;  %2425 = vmatpush.bf16.msrb.mxu1 %v4435_v42  ;;  %v4343_v32 = vor.u32 %v5149_v22, %v4340_v23  ;;  %v4981_v36 = vld [vmem:[#allocation11 + $0x4c] sm:$0xf]  ;;  %v4535_v41 = vor.u32 %v5197_v28, %v4532_v29  ;;  %v4123_v42 = vor.u32 %v5098_v34, %v4122_v33  ;;  %v3994_v22 = vld [vmem:[#allocation11 + $0x2d0] sm:$0xf] }
 0x164   :  { %v5189_v43 = vld [vmem:[#allocation11 + $0x6cc] sm:$0xf]  ;;  %v5010_v33 = vld [vmem:[#allocation11 + $0x12c] sm:$0xf0] }
 0x165   :  { %2433 = vmatpush.bf16.msrb.mxu2 %v3831_v39  ;;  %2411 = vmatpush.bf16.msrb.mxu0 %v4211_v49  ;;  %v4308_v39 = vld [vmem:[#allocation11 + $0x568] sm:$0xf0] }
 0x166   :  { %v4500_v35 = vld [vmem:[#allocation11 + $0x6e8] sm:$0xf0]  ;;  %v4311_v46 = vor.u32 %v5141_v38, %v4308_v39  ;;  %v5058_v39 = vld [vmem:[#allocation11 + $0x2ac] sm:$0xf0] }
 0x167   :  { %2448 = vmatpush.bf16.msrb.mxu3 %v4023_v45  ;;  %2426 = vmatpush.bf16.msrb.mxu1 %v4403_v57  ;;  %v3671_v45 = vor.u32 %v4981_v36, %v3668_v37  ;;  %v4973_v49 = vld [vmem:[#allocation11 + $0xc] sm:$0xf]  ;;  %v4091_v57 = vor.u32 %v5090_v48, %v4090_v47  ;;  %v3962_v37 = vld [vmem:[#allocation11 + $0x290] sm:$0xf] }
 0x168   :  { %v3636_v50 = vld [vmem:[#allocation11 + $0x28] sm:$0xf0]  ;;  %v4378_v47 = vld [vmem:[#allocation11 + $0x5d0] sm:$0xf] }
 0x169   :  { %2434 = vmatpush.bf16.msrb.mxu2 %v3799_v54  ;;  %2412 = vmatpush.bf16.msrb.mxu0 %v4179_v63  ;;  %v5133_v51 = vld [vmem:[#allocation11 + $0x50c] sm:$0xf]  ;;  %v4503_v54 = vor.u32 %v5189_v43, %v4500_v35  ;;  %v5082_v63 = vld [vmem:[#allocation11 + $0x36c] sm:$0xf0] }
 0x16a   :  { %2427 = vmatmul.bf16.vlgmr.msrb.gmra.mxu1 %v5655_v19  ;;  %v4276_v52 = vld [vmem:[#allocation11 + $0x528] sm:$0xf0]  ;;  %v4059_v6 = vor.u32 %v5082_v63, %v4058_v62  ;;  %v5162_v48 = vld [vmem:[#allocation11 + $0x5ec] sm:$0xf0] }
 0x16b   :  { %2449 = vmatpush.bf16.msrb.mxu3 %v3991_v60  ;;  %2471 = vmatpush.bf16.msra.mxu1 %v4631_v61  ;;  %v5181_v58 = vld [vmem:[#allocation11 + $0x68c] sm:$0xf]  ;;  %v3639_v60 = vor.u32 %v4973_v49, %v3636_v50  ;;  %v4279_v61 = vor.u32 %v5133_v51, %v4276_v52  ;;  %v3963_v49 = vor.u32 %v5058_v39, %v3962_v37  ;;  %v3930_v52 = vld [vmem:[#allocation11 + $0x250] sm:$0xf]  ;;  %v5078_v37 = vld [vmem:[#allocation11 + $0x354] sm:$0xf] }
 0x16c   :  { %v4468_v59 = vld [vmem:[#allocation11 + $0x6a8] sm:$0xf0]  ;;  %v4379_v56 = vor.u32 %v5162_v48, %v4378_v47  ;;  %v5154_v62 = vld [vmem:[#allocation11 + $0x5ac] sm:$0xf0]  ;;  %v4060_v39 = vld [vmem:[#allocation11 + $0x370] sm:$0xf0] }
 0x16d   :  { %2435 = vmatpush.bf16.msrb.mxu2 %v3767_v3  ;;  %2413 = vmatpush.bf16.msrb.mxu0 %v4147_v13  ;;  %v5125_v1 = vld [vmem:[#allocation11 + $0x4cc] sm:$0xf]  ;;  %v4471_v3 = vor.u32 %v5181_v58, %v4468_v59  ;;  %v5210_v58 = vld [vmem:[#allocation11 + $0x76c] sm:$0xf0] }
 0x16e   :  { %v4244_v2 = vld [vmem:[#allocation11 + $0x4e8] sm:$0xf0]  ;;  %v3706_v59 = vld [vmem:[#allocation11 + $0x90] sm:$0xf] }
 0x16f   :  { %2450 = vmatpush.bf16.msrb.mxu3 %v3959_v10  ;;  %2472 = vmatpush.bf16.msra.mxu1 %v4599_v11  ;;  %v5173_v7 = vld [vmem:[#allocation11 + $0x64c] sm:$0xf]  ;;  %v4247_v9 = vor.u32 %v5125_v1, %v4244_v2  ;;  %v4026_v10 = vld [vmem:[#allocation11 + $0x310] sm:$0xf] }
 0x170   :  { %2414 = vmatmul.bf16.vlgmr.msrb.gmra.mxu0 %v5659_v44  ;;  %v4436_v8 = vld [vmem:[#allocation11 + $0x668] sm:$0xf0]  ;;  %v5074_v11 = vld [vmem:[#allocation11 + $0x32c] sm:$0xf0] }
 0x171   :  { %2436 = vmatpush.bf16.msrb.mxu2 %v3735_v17  ;;  %2458 = vmatpush.bf16.msra.mxu0 %v4375_v18  ;;  %v5117_v13 = vld [vmem:[#allocation11 + $0x48c] sm:$0xf]  ;;  %v4439_v15 = vor.u32 %v5173_v7, %v4436_v8  ;;  %v5018_v17 = vld [vmem:[#allocation11 + $0x16c] sm:$0xf0]  ;;  %v4027_v18 = vor.u32 %v5074_v11, %v4026_v10  ;;  %v5094_v7 = vld [vmem:[#allocation11 + $0x3d4] sm:$0xf] }
 0x172   :  { %v4212_v14 = vld [vmem:[#allocation11 + $0x4a8] sm:$0xf0]  ;;  %v3803_v27 = vor.u32 %v5018_v17, %v3802_v16  ;;  %v5042_v2 = vld [vmem:[#allocation11 + $0x22c] sm:$0xf0]  ;;  %v4124_v8 = vld [vmem:[#allocation11 + $0x3f0] sm:$0xf0] }
 0x173   :  { %2451 = vmatpush.bf16.msrb.mxu3 %v3927_v24  ;;  %2473 = vmatpush.bf16.msra.mxu1 %v4567_v25  ;;  %v5165_v20 = vld [vmem:[#allocation11 + $0x60c] sm:$0xf]  ;;  %v4215_v23 = vor.u32 %v5117_v13, %v4212_v14  ;;  %v5066_v24 = vld [vmem:[#allocation11 + $0x2ec] sm:$0xf0] }
 0x174   :  { %v4404_v21 = vld [vmem:[#allocation11 + $0x628] sm:$0xf0]  ;;  %v4634_v25 = vld [vmem:[#allocation11 + $0x7d0] sm:$0xf]  ;;  %v3995_v34 = vor.u32 %v5066_v24, %v3994_v22  ;;  %v4092_v22 = vld [vmem:[#allocation11 + $0x3b0] sm:$0xf0] }
 0x175   :  { %2437 = vmatpush.bf16.msrb.mxu2 %v3703_v31  ;;  %2459 = vmatpush.bf16.msra.mxu0 %v4343_v32  ;;  %v5109_v28 = vld [vmem:[#allocation11 + $0x44c] sm:$0xf]  ;;  %v4407_v31 = vor.u32 %v5165_v20, %v4404_v21  ;;  %v3770_v32 = vld [vmem:[#allocation11 + $0x110] sm:$0xf]  ;;  %v4635_v36 = vor.u32 %v5226_v26, %v4634_v25  ;;  %v5086_v21 = vld [vmem:[#allocation11 + $0x394] sm:$0xf] }
 0x176   :  { %v4180_v29 = vld [vmem:[#allocation11 + $0x468] sm:$0xf0]  ;;  %v4986_v10 = vld [vmem:[#allocation11 + $0x6c] sm:$0xf0] }
 0x177   :  { %2452 = vmatpush.bf16.msrb.mxu3 %v3895_v40  ;;  %2474 = vmatpush.bf16.msra.mxu1 %v4535_v41  ;;  %v4183_v38 = vor.u32 %v5109_v28, %v4180_v29  ;;  %v4602_v40 = vld [vmem:[#allocation11 + $0x790] sm:$0xf]  ;;  %v5101_v43 = vld [vmem:[#allocation11 + $0x40c] sm:$0xf]  ;;  %v3868_v28 = vld [vmem:[#allocation11 + $0x1f0] sm:$0xf0] }
 0x178   :  { %v5218_v41 = vld [vmem:[#allocation11 + $0x7ac] sm:$0xf0]  ;;  %v4148_v35 = vld [vmem:[#allocation11 + $0x428] sm:$0xf0] }
 0x179   :  { %2438 = vmatpush.bf16.msrb.mxu2 %v3671_v45  ;;  %2460 = vmatpush.bf16.msra.mxu0 %v4311_v46  ;;  %v3738_v45 = vld [vmem:[#allocation11 + $0xd0] sm:$0xf]  ;;  %v4603_v50 = vor.u32 %v5218_v41, %v4602_v40  ;;  %v4151_v51 = vor.u32 %v5101_v43, %v4148_v35  ;;  %v3836_v43 = vld [vmem:[#allocation11 + $0x1b0] sm:$0xf0] }
 0x17a   :  { %2453 = vmatmul.bf16.vlgmr.msrb.gmra.mxu3 %v5647_v30  ;;  %v5002_v46 = vld [vmem:[#allocation11 + $0xec] sm:$0xf0] }
 0x17b   :  { %2497 = vmatpush.bf16.msra.mxu3 %v4123_v42  ;;  %2475 = vmatpush.bf16.msra.mxu1 %v4503_v54  ;;  %v3771_v42 = vor.u32 %v5010_v33, %v3770_v32  ;;  %v5050_v54 = vld [vmem:[#allocation11 + $0x26c] sm:$0xf0]  ;;  %v3739_v55 = vor.u32 %v5002_v46, %v3738_v45  ;;  %v4063_v45 = vor.u32 %v5078_v37, %v4060_v39  ;;  %v4348_v37 = vld [vmem:[#allocation11 + $0x5b0] sm:$0xf0] }
 0x17c   :  { %v3931_v63 = vor.u32 %v5050_v54, %v3930_v52  ;;  %v4314_v11 = vld [vmem:[#allocation11 + $0x550] sm:$0xf]  ;;  %v5038_v39 = vld [vmem:[#allocation11 + $0x214] sm:$0xf] }
 0x17d   :  { %2439 = vmatpush.bf16.msrb.mxu2 %v3639_v60  ;;  %2461 = vmatpush.bf16.msra.mxu0 %v4279_v61  ;;  %v4994_v60 = vld [vmem:[#allocation11 + $0xac] sm:$0xf0] }
 0x17e   :  { %v4346_v61 = vld [vmem:[#allocation11 + $0x590] sm:$0xf]  ;;  %v3707_v5 = vor.u32 %v4994_v60, %v3706_v59 }
 0x17f   :  { %2498 = vmatpush.bf16.msra.mxu3 %v4091_v57  ;;  %2476 = vmatpush.bf16.msra.mxu1 %v4471_v3  ;;  %v4570_v57 = vld [vmem:[#allocation11 + $0x750] sm:$0xf] }
 0x180   :  { %2440 = vmatmul.bf16.vlgmr.msrb.gmra.mxu2 %v5650_v53  ;;  %v4571_v1 = vor.u32 %v5210_v58, %v4570_v57  ;;  %v4538_v3 = vld [vmem:[#allocation11 + $0x710] sm:$0xf] }
 0x181   :  { %2484 = vmatpush.bf16.msra.mxu2 %v3867_v0  ;;  %2462 = vmatpush.bf16.msra.mxu0 %v4247_v9  ;;  %v3898_v0 = vld [vmem:[#allocation11 + $0x210] sm:$0xf]  ;;  %v4539_v14 = vor.u32 %v5202_v4, %v4538_v3 }
 0x182   :  { %v3674_v9 = vld [vmem:[#allocation11 + $0x50] sm:$0xf]  ;;  %v3899_v13 = vor.u32 %v5042_v2, %v3898_v0  ;;  %v4636_v2 = vld [vmem:[#allocation11 + $0x7f0] sm:$0xf0] }
 0x183   :  { %2499 = vmatpush.bf16.msra.mxu3 %v4059_v6  ;;  %2477 = vmatpush.bf16.msra.mxu1 %v4439_v15  ;;  %v4347_v6 = vor.u32 %v5154_v62, %v4346_v61  ;;  %v4127_v15 = vor.u32 %v5094_v7, %v4124_v8  ;;  %v4506_v16 = vld [vmem:[#allocation11 + $0x6d0] sm:$0xf]  ;;  %v5062_v62 = vld [vmem:[#allocation11 + $0x2d4] sm:$0xf] }
 0x184   :  { %v5194_v17 = vld [vmem:[#allocation11 + $0x6ec] sm:$0xf0] }
 0x185   :  { %2485 = vmatpush.bf16.msra.mxu2 %v3835_v12  ;;  %2463 = vmatpush.bf16.msra.mxu0 %v4215_v23  ;;  %v5146_v12 = vld [vmem:[#allocation11 + $0x56c] sm:$0xf0]  ;;  %v4507_v29 = vor.u32 %v5194_v17, %v4506_v16 }
 0x186   :  { %v4315_v20 = vor.u32 %v5146_v12, %v4314_v11  ;;  %v3642_v23 = vld [vmem:[#allocation11 + $0x10] sm:$0xf]  ;;  %v3964_v11 = vld [vmem:[#allocation11 + $0x2b0] sm:$0xf0] }
 0x187   :  { %2500 = vmatpush.bf16.msra.mxu3 %v4027_v18  ;;  %2478 = vmatpush.bf16.msra.mxu1 %v4407_v31  ;;  %v3675_v18 = vor.u32 %v4986_v10, %v3674_v9  ;;  %v4978_v24 = vld [vmem:[#allocation11 + $0x2c] sm:$0xf0]  ;;  %v4095_v31 = vor.u32 %v5086_v21, %v4092_v22  ;;  %v5054_v10 = vld [vmem:[#allocation11 + $0x294] sm:$0xf] }
 0x188   :  { %v4282_v25 = vld [vmem:[#allocation11 + $0x510] sm:$0xf]  ;;  %v3643_v32 = vor.u32 %v4978_v24, %v3642_v23  ;;  %v5158_v21 = vld [vmem:[#allocation11 + $0x5d4] sm:$0xf]  ;;  %v3967_v23 = vor.u32 %v5054_v10, %v3964_v11  ;;  %v4066_v10 = vld [vmem:[#allocation11 + $0x358] sm:$0xf] }
 0x189   :  { %2486 = vmatpush.bf16.msra.mxu2 %v3803_v27  ;;  %2464 = vmatpush.bf16.msra.mxu0 %v4183_v38  ;;  %v5138_v26 = vld [vmem:[#allocation11 + $0x52c] sm:$0xf0]  ;;  %v5030_v27 = vld [vmem:[#allocation11 + $0x1d4] sm:$0xf] }
 0x18a   :  { %2479 = vmatmul.bf16.vlgmr.msra.gmra.mxu1 %v5655_v19  ;;  %v4283_v33 = vor.u32 %v5138_v26, %v4282_v25  ;;  %v3871_v38 = vor.u32 %v5030_v27, %v3868_v28  ;;  %v4250_v40 = vld [vmem:[#allocation11 + $0x4d0] sm:$0xf]  ;;  %v4380_v22 = vld [vmem:[#allocation11 + $0x5f0] sm:$0xf0] }
 0x18b   :  { %2501 = vmatpush.bf16.msra.mxu3 %v3995_v34  ;;  %2523 = vmatpush.bf16.msrb.mxu1 %v4635_v36  ;;  %v4474_v34 = vld [vmem:[#allocation11 + $0x690] sm:$0xf]  ;;  %v5046_v27 = vld [vmem:[#allocation11 + $0x254] sm:$0xf] }
 0x18c   :  { %v5186_v36 = vld [vmem:[#allocation11 + $0x6ac] sm:$0xf0]  ;;  %v3932_v28 = vld [vmem:[#allocation11 + $0x270] sm:$0xf0] }
 0x18d   :  { %2487 = vmatpush.bf16.msra.mxu2 %v3771_v42  ;;  %2465 = vmatpush.bf16.msra.mxu0 %v4151_v51  ;;  %v5130_v41 = vld [vmem:[#allocation11 + $0x4ec] sm:$0xf0]  ;;  %v5022_v42 = vld [vmem:[#allocation11 + $0x194] sm:$0xf]  ;;  %v4475_v35 = vor.u32 %v5186_v36, %v4474_v34 }
 0x18e   :  { %v4251_v46 = vor.u32 %v5130_v41, %v4250_v40  ;;  %v4442_v47 = vld [vmem:[#allocation11 + $0x650] sm:$0xf]  ;;  %v4028_v51 = vld [vmem:[#allocation11 + $0x330] sm:$0xf0] }
 0x18f   :  { %2502 = vmatpush.bf16.msra.mxu3 %v3963_v49  ;;  %2524 = vmatpush.bf16.msrb.mxu1 %v4603_v50  ;;  %v5178_v48 = vld [vmem:[#allocation11 + $0x66c] sm:$0xf0]  ;;  %v5070_v49 = vld [vmem:[#allocation11 + $0x314] sm:$0xf]  ;;  %v3839_v50 = vor.u32 %v5022_v42, %v3836_v43 }
 0x190   :  { %2466 = vmatmul.bf16.vlgmr.msra.gmra.mxu0 %v5659_v44  ;;  %v4218_v52 = vld [vmem:[#allocation11 + $0x490] sm:$0xf]  ;;  %v4443_v57 = vor.u32 %v5178_v48, %v4442_v47  ;;  %v4031_v59 = vor.u32 %v5070_v49, %v4028_v51  ;;  %v3708_v34 = vld [vmem:[#allocation11 + $0xb0] sm:$0xf0]  ;;  %v5099_v47 = vld [vmem:[#allocation11 + $0x3f4] sm:$0xf0] }
 0x191   :  { %2488 = vmatpush.bf16.msra.mxu2 %v3739_v55  ;;  %2510 = vmatpush.bf16.msrb.mxu0 %v4379_v56  ;;  %v5122_v54 = vld [vmem:[#allocation11 + $0x4ac] sm:$0xf0]  ;;  %v5014_v55 = vld [vmem:[#allocation11 + $0x154] sm:$0xf] }
 0x192   :  { %v3804_v56 = vld [vmem:[#allocation11 + $0x170] sm:$0xf0]  ;;  %v4410_v58 = vld [vmem:[#allocation11 + $0x610] sm:$0xf]  ;;  %v4219_v60 = vor.u32 %v5122_v54, %v4218_v52 }
 0x193   :  { %2503 = vmatpush.bf16.msra.mxu3 %v3931_v63  ;;  %2525 = vmatpush.bf16.msrb.mxu1 %v4571_v1  ;;  %v5170_v61 = vld [vmem:[#allocation11 + $0x62c] sm:$0xf0]  ;;  %v3996_v63 = vld [vmem:[#allocation11 + $0x2f0] sm:$0xf0]  ;;  %v3807_v0 = vor.u32 %v5014_v55, %v3804_v56 }
 0x194   :  { %v5222_v1 = vld [vmem:[#allocation11 + $0x7d4] sm:$0xf]  ;;  %v4186_v3 = vld [vmem:[#allocation11 + $0x450] sm:$0xf]  ;;  %v4411_v7 = vor.u32 %v5170_v61, %v4410_v58  ;;  %v3999_v8 = vor.u32 %v5062_v62, %v3996_v63  ;;  %v5091_v61 = vld [vmem:[#allocation11 + $0x3b4] sm:$0xf0] }
 0x195   :  { %2489 = vmatpush.bf16.msra.mxu2 %v3707_v5  ;;  %2511 = vmatpush.bf16.msrb.mxu0 %v4347_v6  ;;  %v5114_v4 = vld [vmem:[#allocation11 + $0x46c] sm:$0xf0]  ;;  %v5006_v5 = vld [vmem:[#allocation11 + $0x114] sm:$0xf]  ;;  %v4639_v9 = vor.u32 %v5222_v1, %v4636_v2  ;;  %v3874_v2 = vld [vmem:[#allocation11 + $0x1d8] sm:$0xf] }
 0x196   :  { %v3772_v6 = vld [vmem:[#allocation11 + $0x130] sm:$0xf0]  ;;  %v4187_v12 = vor.u32 %v5114_v4, %v4186_v3  ;;  %v4154_v16 = vld [vmem:[#allocation11 + $0x410] sm:$0xf]  ;;  %v5035_v3 = vld [vmem:[#allocation11 + $0x1f4] sm:$0xf0] }
 0x197   :  { %2504 = vmatpush.bf16.msra.mxu3 %v3899_v13  ;;  %2526 = vmatpush.bf16.msrb.mxu1 %v4539_v14  ;;  %v3775_v13 = vor.u32 %v5006_v5, %v3772_v6  ;;  %v5214_v14 = vld [vmem:[#allocation11 + $0x794] sm:$0xf]  ;;  %v5106_v17 = vld [vmem:[#allocation11 + $0x42c] sm:$0xf0]  ;;  %v3875_v11 = vor.u32 %v5035_v3, %v3874_v2 }
 0x198   :  { %v4155_v25 = vor.u32 %v5106_v17, %v4154_v16  ;;  %v5150_v36 = vld [vmem:[#allocation11 + $0x594] sm:$0xf]  ;;  %v5027_v16 = vld [vmem:[#allocation11 + $0x1b4] sm:$0xf0] }
 0x199   :  { %2490 = vmatpush.bf16.msra.mxu2 %v3675_v18  ;;  %2512 = vmatpush.bf16.msrb.mxu0 %v4315_v20  ;;  %v4998_v18 = vld [vmem:[#allocation11 + $0xd4] sm:$0xf] }
 0x19a   :  { %2505 = vmatmul.bf16.vlgmr.msra.gmra.mxu3 %v5647_v30  ;;  %v3740_v20 = vld [vmem:[#allocation11 + $0xf0] sm:$0xf0] }
 0x19b   :  { %2549 = vmatpush.bf16.msrb.mxu3 %v4127_v15  ;;  %2527 = vmatpush.bf16.msrb.mxu1 %v4507_v29  ;;  %v4604_v15 = vld [vmem:[#allocation11 + $0x7b0] sm:$0xf0]  ;;  %v3743_v26 = vor.u32 %v4998_v18, %v3740_v20 }
 0x19c   :  { %v4607_v24 = vor.u32 %v5214_v14, %v4604_v15  ;;  %v5206_v29 = vld [vmem:[#allocation11 + $0x754] sm:$0xf]  ;;  %v3842_v15 = vld [vmem:[#allocation11 + $0x198] sm:$0xf] }
 0x19d   :  { %2491 = vmatpush.bf16.msra.mxu2 %v3643_v32  ;;  %2513 = vmatpush.bf16.msrb.mxu0 %v4283_v33  ;;  %v4572_v32 = vld [vmem:[#allocation11 + $0x770] sm:$0xf0] }
 0x19e   :  { %v4990_v33 = vld [vmem:[#allocation11 + $0x94] sm:$0xf]  ;;  %v4575_v40 = vor.u32 %v5206_v29, %v4572_v32  ;;  %v5019_v29 = vld [vmem:[#allocation11 + $0x174] sm:$0xf0] }
 0x19f   :  { %2550 = vmatpush.bf16.msrb.mxu3 %v4095_v31  ;;  %2528 = vmatpush.bf16.msrb.mxu1 %v4475_v35  ;;  %v4383_v31 = vor.u32 %v5158_v21, %v4380_v22  ;;  %v3711_v41 = vor.u32 %v4990_v33, %v3708_v34  ;;  %v3900_v42 = vld [vmem:[#allocation11 + $0x230] sm:$0xf0] }
 0x1a0   :  { %2492 = vmatmul.bf16.vlgmr.msra.gmra.mxu2 %v5650_v53  ;;  %v5198_v43 = vld [vmem:[#allocation11 + $0x714] sm:$0xf]  ;;  %v3903_v52 = vor.u32 %v5038_v39, %v3900_v42 }
 0x1a1   :  { %2536 = vmatpush.bf16.msrb.mxu2 %v3871_v38  ;;  %2514 = vmatpush.bf16.msrb.mxu0 %v4251_v46  ;;  %v3935_v38 = vor.u32 %v5046_v27, %v3932_v28  ;;  %v4540_v35 = vld [vmem:[#allocation11 + $0x730] sm:$0xf0]  ;;  %v4130_v46 = vld [vmem:[#allocation11 + $0x3d8] sm:$0xf] }
 0x1a2   :  { %v4982_v48 = vld [vmem:[#allocation11 + $0x54] sm:$0xf]  ;;  %v4543_v54 = vor.u32 %v5198_v43, %v4540_v35  ;;  %v4131_v55 = vor.u32 %v5099_v47, %v4130_v46  ;;  %v3810_v28 = vld [vmem:[#allocation11 + $0x158] sm:$0xf] }
 0x1a3   :  { %2551 = vmatpush.bf16.msrb.mxu3 %v4063_v45  ;;  %2529 = vmatpush.bf16.msrb.mxu1 %v4443_v57  ;;  %v4351_v45 = vor.u32 %v5150_v36, %v4348_v37  ;;  %v3676_v49 = vld [vmem:[#allocation11 + $0x70] sm:$0xf0]  ;;  %v4002_v37 = vld [vmem:[#allocation11 + $0x2d8] sm:$0xf]  ;;  %v3811_v39 = vor.u32 %v5019_v29, %v3810_v28  ;;  %v5095_v28 = vld [vmem:[#allocation11 + $0x3dc] sm:$0xf] }
 0x1a4   :  { %v4316_v51 = vld [vmem:[#allocation11 + $0x570] sm:$0xf0]  ;;  %v3679_v58 = vor.u32 %v4982_v48, %v3676_v49  ;;  %v3778_v35 = vld [vmem:[#allocation11 + $0x118] sm:$0xf]  ;;  %v4132_v29 = vld [vmem:[#allocation11 + $0x3f8] sm:$0xf0] }
 0x1a5   :  { %2537 = vmatpush.bf16.msrb.mxu2 %v3839_v50  ;;  %2515 = vmatpush.bf16.msrb.mxu0 %v4219_v60  ;;  %v5142_v50 = vld [vmem:[#allocation11 + $0x554] sm:$0xf]  ;;  %v4098_v60 = vld [vmem:[#allocation11 + $0x398] sm:$0xf] }
 0x1a6   :  { %v5190_v56 = vld [vmem:[#allocation11 + $0x6d4] sm:$0xf]  ;;  %v4099_v5 = vor.u32 %v5091_v61, %v4098_v60  ;;  %v3746_v60 = vld [vmem:[#allocation11 + $0xd8] sm:$0xf] }
 0x1a7   :  { %2552 = vmatpush.bf16.msrb.mxu3 %v4031_v59  ;;  %2530 = vmatpush.bf16.msrb.mxu1 %v4411_v7  ;;  %v4508_v57 = vld [vmem:[#allocation11 + $0x6f0] sm:$0xf0]  ;;  %v4319_v59 = vor.u32 %v5142_v50, %v4316_v51  ;;  %v3970_v50 = vld [vmem:[#allocation11 + $0x298] sm:$0xf] }
 0x1a8   :  { %v4974_v62 = vld [vmem:[#allocation11 + $0x14] sm:$0xf]  ;;  %v4511_v4 = vor.u32 %v5190_v56, %v4508_v57  ;;  %v5059_v51 = vld [vmem:[#allocation11 + $0x2b4] sm:$0xf0] }
 0x1a9   :  { %2538 = vmatpush.bf16.msrb.mxu2 %v3807_v0  ;;  %2516 = vmatpush.bf16.msrb.mxu0 %v4187_v12  ;;  %v3644_v63 = vld [vmem:[#allocation11 + $0x30] sm:$0xf0]  ;;  %v5083_v12 = vld [vmem:[#allocation11 + $0x374] sm:$0xf0] }
 0x1aa   :  { %2531 = vmatmul.bf16.vlgmr.msrb.gmra.mxu1 %v5655_v19  ;;  %v5134_v0 = vld [vmem:[#allocation11 + $0x514] sm:$0xf]  ;;  %v3647_v6 = vor.u32 %v4974_v62, %v3644_v63  ;;  %v4067_v18 = vor.u32 %v5083_v12, %v4066_v10  ;;  %v4610_v56 = vld [vmem:[#allocation11 + $0x798] sm:$0xf] }
 0x1ab   :  { %2553 = vmatpush.bf16.msrb.mxu3 %v3999_v8  ;;  %2575 = vmatpush.bf16.msra.mxu1 %v4639_v9  ;;  %v4284_v1 = vld [vmem:[#allocation11 + $0x530] sm:$0xf0]  ;;  %v5219_v57 = vld [vmem:[#allocation11 + $0x7b4] sm:$0xf0] }
 0x1ac   :  { %v4287_v7 = vor.u32 %v5134_v0, %v4284_v1  ;;  %v5182_v8 = vld [vmem:[#allocation11 + $0x694] sm:$0xf]  ;;  %v5003_v61 = vld [vmem:[#allocation11 + $0xf4] sm:$0xf0]  ;;  %v3971_v1 = vor.u32 %v5059_v51, %v3970_v50  ;;  %v4611_v2 = vor.u32 %v5219_v57, %v4610_v56 }
 0x1ad   :  { %2539 = vmatpush.bf16.msrb.mxu2 %v3775_v13  ;;  %2517 = vmatpush.bf16.msrb.mxu0 %v4155_v25  ;;  %v4476_v9 = vld [vmem:[#allocation11 + $0x6b0] sm:$0xf0]  ;;  %v5075_v25 = vld [vmem:[#allocation11 + $0x334] sm:$0xf0] }
 0x1ae   :  { %v5126_v13 = vld [vmem:[#allocation11 + $0x4d4] sm:$0xf]  ;;  %v4479_v17 = vor.u32 %v5182_v8, %v4476_v9  ;;  %v4386_v63 = vld [vmem:[#allocation11 + $0x5d8] sm:$0xf] }
 0x1af   :  { %2554 = vmatpush.bf16.msrb.mxu3 %v3967_v23  ;;  %2576 = vmatpush.bf16.msra.mxu1 %v4607_v24  ;;  %v4252_v14 = vld [vmem:[#allocation11 + $0x4f0] sm:$0xf0]  ;;  %v4034_v23 = vld [vmem:[#allocation11 + $0x318] sm:$0xf]  ;;  %v3843_v24 = vor.u32 %v5027_v16, %v3842_v15 }
 0x1b0   :  { %2518 = vmatmul.bf16.vlgmr.msrb.gmra.mxu0 %v5659_v44  ;;  %v4255_v20 = vor.u32 %v5126_v13, %v4252_v14  ;;  %v5174_v21 = vld [vmem:[#allocation11 + $0x654] sm:$0xf]  ;;  %v4035_v33 = vor.u32 %v5075_v25, %v4034_v23  ;;  %v5163_v0 = vld [vmem:[#allocation11 + $0x5f4] sm:$0xf0] }
 0x1b1   :  { %2540 = vmatpush.bf16.msrb.mxu2 %v3743_v26  ;;  %2562 = vmatpush.bf16.msra.mxu0 %v4383_v31  ;;  %v4444_v22 = vld [vmem:[#allocation11 + $0x670] sm:$0xf0]  ;;  %v4387_v9 = vor.u32 %v5163_v0, %v4386_v63  ;;  %v5211_v10 = vld [vmem:[#allocation11 + $0x774] sm:$0xf0]  ;;  %v5079_v0 = vld [vmem:[#allocation11 + $0x35c] sm:$0xf] }
 0x1b2   :  { %v5118_v26 = vld [vmem:[#allocation11 + $0x494] sm:$0xf]  ;;  %v4447_v31 = vor.u32 %v5174_v21, %v4444_v22  ;;  %v4995_v12 = vld [vmem:[#allocation11 + $0xb4] sm:$0xf0] }
 0x1b3   :  { %2555 = vmatpush.bf16.msrb.mxu3 %v3935_v38  ;;  %2577 = vmatpush.bf16.msra.mxu1 %v4575_v40  ;;  %v4220_v27 = vld [vmem:[#allocation11 + $0x4b0] sm:$0xf0]  ;;  %v5067_v38 = vld [vmem:[#allocation11 + $0x2f4] sm:$0xf0] }
 0x1b4   :  { %v5166_v32 = vld [vmem:[#allocation11 + $0x614] sm:$0xf]  ;;  %v4223_v34 = vor.u32 %v5118_v26, %v4220_v27  ;;  %v4642_v40 = vld [vmem:[#allocation11 + $0x7d8] sm:$0xf]  ;;  %v4003_v48 = vor.u32 %v5067_v38, %v4002_v37  ;;  %v4135_v38 = vor.u32 %v5095_v28, %v4132_v29 }
 0x1b5   :  { %2541 = vmatpush.bf16.msrb.mxu2 %v3711_v41  ;;  %2563 = vmatpush.bf16.msra.mxu0 %v4351_v45  ;;  %v4412_v36 = vld [vmem:[#allocation11 + $0x630] sm:$0xf0]  ;;  %v5227_v41 = vld [vmem:[#allocation11 + $0x7f4] sm:$0xf0] }
 0x1b6   :  { %v5110_v42 = vld [vmem:[#allocation11 + $0x454] sm:$0xf]  ;;  %v5011_v45 = vld [vmem:[#allocation11 + $0x134] sm:$0xf0]  ;;  %v4415_v46 = vor.u32 %v5166_v32, %v4412_v36  ;;  %v4643_v49 = vor.u32 %v5227_v41, %v4642_v40 }
 0x1b7   :  { %2556 = vmatpush.bf16.msrb.mxu3 %v3903_v52  ;;  %2578 = vmatpush.bf16.msra.mxu1 %v4543_v54  ;;  %v4188_v43 = vld [vmem:[#allocation11 + $0x470] sm:$0xf0]  ;;  %v5679_v52 = vld [vmem:[#allocation13] sm:$0xff]  ;;  %v4354_v14 = vld [vmem:[#allocation11 + $0x598] sm:$0xf] }
 0x1b8   :  { %v4191_v54 = vor.u32 %v5110_v42, %v4188_v43  ;;  %v980_v62 = vperm.slane %v5679_v52, 0  ;;  %v5155_v15 = vld [vmem:[#allocation11 + $0x5b4] sm:$0xf0] }
 0x1b9   :  { %2542 = vmatpush.bf16.msrb.mxu2 %v3679_v58  ;;  %2564 = vmatpush.bf16.msra.mxu0 %v4319_v59  ;;  %v5102_v58 = vld [vmem:[#allocation11 + $0x414] sm:$0xf]  ;;  %v5043_v22 = vld [vmem:[#allocation11 + $0x234] sm:$0xf0]  ;;  %v4355_v27 = vor.u32 %v5155_v15, %v4354_v14  ;;  %v5071_v14 = vld [vmem:[#allocation11 + $0x31c] sm:$0xf] }
 0x1ba   :  { %2557 = vmatmul.bf16.vlgmr.msrb.gmra.mxu3 %v5647_v30  ;;  %v4156_v59 = vld [vmem:[#allocation11 + $0x430] sm:$0xf0]  ;;  %v4546_v23 = vld [vmem:[#allocation11 + $0x718] sm:$0xf] }
 0x1bb   :  { %2601 = vmatpush.bf16.msra.mxu3 %v4131_v55  ;;  %2579 = vmatpush.bf16.msra.mxu1 %v4511_v4  ;;  %v3779_v55 = vor.u32 %v5011_v45, %v3778_v35  ;;  %v4159_v3 = vor.u32 %v5102_v58, %v4156_v59  ;;  %v3747_v4 = vor.u32 %v5003_v61, %v3746_v60  ;;  %v4987_v32 = vld [vmem:[#allocation11 + $0x74] sm:$0xf0]  ;;  %v5087_v35 = vld [vmem:[#allocation11 + $0x39c] sm:$0xf] }
 0x1bc   :  { %v5195_v40 = vld [vmem:[#allocation11 + $0x6f4] sm:$0xf0]  ;;  %v4100_v45 = vld [vmem:[#allocation11 + $0x3b8] sm:$0xf0] }
 0x1bd   :  { %2543 = vmatpush.bf16.msrb.mxu2 %v3647_v6  ;;  %2565 = vmatpush.bf16.msra.mxu0 %v4287_v7  ;;  %v2298_v47 = vpop.f32.mrf.mxu3  ;;  %v5051_v6 = vld [vmem:[#allocation11 + $0x274] sm:$0xf0]  ;;  %v4103_v58 = vor.u32 %v5087_v35, %v4100_v45  ;;  %v5055_v45 = vld [vmem:[#allocation11 + $0x29c] sm:$0xf] }
 0x1be   :  { %v4578_v7 = vld [vmem:[#allocation11 + $0x758] sm:$0xf] }
 0x1bf   :  { %2602 = vmatpush.bf16.msra.mxu3 %v4099_v5  ;;  %2580 = vmatpush.bf16.msra.mxu1 %v4479_v17  ;;  %v3938_v5 = vld [vmem:[#allocation11 + $0x258] sm:$0xf] }
 0x1c0   :  { %2544 = vmatmul.bf16.vlgmr.msrb.gmra.mxu2 %v5650_v53  ;;  %v3939_v17 = vor.u32 %v5051_v6, %v3938_v5  ;;  %v5187_v63 = vld [vmem:[#allocation11 + $0x6b4] sm:$0xf0]  ;;  %v5023_v6 = vld [vmem:[#allocation11 + $0x19c] sm:$0xf] }
 0x1c1   :  { %2588 = vmatpush.bf16.msra.mxu2 %v3875_v11  ;;  %2566 = vmatpush.bf16.msra.mxu0 %v4255_v20  ;;  %v3714_v11 = vld [vmem:[#allocation11 + $0x98] sm:$0xf]  ;;  %v4579_v20 = vor.u32 %v5211_v10, %v4578_v7  ;;  %v3844_v7 = vld [vmem:[#allocation11 + $0x1b8] sm:$0xf0] }
 0x1c2   :  { %v3715_v21 = vor.u32 %v4995_v12, %v3714_v11  ;;  %v5131_v5 = vld [vmem:[#allocation11 + $0x4f4] sm:$0xf0]  ;;  %v3847_v15 = vor.u32 %v5023_v6, %v3844_v7  ;;  %v5207_v6 = vld [vmem:[#allocation11 + $0x75c] sm:$0xf] }
 0x1c3   :  { %2603 = vmatpush.bf16.msra.mxu3 %v4067_v18  ;;  %2581 = vmatpush.bf16.msra.mxu1 %v4447_v31  ;;  %v2285_v8 = vpop.f32.mrf.mxu2  ;;  %v3906_v18 = vld [vmem:[#allocation11 + $0x218] sm:$0xf] }
 0x1c4   :  { %v2286_v13 = vadd.f32 %v2285_v8, %v980_v62  ;;  %v3682_v31 = vld [vmem:[#allocation11 + $0x58] sm:$0xf]  ;;  %v3907_v36 = vor.u32 %v5043_v22, %v3906_v18  ;;  %v5015_v22 = vld [vmem:[#allocation11 + $0x15c] sm:$0xf] }
 0x1c5   :  { %2589 = vmatpush.bf16.msra.mxu2 %v3843_v24  ;;  %2567 = vmatpush.bf16.msra.mxu0 %v4223_v34  ;;  %v2300_v16 = vpop.f32.mrf.mxu3  ;;  %v5203_v24 = vld [vmem:[#allocation11 + $0x734] sm:$0xf0]  ;;  %v3683_v42 = vor.u32 %v4987_v32, %v3682_v31  ;;  %v5063_v31 = vld [vmem:[#allocation11 + $0x2dc] sm:$0xf] }
 0x1c6   :  { %v2299_v25 = vadd.f32 %v2298_v47, %v2286_v13  ;;  %v5147_v34 = vld [vmem:[#allocation11 + $0x574] sm:$0xf0]  ;;  %v4547_v37 = vor.u32 %v5203_v24, %v4546_v23  ;;  %v4036_v16 = vld [vmem:[#allocation11 + $0x338] sm:$0xf0] }
 0x1c7   :  { %2604 = vmatpush.bf16.msra.mxu3 %v4035_v33  ;;  %2582 = vmatpush.bf16.msra.mxu1 %v4415_v46  ;;  %v2324_v26 = vpop.f32.mrf.mxu1  ;;  %v4322_v33 = vld [vmem:[#allocation11 + $0x558] sm:$0xf]  ;;  %v3812_v23 = vld [vmem:[#allocation11 + $0x178] sm:$0xf0] }
 0x1c8   :  { %v4323_v43 = vor.u32 %v5147_v34, %v4322_v33  ;;  %v3650_v46 = vld [vmem:[#allocation11 + $0x18] sm:$0xf]  ;;  %v4004_v32 = vld [vmem:[#allocation11 + $0x2f8] sm:$0xf0]  ;;  %v3815_v33 = vor.u32 %v5015_v22, %v3812_v23 }
 0x1c9   :  { %2590 = vmatpush.bf16.msra.mxu2 %v3811_v39  ;;  %2568 = vmatpush.bf16.msra.mxu0 %v4191_v54  ;;  %v4514_v39 = vld [vmem:[#allocation11 + $0x6d8] sm:$0xf]  ;;  %v5031_v54 = vld [vmem:[#allocation11 + $0x1dc] sm:$0xf] }
 0x1ca   :  { %2583 = vmatmul.bf16.vlgmr.msra.gmra.mxu1 %v5655_v19  ;;  %v4979_v47 = vld [vmem:[#allocation11 + $0x34] sm:$0xf0]  ;;  %v4515_v57 = vor.u32 %v5195_v40, %v4514_v39  ;;  %v5223_v34 = vld [vmem:[#allocation11 + $0x7dc] sm:$0xf] }
 0x1cb   :  { %2605 = vmatpush.bf16.msra.mxu3 %v4003_v48  ;;  %2627 = vmatpush.bf16.msrb.mxu1 %v4643_v49  ;;  %v2287_v41 = vpop.f32.mrf.mxu2  ;;  %v4290_v48 = vld [vmem:[#allocation11 + $0x518] sm:$0xf]  ;;  %v3651_v60 = vor.u32 %v4979_v47, %v3650_v46  ;;  %v5007_v39 = vld [vmem:[#allocation11 + $0x11c] sm:$0xf] }
 0x1cc   :  { %v5139_v49 = vld [vmem:[#allocation11 + $0x534] sm:$0xf0]  ;;  %v3780_v40 = vld [vmem:[#allocation11 + $0x138] sm:$0xf0] }
 0x1cd   :  { %2591 = vmatpush.bf16.msra.mxu2 %v3779_v55  ;;  %2569 = vmatpush.bf16.msra.mxu0 %v4159_v3  ;;  %v2311_v50 = vpop.f32.mrf.mxu0  ;;  %v5684_v51 = vpop.f32.mrf.mxu3  ;;  %v3876_v55 = vld [vmem:[#allocation11 + $0x1f8] sm:$0xf0]  ;;  %v4291_v61 = vor.u32 %v5139_v49, %v4290_v48  ;;  %v4482_v62 = vld [vmem:[#allocation11 + $0x698] sm:$0xf]  ;;  %v3783_v48 = vor.u32 %v5007_v39, %v3780_v40 }
 0x1ce   :  { %v2312_v56 = vadd.f32 %v2311_v50, %v2299_v25  ;;  %v4068_v3 = vld [vmem:[#allocation11 + $0x378] sm:$0xf0]  ;;  %v4483_v8 = vor.u32 %v5187_v63, %v4482_v62  ;;  %v4450_v12 = vld [vmem:[#allocation11 + $0x658] sm:$0xf] }
 0x1cf   :  { %2606 = vmatpush.bf16.msra.mxu3 %v3971_v1  ;;  %2628 = vmatpush.bf16.msrb.mxu1 %v4611_v2  ;;  %v2326_v59 = vpop.f32.mrf.mxu1  ;;  %v3879_v2 = vor.u32 %v5031_v54, %v3876_v55  ;;  %v4071_v10 = vor.u32 %v5079_v0, %v4068_v3  ;;  %v5179_v13 = vld [vmem:[#allocation11 + $0x674] sm:$0xf0]  ;;  %v3972_v46 = vld [vmem:[#allocation11 + $0x2b8] sm:$0xf0] }
 0x1d0   :  { %2570 = vmatmul.bf16.vlgmr.msra.gmra.mxu0 %v5659_v44  ;;  %v5686_v1 = vadd.f32 %v2324_v26, %v2312_v56  ;;  %v5123_v18 = vld [vmem:[#allocation11 + $0x4b4] sm:$0xf0]  ;;  %v4451_v24 = vor.u32 %v5179_v13, %v4450_v12  ;;  %v5215_v49 = vld [vmem:[#allocation11 + $0x79c] sm:$0xf]  ;;  %v3975_v63 = vor.u32 %v5055_v45, %v3972_v46 }
 0x1d1   :  { %2592 = vmatpush.bf16.msra.mxu2 %v3747_v4  ;;  %2614 = vmatpush.bf16.msrb.mxu0 %v4387_v9  ;;  %v4258_v4 = vld [vmem:[#allocation11 + $0x4d8] sm:$0xf]  ;;  %v4612_v50 = vld [vmem:[#allocation11 + $0x7b8] sm:$0xf0] }
 0x1d2   :  { %v4259_v11 = vor.u32 %v5131_v5, %v4258_v4  ;;  %v4418_v25 = vld [vmem:[#allocation11 + $0x618] sm:$0xf]  ;;  %v3748_v59 = vld [vmem:[#allocation11 + $0xf8] sm:$0xf0]  ;;  %v4615_v0 = vor.u32 %v5215_v49, %v4612_v50 }
 0x1d3   :  { %2607 = vmatpush.bf16.msra.mxu3 %v3939_v17  ;;  %2629 = vmatpush.bf16.msrb.mxu1 %v4579_v20  ;;  %v5689_v9 = vpop.f32.mrf.mxu2  ;;  %v4226_v17 = vld [vmem:[#allocation11 + $0x498] sm:$0xf]  ;;  %v5047_v4 = vld [vmem:[#allocation11 + $0x25c] sm:$0xf] }
 0x1d4   :  { %v4227_v28 = vor.u32 %v5123_v18, %v4226_v17  ;;  %v5171_v29 = vld [vmem:[#allocation11 + $0x634] sm:$0xf0]  ;;  %v3940_v5 = vld [vmem:[#allocation11 + $0x278] sm:$0xf0] }
 0x1d5   :  { %2593 = vmatpush.bf16.msra.mxu2 %v3715_v21  ;;  %2615 = vmatpush.bf16.msrb.mxu0 %v4355_v27  ;;  %v2313_v20 = vpop.f32.mrf.mxu0  ;;  %v2352_v21 = vpop.f32.mrf.mxu3  ;;  %v4039_v27 = vor.u32 %v5071_v14, %v4036_v16  ;;  %v4419_v41 = vor.u32 %v5171_v29, %v4418_v25  ;;  %v4162_v54 = vld [vmem:[#allocation11 + $0x418] sm:$0xf]  ;;  %v5151_v12 = vld [vmem:[#allocation11 + $0x59c] sm:$0xf]  ;;  %v3943_v14 = vor.u32 %v5047_v4, %v3940_v5 }
 0x1d6   :  { %v4356_v13 = vld [vmem:[#allocation11 + $0x5b8] sm:$0xf0] }
 0x1d7   :  { %2608 = vmatpush.bf16.msra.mxu3 %v3907_v36  ;;  %2630 = vmatpush.bf16.msrb.mxu1 %v4547_v37  ;;  %v5692_v26 = vpop.f32.mrf.mxu1  ;;  %v4644_v36 = vld [vmem:[#allocation11 + $0x7f8] sm:$0xf0]  ;;  %v4194_v37 = vld [vmem:[#allocation11 + $0x458] sm:$0xf]  ;;  %v4359_v23 = vor.u32 %v5151_v12, %v4356_v13 }
 0x1d8   :  { %v4647_v35 = vor.u32 %v5223_v34, %v4644_v36  ;;  %v5039_v18 = vld [vmem:[#allocation11 + $0x21c] sm:$0xf]  ;;  %v5243_v36 = vld [vmem:[#allocation14 + $0x78] sm:$0xff] }
 0x1d9   :  { %2594 = vmatpush.bf16.msra.mxu2 %v3683_v42  ;;  %2616 = vmatpush.bf16.msrb.mxu0 %v4323_v43  ;;  %v4007_v43 = vor.u32 %v5063_v31, %v4004_v32  ;;  %v3908_v20 = vld [vmem:[#allocation11 + $0x238] sm:$0xf0] }
 0x1da   :  { %2609 = vmatmul.bf16.vlgmr.msra.gmra.mxu3 %v5647_v30  ;;  %v4548_v25 = vld [vmem:[#allocation11 + $0x738] sm:$0xf0] }
 0x1db   :  { %2653 = vmatpush.bf16.msrb.mxu3 %v4135_v38  ;;  %2631 = vmatpush.bf16.msrb.mxu1 %v4515_v57  ;;  %v5115_v38 = vld [vmem:[#allocation11 + $0x474] sm:$0xf0]  ;;  %v2339_v42 = vpop.f32.mrf.mxu2  ;;  %v5143_v29 = vld [vmem:[#allocation11 + $0x55c] sm:$0xf] }
 0x1dc   :  { %v4195_v47 = vor.u32 %v5115_v38, %v4194_v37  ;;  %v5107_v57 = vld [vmem:[#allocation11 + $0x434] sm:$0xf0]  ;;  %v4324_v31 = vld [vmem:[#allocation11 + $0x578] sm:$0xf0] }
 0x1dd   :  { %2595 = vmatpush.bf16.msra.mxu2 %v3651_v60  ;;  %2617 = vmatpush.bf16.msrb.mxu0 %v4291_v61  ;;  %v5694_v55 = vpop.f32.mrf.mxu0  ;;  %v5696_v56 = vpop.f32.mrf.mxu3  ;;  %v5159_v60 = vld [vmem:[#allocation11 + $0x5dc] sm:$0xf]  ;;  %v4327_v38 = vor.u32 %v5143_v29, %v4324_v31 }
 0x1de   :  { %v4388_v61 = vld [vmem:[#allocation11 + $0x5f8] sm:$0xf0] }
 0x1df   :  { %2654 = vmatpush.bf16.msrb.mxu3 %v4103_v58  ;;  %2632 = vmatpush.bf16.msrb.mxu1 %v4483_v8  ;;  %v4999_v58 = vld [vmem:[#allocation11 + $0xdc] sm:$0xf]  ;;  %v2378_v62 = vpop.f32.mrf.mxu1  ;;  %v4391_v7 = vor.u32 %v5159_v60, %v4388_v61 }
 0x1e0   :  { %2596 = vmatmul.bf16.vlgmr.msra.gmra.mxu2 %v5650_v53  ;;  %v3751_v3 = vor.u32 %v4999_v58, %v3748_v59  ;;  %v4580_v8 = vld [vmem:[#allocation11 + $0x778] sm:$0xf0]  ;;  %v5235_v58 = vld [vmem:[#allocation14 + $0x38] sm:$0xff] }
 0x1e1   :  { %2640 = vmatpush.bf16.msrb.mxu2 %v3879_v2  ;;  %2618 = vmatpush.bf16.msrb.mxu0 %v4259_v11  ;;  %v4163_v2 = vor.u32 %v5107_v57, %v4162_v54  ;;  %v3716_v11 = vld [vmem:[#allocation11 + $0xb8] sm:$0xf0]  ;;  %v4583_v16 = vor.u32 %v5207_v6, %v4580_v8  ;;  %v5240_v8 = vld [vmem:[#allocation14 + $0x60] sm:$0xff] }
 0x1e2   :  { %v5191_v39 = vld [vmem:[#allocation11 + $0x6dc] sm:$0xf] }
 0x1e3   :  { %2655 = vmatpush.bf16.msrb.mxu3 %v4071_v10  ;;  %2633 = vmatpush.bf16.msrb.mxu1 %v4451_v24  ;;  %v4991_v10 = vld [vmem:[#allocation11 + $0x9c] sm:$0xf] }
 0x1e4   :  { %v3719_v17 = vor.u32 %v4991_v10, %v3716_v11  ;;  %v5199_v24 = vld [vmem:[#allocation11 + $0x71c] sm:$0xf] }
 0x1e5   :  { %2641 = vmatpush.bf16.msrb.mxu2 %v3847_v15  ;;  %2619 = vmatpush.bf16.msrb.mxu0 %v4227_v28  ;;  %v5699_v15 = vpop.f32.mrf.mxu2  ;;  %v2365_v21 = vpop.f32.mrf.mxu0  ;;  %v3684_v28 = vld [vmem:[#allocation11 + $0x78] sm:$0xf0]  ;;  %v4551_v34 = vor.u32 %v5199_v24, %v4548_v25  ;;  %v5232_v24 = vld [vmem:[#allocation14 + $0x20] sm:$0xff] }
 0x1e6   :  { %v2404_v22 = vpop.f32.mrf.mxu3  ;;  %v4516_v40 = vld [vmem:[#allocation11 + $0x6f8] sm:$0xf0]  ;;  %v5239_v21 = vld [vmem:[#allocation14 + $0x58] sm:$0xff] }
 0x1e7   :  { %2656 = vmatpush.bf16.msrb.mxu3 %v4039_v27  ;;  %2634 = vmatpush.bf16.msrb.mxu1 %v4419_v41  ;;  %v4983_v27 = vld [vmem:[#allocation11 + $0x5c] sm:$0xf]  ;;  %v5702_v32 = vpop.f32.mrf.mxu1  ;;  %v4519_v46 = vor.u32 %v5191_v39, %v4516_v40  ;;  %v5257_v39 = vld [vmem:[#allocation14 + $0xe8] sm:$0xff] }
 0x1e8   :  { %v3687_v37 = vor.u32 %v4983_v27, %v3684_v28  ;;  %v4975_v41 = vld [vmem:[#allocation11 + $0x1c] sm:$0xf] }
 0x1e9   :  { %2642 = vmatpush.bf16.msrb.mxu2 %v3815_v33  ;;  %2620 = vmatpush.bf16.msrb.mxu0 %v4195_v47  ;;  %v3911_v33 = vor.u32 %v5039_v18, %v3908_v20  ;;  %v3652_v42 = vld [vmem:[#allocation11 + $0x38] sm:$0xf0] }
 0x1ea   :  { %2635 = vmatmul.bf16.vlgmr.msrb.gmra.mxu1 %v5655_v19  ;;  %v5242_v47 = vld [vmem:[#allocation14 + $0x70] sm:$0xff] }
 0x1eb   :  { %2657 = vmatpush.bf16.msrb.mxu3 %v4007_v43  ;;  %2679 = vmatpush.bf16.msra.mxu1 %v4647_v35  ;;  %v5135_v43 = vld [vmem:[#allocation11 + $0x51c] sm:$0xf] }
 0x1ec   :  { %v4292_v35 = vld [vmem:[#allocation11 + $0x538] sm:$0xf0] }
 0x1ed   :  { %2643 = vmatpush.bf16.msrb.mxu2 %v3783_v48  ;;  %2621 = vmatpush.bf16.msrb.mxu0 %v4163_v2  ;;  %v2391_v45 = vpop.f32.mrf.mxu2  ;;  %v3655_v48 = vor.u32 %v4975_v41, %v3652_v42  ;;  %v4295_v49 = vor.u32 %v5135_v43, %v4292_v35  ;;  %v5183_v50 = vld [vmem:[#allocation11 + $0x69c] sm:$0xf]  ;;  %v5705_v57 = vpop.f32.mrf.mxu0  ;;  %v983_v43 = vperm.slane %v5679_v52, 3 }
 0x1ee   :  { %v4484_v54 = vld [vmem:[#allocation11 + $0x6b8] sm:$0xf0]  ;;  %v5256_v45 = vld [vmem:[#allocation14 + $0xe0] sm:$0xff] }
 0x1ef   :  { %2658 = vmatpush.bf16.msrb.mxu3 %v3975_v63  ;;  %2680 = vmatpush.bf16.msra.mxu1 %v4615_v0  ;;  %v5127_v59 = vld [vmem:[#allocation11 + $0x4dc] sm:$0xf]  ;;  %v2430_v61 = vpop.f32.mrf.mxu1  ;;  %v4487_v62 = vor.u32 %v5183_v50, %v4484_v54  ;;  %v5241_v63 = vld [vmem:[#allocation14 + $0x68] sm:$0xff]  ;;  %v982_v50 = vperm.slane %v5679_v52, 2  ;;  %v5255_v54 = vld [vmem:[#allocation14 + $0xd8] sm:$0xff] }
 0x1f0   :  { %2622 = vmatmul.bf16.vlgmr.msrb.gmra.mxu0 %v5659_v44  ;;  %v4260_v60 = vld [vmem:[#allocation11 + $0x4f8] sm:$0xf0]  ;;  %v5267_v61 = vld [vmem:[#allocation14 + $0x138] sm:$0xff] }
 0x1f1   :  { %2644 = vmatpush.bf16.msrb.mxu2 %v3751_v3  ;;  %2666 = vmatpush.bf16.msra.mxu0 %v4391_v7  ;;  %v4263_v0 = vor.u32 %v5127_v59, %v4260_v60  ;;  %v5175_v2 = vld [vmem:[#allocation11 + $0x65c] sm:$0xf]  ;;  %v2692_v59 = vmax.f32 %v5686_v1, 0.0  ;;  %v5248_v60 = vld [vmem:[#allocation14 + $0xa0] sm:$0xff] }
 0x1f2   :  { %v4452_v3 = vld [vmem:[#allocation11 + $0x678] sm:$0xf0] }
 0x1f3   :  { %2659 = vmatpush.bf16.msrb.mxu3 %v3943_v14  ;;  %2681 = vmatpush.bf16.msra.mxu1 %v4583_v16  ;;  %v5234_v4 = vld [vmem:[#allocation14 + $0x30] sm:$0xff]  ;;  %v4455_v7 = vor.u32 %v5175_v2, %v4452_v3  ;;  %v5233_v14 = vld [vmem:[#allocation14 + $0x28] sm:$0xff]  ;;  %v2700_v3 = vpack.c.bf16 %v2692_v59, %v2692_v59 }
 0x1f4   :  { %v5119_v5 = vld [vmem:[#allocation11 + $0x49c] sm:$0xf] }
 0x1f5   :  { %2645 = vmatpush.bf16.msrb.mxu2 %v3719_v17  ;;  %2667 = vmatpush.bf16.msra.mxu0 %v4359_v23  ;;  %v4228_v6 = vld [vmem:[#allocation11 + $0x4b8] sm:$0xf0]  ;;  %v2417_v13 = vpop.f32.mrf.mxu0 }
 0x1f6   :  { %v4231_v10 = vor.u32 %v5119_v5, %v4228_v6  ;;  %v5167_v11 = vld [vmem:[#allocation11 + $0x61c] sm:$0xf]  ;;  %v5247_v5 = vld [vmem:[#allocation14 + $0x98] sm:$0xff] }
 0x1f7   :  { %2660 = vmatpush.bf16.msrb.mxu3 %v3911_v33  ;;  %2682 = vmatpush.bf16.msra.mxu1 %v4551_v34  ;;  %v4420_v12 = vld [vmem:[#allocation11 + $0x638] sm:$0xf0]  ;;  %v5231_v34 = vld [vmem:[#allocation14 + $0x18] sm:$0xff] }
 0x1f8   :  { %v5111_v16 = vld [vmem:[#allocation11 + $0x45c] sm:$0xf]  ;;  %v4423_v20 = vor.u32 %v5167_v11, %v4420_v12  ;;  %v5265_v12 = vld [vmem:[#allocation14 + $0x128] sm:$0xff] }
 0x1f9   :  { %2646 = vmatpush.bf16.msrb.mxu2 %v3687_v37  ;;  %2668 = vmatpush.bf16.msra.mxu0 %v4327_v38  ;;  %v4196_v17 = vld [vmem:[#allocation11 + $0x478] sm:$0xf0]  ;;  %v5237_v38 = vld [vmem:[#allocation14 + $0x48] sm:$0xff] }
 0x1fa   :  { %2661 = vmatmul.bf16.vlgmr.msrb.gmra.mxu3 %v5647_v30  ;;  %v981_v30 = vperm.slane %v5679_v52, 1  ;;  %v4199_v23 = vor.u32 %v5111_v16, %v4196_v17  ;;  %v5103_v25 = vld [vmem:[#allocation11 + $0x41c] sm:$0xf]  ;;  %v5252_v16 = vld [vmem:[#allocation14 + $0xc0] sm:$0xff] }
 0x1fb   :  { %3237 = vmatpush.bf16.msra.mxu3 %v5243_v36  ;;  %2683 = vmatpush.bf16.msra.mxu1 %v4519_v46  ;;  %v4164_v27 = vld [vmem:[#allocation11 + $0x438] sm:$0xf0]  ;;  %v5251_v36 = vld [vmem:[#allocation14 + $0xb8] sm:$0xff]  ;;  %v5229_v46 = vld [vmem:[#allocation14 + $0x8] sm:$0xff] }
 0x1fc   :  { %v2338_v18 = vadd.f32 %v5689_v9, %v981_v30  ;;  %v5238_v29 = vld [vmem:[#allocation14 + $0x50] sm:$0xff]  ;;  %v4167_v33 = vor.u32 %v5103_v25, %v4164_v27  ;;  %v5275_v30 = vld [vmem:[#allocation14 + $0x178] sm:$0xff]  ;;  %v984_v27 = vperm.slane %v5679_v52, 4 }
 0x1fd   :  { %2647 = vmatpush.bf16.msrb.mxu2 %v3655_v48  ;;  %2669 = vmatpush.bf16.msra.mxu0 %v4295_v49  ;;  %v2454_v22 = vpop.f32.mrf.mxu3  ;;  %v5258_v31 = vld [vmem:[#allocation14 + $0xf0] sm:$0xff] }
 0x1fe   :  { %v2351_v28 = vadd.f32 %v5684_v51, %v2338_v18  ;;  %v5230_v41 = vld [vmem:[#allocation14 + $0x10] sm:$0xff] }
 0x1ff   :  { %3238 = vmatpush.bf16.msra.mxu3 %v5242_v47  ;;  %2684 = vmatpush.bf16.msra.mxu1 %v4487_v62  ;;  %v5254_v2 = vld [vmem:[#allocation14 + $0xd0] sm:$0xff] }
 0x200   :  { %2648 = vmatmul.bf16.vlgmr.msrb.gmra.mxu2 %v5650_v53  ;;  %v5259_v53 = vld [vmem:[#allocation14 + $0xf8] sm:$0xff]  ;;  %v2364_v9 = vadd.f32 %v5694_v55, %v2351_v28  ;;  %v5250_v55 = vld [vmem:[#allocation14 + $0xb0] sm:$0xff] }
 0x201   :  { %3224 = vmatpush.bf16.msra.mxu2 %v5235_v58  ;;  %2670 = vmatpush.bf16.msra.mxu0 %v4263_v0  ;;  %v2390_v0 = vadd.f32 %v5699_v15, %v982_v50  ;;  %v5266_v6 = vld [vmem:[#allocation14 + $0x130] sm:$0xff] }
 0x202   :  { %v2377_v51 = vadd.f32 %v5692_v26, %v2364_v9  ;;  %v5249_v26 = vld [vmem:[#allocation14 + $0xa8] sm:$0xff]  ;;  %v5274_v1 = vld [vmem:[#allocation14 + $0x170] sm:$0xff] }
 0x203   :  { %3239 = vmatpush.bf16.msra.mxu3 %v5241_v63  ;;  %2685 = vmatpush.bf16.msra.mxu1 %v4455_v7  ;;  %v2441_v37 = vpop.f32.mrf.mxu2  ;;  %v2403_v7 = vadd.f32 %v5696_v56, %v2390_v0  ;;  %v5246_v15 = vld [vmem:[#allocation14 + $0x90] sm:$0xff]  ;;  %v5264_v56 = vld [vmem:[#allocation14 + $0x120] sm:$0xff] }
 0x204   :  { %v2693_v35 = vmax.f32 %v2377_v51, 0.0  ;;  %v2442_v48 = vadd.f32 %v2441_v37, %v983_v43  ;;  %v5260_v51 = vld [vmem:[#allocation14 + $0x100] sm:$0xff] }
 0x205   :  { %3225 = vmatpush.bf16.msra.mxu2 %v5234_v4  ;;  %2671 = vmatpush.bf16.msra.mxu0 %v4231_v10  ;;  %v2456_v40 = vpop.f32.mrf.mxu3  ;;  %v2416_v13 = vadd.f32 %v5705_v57, %v2403_v7 }
 0x206   :  { %v2701_v49 = vpack.c.bf16 %v2693_v35, %v2693_v35  ;;  %v2455_v63 = vadd.f32 %v2454_v22, %v2442_v48  ;;  %v5244_v22 = vld [vmem:[#allocation14 + $0x80] sm:$0xff]  ;;  %v5283_v35 = vld [vmem:[#allocation14 + $0x1b8] sm:$0xff] }
 0x207   :  { %3240 = vmatpush.bf16.msra.mxu3 %v5240_v8  ;;  %2686 = vmatpush.bf16.msra.mxu1 %v4423_v20  ;;  %v2480_v42 = vpop.f32.mrf.mxu1  ;;  %v5253_v8 = vld [vmem:[#allocation14 + $0xc8] sm:$0xff] }
 0x208   :  { %v5245_v20 = vld [vmem:[#allocation14 + $0x88] sm:$0xff] }
 0x209   :  { %3226 = vmatpush.bf16.msra.mxu2 %v5233_v14  ;;  %2672 = vmatpush.bf16.msra.mxu0 %v4199_v23  ;;  %v5273_v14 = vld [vmem:[#allocation14 + $0x168] sm:$0xff]  ;;  %v5263_v23 = vld [vmem:[#allocation14 + $0x118] sm:$0xff] }
 0x20a   :  { %2687 = vmatmul.bf16.vlgmr.msra.gmra.mxu1 %v5655_v19  ;;  %v5236_v19 = vld [vmem:[#allocation14 + $0x40] sm:$0xff] }
 0x20b   :  { %3241 = vmatpush.bf16.msra.mxu3 %v5239_v21  ;;  %3263 = vmatpush.bf16.msrb.mxu1 %v5259_v53  ;;  %v2443_v47 = vpop.f32.mrf.mxu2  ;;  %v2429_v21 = vadd.f32 %v5702_v32, %v2416_v13  ;;  %v5271_v32 = vld [vmem:[#allocation14 + $0x158] sm:$0xff] }
 0x20c   :  { %v5281_v47 = vld [vmem:[#allocation14 + $0x1a8] sm:$0xff] }
 0x20d   :  { %3227 = vmatpush.bf16.msra.mxu2 %v5232_v24  ;;  %2673 = vmatpush.bf16.msra.mxu0 %v4167_v33  ;;  %v2467_v58 = vpop.f32.mrf.mxu0  ;;  %v2694_v57 = vmax.f32 %v2429_v21, 0.0  ;;  %v5272_v24 = vld [vmem:[#allocation14 + $0x160] sm:$0xff] }
 0x20e   :  { %v2468_v4 = vadd.f32 %v2467_v58, %v2455_v63 }
 0x20f   :  { %3242 = vmatpush.bf16.msra.mxu3 %v5238_v29  ;;  %3264 = vmatpush.bf16.msrb.mxu1 %v5258_v31  ;;  %v2482_v62 = vpop.f32.mrf.mxu1  ;;  %v5262_v29 = vld [vmem:[#allocation14 + $0x110] sm:$0xff]  ;;  %v2702_v31 = vpack.c.bf16 %v2694_v57, %v2694_v57 }
 0x210   :  { %2674 = vmatmul.bf16.vlgmr.msra.gmra.mxu0 %v5659_v44  ;;  %v5228_v44 = vld [vmem:[#allocation14] sm:$0xff]  ;;  %v2481_v11 = vadd.f32 %v2480_v42, %v2468_v4 }
 0x211   :  { %3228 = vmatpush.bf16.msra.mxu2 %v5231_v34  ;;  %3250 = vmatpush.bf16.msrb.mxu0 %v5251_v36  ;;  %v5261_v34 = vld [vmem:[#allocation14 + $0x108] sm:$0xff]  ;;  %v5270_v36 = vld [vmem:[#allocation14 + $0x150] sm:$0xff] }
 0x212   :  { %v2695_v17 = vmax.f32 %v2481_v11, 0.0  ;;  %v5289_v11 = vld [vmem:[#allocation14 + $0x1e8] sm:$0xff] }
 0x213   :  { %3243 = vmatpush.bf16.msra.mxu3 %v5237_v38  ;;  %3265 = vmatpush.bf16.msrb.mxu1 %v5257_v39 }
 0x214   :  { %v2703_v53 = vpack.c.bf16 %v2695_v17, %v2695_v17  ;;  %v5287_v17 = vld [vmem:[#allocation14 + $0x1d8] sm:$0xff] }
 0x215   :  { %3229 = vmatpush.bf16.msra.mxu2 %v5230_v41  ;;  %3251 = vmatpush.bf16.msrb.mxu0 %v5250_v55  ;;  %v2469_v10 = vpop.f32.mrf.mxu0  ;;  %v5269_v41 = vld [vmem:[#allocation14 + $0x148] sm:$0xff] }
 0x217   :  { %3244 = vmatpush.bf16.msra.mxu3 %v5236_v19  ;;  %3266 = vmatpush.bf16.msrb.mxu1 %v5256_v45  ;;  %v5268_v19 = vld [vmem:[#allocation14 + $0x140] sm:$0xff] }
 0x219   :  { %3230 = vmatpush.bf16.msra.mxu2 %v5229_v46  ;;  %3252 = vmatpush.bf16.msrb.mxu0 %v5249_v26  ;;  %v5282_v46 = vld [vmem:[#allocation14 + $0x1b0] sm:$0xff] }
 0x21a   :  { %3245 = vmatmul.bf16.vlgmr.msra.gmra.mxu3 %v2701_v49  ;;  %v5280_v49 = vld [vmem:[#allocation14 + $0x1a0] sm:$0xff] }
 0x21b   :  { %3267 = vmatpush.bf16.msrb.mxu1 %v5255_v54  ;;  %3289 = vmatpush.bf16.msrb.mxu3 %v5275_v30  ;;  %v985_v54 = vperm.slane %v5679_v52, 5 }
 0x21d   :  { %3231 = vmatpush.bf16.msra.mxu2 %v5228_v44  ;;  %3253 = vmatpush.bf16.msrb.mxu0 %v5248_v60  ;;  %v2506_v18 = vpop.f32.mrf.mxu3  ;;  %v5279_v44 = vld [vmem:[#allocation14 + $0x198] sm:$0xff] }
 0x21f   :  { %3268 = vmatpush.bf16.msrb.mxu1 %v5254_v2  ;;  %3290 = vmatpush.bf16.msrb.mxu3 %v5274_v1  ;;  %v5277_v2 = vld [vmem:[#allocation14 + $0x188] sm:$0xff]  ;;  %v5291_v1 = vld [vmem:[#allocation14 + $0x1f8] sm:$0xff] }
 0x220   :  { %3232 = vmatmul.bf16.vlgmr.msra.gmra.mxu2 %v2700_v3 }
 0x221   :  { %3276 = vmatpush.bf16.msrb.mxu2 %v5267_v61  ;;  %3254 = vmatpush.bf16.msrb.mxu0 %v5247_v5  ;;  %v5278_v61 = vld [vmem:[#allocation14 + $0x190] sm:$0xff] }
 0x223   :  { %3269 = vmatpush.bf16.msrb.mxu1 %v5253_v8  ;;  %3291 = vmatpush.bf16.msrb.mxu3 %v5273_v14  ;;  %v2493_v25 = vpop.f32.mrf.mxu2  ;;  %v5290_v8 = vld [vmem:[#allocation14 + $0x1f0] sm:$0xff]  ;;  %v986_v14 = vperm.slane %v5679_v52, 6 }
 0x224   :  { %v2494_v33 = vadd.f32 %v2493_v25, %v984_v27  ;;  %v5284_v27 = vld [vmem:[#allocation14 + $0x1c0] sm:$0xff] }
 0x225   :  { %3277 = vmatpush.bf16.msrb.mxu2 %v5266_v6  ;;  %3255 = vmatpush.bf16.msrb.mxu0 %v5246_v15  ;;  %v2508_v28 = vpop.f32.mrf.mxu3  ;;  %v5276_v6 = vld [vmem:[#allocation14 + $0x180] sm:$0xff] }
 0x226   :  { %v2507_v38 = vadd.f32 %v2506_v18, %v2494_v33  ;;  %v987_v33 = vperm.slane %v5679_v52, 7 }
 0x227   :  { %3270 = vmatpush.bf16.msrb.mxu1 %v5252_v16  ;;  %3292 = vmatpush.bf16.msrb.mxu3 %v5272_v24  ;;  %v2532_v9 = vpop.f32.mrf.mxu1 }
 0x229   :  { %3278 = vmatpush.bf16.msrb.mxu2 %v5265_v12  ;;  %3256 = vmatpush.bf16.msrb.mxu0 %v5245_v20  ;;  %v5288_v12 = vld [vmem:[#allocation14 + $0x1e0] sm:$0xff] }
 0x22a   :  { %3271 = vmatmul.bf16.vlgmr.msrb.gmra.mxu1 %v2703_v53 }
 0x22b   :  { %3293 = vmatpush.bf16.msrb.mxu3 %v5271_v32  ;;  %v2495_v37 = vpop.f32.mrf.mxu2  ;;  %3315 = vmatpush.bf16.msra.mxu1 %v5291_v1 }
 0x22d   :  { %3279 = vmatpush.bf16.msrb.mxu2 %v5264_v56  ;;  %3257 = vmatpush.bf16.msrb.mxu0 %v5244_v22  ;;  %v2519_v39 = vpop.f32.mrf.mxu0  ;;  %v5286_v56 = vld [vmem:[#allocation14 + $0x1d0] sm:$0xff]  ;;  %v5285_v22 = vld [vmem:[#allocation14 + $0x1c8] sm:$0xff] }
 0x22e   :  { %v2520_v40 = vadd.f32 %v2519_v39, %v2507_v38 }
 0x22f   :  { %3294 = vmatpush.bf16.msrb.mxu3 %v5270_v36  ;;  %v2534_v55 = vpop.f32.mrf.mxu1  ;;  %3316 = vmatpush.bf16.msra.mxu1 %v5290_v8 }
 0x230   :  { %3258 = vmatmul.bf16.vlgmr.msrb.gmra.mxu0 %v2702_v31  ;;  %v2533_v42 = vadd.f32 %v2532_v9, %v2520_v40 }
 0x231   :  { %3280 = vmatpush.bf16.msrb.mxu2 %v5263_v23  ;;  %3302 = vmatpush.bf16.msra.mxu0 %v5283_v35 }
 0x232   :  { %v2696_v43 = vmax.f32 %v2533_v42, 0.0 }
 0x233   :  { %3295 = vmatpush.bf16.msrb.mxu3 %v5269_v41  ;;  %3317 = vmatpush.bf16.msra.mxu1 %v5289_v11 }
 0x234   :  { %v2704_v45 = vpack.c.bf16 %v2696_v43, %v2696_v43 }
 0x235   :  { %3281 = vmatpush.bf16.msrb.mxu2 %v5262_v29  ;;  %v2521_v26 = vpop.f32.mrf.mxu0  ;;  %3303 = vmatpush.bf16.msra.mxu0 %v5282_v46 }
 0x237   :  { %3296 = vmatpush.bf16.msrb.mxu3 %v5268_v19  ;;  %3318 = vmatpush.bf16.msra.mxu1 %v5288_v12 }
 0x239   :  { %3282 = vmatpush.bf16.msrb.mxu2 %v5261_v34  ;;  %3304 = vmatpush.bf16.msra.mxu0 %v5281_v47 }
 0x23b   :  { %3319 = vmatpush.bf16.msra.mxu1 %v5287_v17 }
 0x23d   :  { %3283 = vmatpush.bf16.msrb.mxu2 %v5260_v51  ;;  %v2558_v48 = vpop.f32.mrf.mxu3  ;;  %3305 = vmatpush.bf16.msra.mxu0 %v5280_v49 }
 0x23f   :  { %3320 = vmatpush.bf16.msra.mxu1 %v5286_v56 }
 0x240   :  { %3284 = vmatmul.bf16.vlgmr.msrb.gmra.mxu2 %v2704_v45  ;;  %v5309_v45 = vld [vmem:[%s5740_s8] ss:$0 sm:$0xff]  ;;  %s5554_s8 = smov [#allocation16]  }
 0x241   :  { %3306 = vmatpush.bf16.msra.mxu0 %v5279_v44  ;;  %s3334_s28 = sshll.u32 %s5554_s8, 4  ;;  %s3335_s28 = int_to_ptr.vmem [resolvable:$true] %s3334_s28 }
 0x243   :  { %v2545_v50 = vpop.f32.mrf.mxu2  ;;  %3321 = vmatpush.bf16.msra.mxu1 %v5285_v22 }
 0x244   :  { %v2546_v60 = vadd.f32 %v2545_v50, %v985_v54 }
 0x245   :  { %v2560_v58 = vpop.f32.mrf.mxu3  ;;  %3307 = vmatpush.bf16.msra.mxu0 %v5278_v61 }
 0x246   :  { %v2559_v63 = vadd.f32 %v2558_v48, %v2546_v60 }
 0x247   :  { %v2584_v59 = vpop.f32.mrf.mxu1  ;;  %3322 = vmatpush.bf16.msra.mxu1 %v5284_v27 }
 0x249   :  { %3308 = vmatpush.bf16.msra.mxu0 %v5277_v2 }
 0x24b   :  { %v2547_v62 = vpop.f32.mrf.mxu2 }
 0x24d   :  { %v2571_v0 = vpop.f32.mrf.mxu0  ;;  %3309 = vmatpush.bf16.msra.mxu0 %v5276_v6 }
 0x24e   :  { %v2572_v3 = vadd.f32 %v2571_v0, %v2559_v63 }
 0x24f   :  { %v2586_v4 = vpop.f32.mrf.mxu1 }
 0x250   :  { %v2585_v5 = vadd.f32 %v2584_v59, %v2572_v3 }
 0x252   :  { %v2697_v30 = vmax.f32 %v2585_v5, 0.0 }
 0x254   :  { %v2705_v7 = vpack.c.bf16 %v2697_v30, %v2697_v30 }
 0x255   :  { %v2573_v10 = vpop.f32.mrf.mxu0 }
 0x256   :  { %3297 = vmatmul.bf16.vlgmr.msrb.gmra.mxu3 %v2705_v7 }
 0x25d   :  { %v2610_v15 = vpop.f32.mrf.mxu3 }
 0x263   :  { %v2597_v13 = vpop.f32.mrf.mxu2 }
 0x264   :  { %v2598_v20 = vadd.f32 %v2597_v13, %v986_v14 }
 0x265   :  { %v2612_v16 = vpop.f32.mrf.mxu3 }
 0x266   :  { %v2611_v53 = vadd.f32 %v2610_v15, %v2598_v20 }
 0x267   :  { %v2636_v18 = vpop.f32.mrf.mxu1 }
 0x26b   :  { %v2599_v21 = vpop.f32.mrf.mxu2 }
 0x26d   :  { %v2623_v23 = vpop.f32.mrf.mxu0 }
 0x26e   :  { %v2624_v57 = vadd.f32 %v2623_v23, %v2611_v53 }
 0x26f   :  { %v2638_v24 = vpop.f32.mrf.mxu1 }
 0x270   :  { %v2637_v25 = vadd.f32 %v2636_v18, %v2624_v57 }
 0x272   :  { %v2698_v28 = vmax.f32 %v2637_v25, 0.0 }
 0x274   :  { %v2706_v29 = vpack.c.bf16 %v2698_v28, %v2698_v28 }
 0x275   :  { %v2625_v31 = vpop.f32.mrf.mxu0 }
 0x276   :  { %3310 = vmatmul.bf16.vlgmr.msra.gmra.mxu0 %v2706_v29 }
 0x27d   :  { %v2662_v32 = vpop.f32.mrf.mxu3 }
 0x283   :  { %v2649_v9 = vpop.f32.mrf.mxu2 }
 0x284   :  { %v2650_v37 = vadd.f32 %v2649_v9, %v987_v33 }
 0x285   :  { %v2664_v34 = vpop.f32.mrf.mxu3 }
 0x286   :  { %v2663_v51 = vadd.f32 %v2662_v32, %v2650_v37 }
 0x287   :  { %v2688_v36 = vpop.f32.mrf.mxu1 }
 0x28b   :  { %v2651_v38 = vpop.f32.mrf.mxu2 }
 0x28d   :  { %v2675_v39 = vpop.f32.mrf.mxu0 }
 0x28e   :  { %v2676_v40 = vadd.f32 %v2675_v39, %v2663_v51 }
 0x28f   :  { %v2690_v41 = vpop.f32.mrf.mxu1 }
 0x290   :  { %v2689_v55 = vadd.f32 %v2688_v36, %v2676_v40 }
 0x292   :  { %v2699_v42 = vmax.f32 %v2689_v55, 0.0 }
 0x294   :  { %v2707_v43 = vpack.c.bf16 %v2699_v42, %v2699_v42 }
 0x295   :  { %v2677_v19 = vpop.f32.mrf.mxu0 }
 0x296   :  { %3323 = vmatmul.bf16.vlgmr.msra.gmra.mxu1 %v2707_v43 }
 0x29d   :  { %v3246_v35 = vpop.f32.mrf.mxu3 }
 0x2a3   :  { %v3233_v46 = vpop.f32.mrf.mxu2 }
 0x2a4   :  { %v3234_v52 = vadd.f32 %v5309_v45, %v3233_v46 }
 0x2a5   :  { %v3248_v26 = vpop.f32.mrf.mxu3 }
 0x2a6   :  { %v3247_v47 = vadd.f32 %v3246_v35, %v3234_v52 }
 0x2a7   :  { %v3272_v48 = vpop.f32.mrf.mxu1 }
 0x2ab   :  { %v3235_v49 = vpop.f32.mrf.mxu2 }
 0x2ad   :  { %v3259_v50 = vpop.f32.mrf.mxu0 }
 0x2ae   :  { %v3260_v54 = vadd.f32 %v3259_v50, %v3247_v47 }
 0x2af   :  { %v3274_v58 = vpop.f32.mrf.mxu1 }
 0x2b0   :  { %v3273_v44 = vadd.f32 %v3272_v48, %v3260_v54 }
 0x2b5   :  { %v3261_v59 = vpop.f32.mrf.mxu0 }
 0x2c3   :  { %v3285_v60 = vpop.f32.mrf.mxu2 }
 0x2c4   :  { %v3286_v61 = vadd.f32 %v3285_v60, %v3273_v44 }
 0x2cb   :  { %v3287_v62 = vpop.f32.mrf.mxu2 }
 0x2d9   :  { %v3298_v63 = vpop.f32.mrf.mxu3 }
 0x2da   :  { %v3299_v4 = vadd.f32 %v3298_v63, %v3286_v61 }
 0x2e1   :  { %v3300_v0 = vpop.f32.mrf.mxu3 }
 0x2f3   :  { %v3311_v2 = vpop.f32.mrf.mxu0 }
 0x2f4   :  { %v3312_v5 = vadd.f32 %v3311_v2, %v3299_v4 }
 0x2fb   :  { %v3313_v3 = vpop.f32.mrf.mxu0 }
 0x313   :  { %v3324_v6 = vpop.f32.mrf.mxu1 }
 0x314   :  { %v3325_v30 = vadd.f32 %v3324_v6, %v3312_v5 }
 0x316   :  { %3328 = vst [vmem:[#allocation16] sm:$0xff] %v3325_v30 }
 0x317   :  { %3339 = dma.vmem_to_hbm [thread:$0]  %s3335_s28, 128, %s3337_s10, [#allocation4]  }
 0x31b   :  { %v3326_v1 = vpop.f32.mrf.mxu1 }
 0x31c   :  { %5536 = dma.done.wait [#allocation4], 128  }
 0x31d   :  { %5537 = vsyncadd [#allocation4], 4294967168 }
 0x31e   :  { %3344 = vsyncpa [#allocation3], 1 }
 0x31f   :  { %3345 = vsyncpa [#allocation6], 1 }
 0x320   :  { %3346 = vsyncpa [#allocation9], 1 }
 0x321   :  { %3347 = vsyncpa [#allocation12], 1 }
 0x322   :  { %3348 = vsyncpa [#allocation15], 1 }
 0x323   :  { %3349 = vsyncpa [#allocation4], 1 }

// kernel: tpu_custom_call.1
= control target key start
LH: loop header
LB: loop body
LE: loop exit
PB: predicated region body
PF: predicated region fallthrough
CT: control target
= control target key end

     0   :  { %14 = vsyncpa [#allocation3], 0  ;;  %s5732_s0 = inlined_call_operand.hbm [shape: bf16[8,32], index: 0, kind: input, shape index: {}]   ;;  %s5733_s1 = inlined_call_operand.hbm [shape: bf16[32,256], index: 1, kind: input, shape index: {}]   ;;  %s5734_s2 = inlined_call_operand.hbm [shape: f32[1,256], index: 2, kind: input, shape index: {}]   ;;  %s5735_s3 = inlined_call_operand.hbm [shape: bf16[256,512], index: 3, kind: input, shape index: {}]   ;;  %s5736_s4 = inlined_call_operand.hbm [shape: f32[1,512], index: 4, kind: input, shape index: {}]   ;;  %s5737_s5 = inlined_call_operand.hbm [shape: bf16[512,1024], index: 5, kind: input, shape index: {}]   ;;  %s5738_s6 = inlined_call_operand.hbm [shape: f32[1,1024], index: 6, kind: input, shape index: {}]   ;;  %s5739_s7 = inlined_call_operand.hbm [shape: bf16[1024,128], index: 7, kind: input, shape index: {}]   ;;  %s5740_s8 = inlined_call_operand.vmem [shape: f32[1,128], index: 8, kind: input, shape index: {}]   ;;  %s5741_s9 = inlined_call_operand.hbm [shape: f32[8,128], index: 9, kind: output, shape index: {}]  }
   0x1   :  { %15 = vsyncpa [#allocation6], 0 }
   0x2   :  { %16 = vsyncpa [#allocation9], 0 }
   0x3   :  { %17 = vsyncpa [#allocation12], 0 }
   0x4   :  { %18 = vsyncpa [#allocation15], 0  ;;  %s35_s11 = sshll.u32 %s5733_s1, 4  ;;  %s36_s11 = int_to_ptr.hbm [resolvable:$true] %s35_s11 }
   0x5   :  { %19 = vsyncpa [#allocation4], 0  ;;  %s5538_s12 = smov [#allocation5]   ;;  %s59_s16 = sshll.u32 %s5735_s3, 4  ;;  %s60_s16 = int_to_ptr.hbm [resolvable:$true] %s59_s16 }
   0x6   :  { %s37_s13 = sshll.u32 %s5538_s12, 4  ;;  %s5539_s17 = smov 128   ;;  %s38_s13 = int_to_ptr.vmem [resolvable:$true] %s37_s13 }
   0x7   :  { %s5540_s18 = smov 8   ;;  %s5541_s19 = smov [#allocation8]  }
   0x8   :  { %43 = dma.hbm_to_vmem [thread:$0]  %s36_s11, 512, %s38_s13, [#allocation6], %s5539_s17, %s5539_s17, %s5540_s18  }
   0x9   :  { %s61_s20 = sshll.u32 %s5541_s19, 4  ;;  %s5542_s21 = smov 256   ;;  %s62_s20 = int_to_ptr.vmem [resolvable:$true] %s61_s20 }
   0xa   :  { %s5543_s22 = smov 16   ;;  %s83_s24 = sshll.u32 %s5737_s5, 4  ;;  %s84_s24 = int_to_ptr.hbm [resolvable:$true] %s83_s24 }
   0xb   :  { %67 = dma.hbm_to_vmem [thread:$0]  %s60_s16, 8192, %s62_s20, [#allocation9], %s5542_s21, %s5542_s21, %s5543_s22  }
   0xc   :  { %s5544_s25 = smov [#allocation11]   ;;  %s25_s28 = sshll.u32 %s5732_s0, 4  ;;  %s26_s28 = int_to_ptr.hbm [resolvable:$true] %s25_s28 }
   0xd   :  { %s85_s26 = sshll.u32 %s5544_s25, 4  ;;  %s5545_s29 = smov 512   ;;  %s86_s26 = int_to_ptr.vmem [resolvable:$true] %s85_s26 }
   0xe   :  { %s5546_s30 = smov 32   ;;  %s5547_s10 = smov [#allocation2]  }
   0xf   :  { %91 = dma.hbm_to_vmem [thread:$0]  %s84_s24, 32768, %s86_s26, [#allocation12], %s5545_s29, %s5545_s29, %s5546_s30  }
  0x10   :  { %s27_s11 = sshll.u32 %s5547_s10, 4  ;;  %s49_s14 = sshll.u32 %s5734_s2, 4  ;;  %s28_s11 = int_to_ptr.vmem [resolvable:$true] %s27_s11  ;;  %s50_s14 = int_to_ptr.hbm [resolvable:$true] %s49_s14 }
  0x11   :  { %30 = dma.hbm_to_vmem [thread:$0]  %s26_s28, 64, %s28_s11, [#allocation3]  }
  0x12   :  { %s73_s16 = sshll.u32 %s5736_s4, 4  ;;  %s5548_s17 = smov [#allocation7]   ;;  %s74_s16 = int_to_ptr.hbm [resolvable:$true] %s73_s16 }
  0x13   :  { %s51_s18 = sshll.u32 %s5548_s17, 4  ;;  %s5549_s0 = smov [#allocation10]   ;;  %s52_s18 = int_to_ptr.vmem [resolvable:$true] %s51_s18 }
  0x14   :  { %54 = dma.hbm_to_vmem [thread:$0]  %s50_s14, 32, %s52_s18, [#allocation6]  }
  0x15   :  { %s75_s19 = sshll.u32 %s5549_s0, 4  ;;  %s97_s22 = sshll.u32 %s5738_s6, 4  ;;  %s76_s19 = int_to_ptr.vmem [resolvable:$true] %s75_s19  ;;  %s98_s22 = int_to_ptr.hbm [resolvable:$true] %s97_s22 }
  0x16   :  { %78 = dma.hbm_to_vmem [thread:$0]  %s74_s16, 64, %s76_s19, [#allocation9]  }
  0x17   :  { %s107_s23 = sshll.u32 %s5739_s7, 4  ;;  %s5550_s24 = smov [#allocation13]   ;;  %s108_s23 = int_to_ptr.hbm [resolvable:$true] %s107_s23 }
  0x18   :  { %s99_s4 = sshll.u32 %s5550_s24, 4  ;;  %s5551_s25 = smov [#allocation14]   ;;  %s100_s4 = int_to_ptr.vmem [resolvable:$true] %s99_s4 }
  0x19   :  { %102 = dma.hbm_to_vmem [thread:$0]  %s98_s22, 128, %s100_s4, [#allocation12]  }
  0x1a   :  { %s109_s26 = sshll.u32 %s5551_s25, 4  ;;  %s5552_s27 = smov 64   ;;  %s110_s26 = int_to_ptr.vmem [resolvable:$true] %s109_s26 }
  0x1b   :  { %s5553_s3 = smov 4  }
  0x1c   :  { %115 = dma.hbm_to_vmem [thread:$0]  %s108_s23, 8192, %s110_s26, [#allocation15], %s5552_s27, %s5552_s27, %s5553_s3  }
  0x1d   :  { %5526 = dma.done.wait [#allocation3], 64  }
  0x1e   :  { %5527 = vsyncadd [#allocation3], 4294967232 }
  0x1f   :  { %5528 = dma.done.wait [#allocation6], 544  }
  0x20   :  { %5529 = vsyncadd [#allocation6], 4294966752 }
  0x21   :  { %5530 = dma.done.wait [#allocation9], 8256  }
  0x22   :  { %5531 = vsyncadd [#allocation9], 4294959040 }
  0x23   :  { %5532 = dma.done.wait [#allocation12], 32896  }
  0x24   :  { %5533 = vsyncadd [#allocation12], 4294934400 }
  0x25   :  { %5534 = dma.done.wait [#allocation15], 8192  }
  0x26   :  { %5535 = vsyncadd [#allocation15], 4294959104  ;;  %v3360_v0 = vld [vmem:[#allocation5 + $0x10] sm:$0xf]  ;;  %v4907_v1 = vld [vmem:[#allocation5 + $0x14] sm:$0xf0] }
  0x27   :  { %v4906_v2 = vld [vmem:[#allocation5 + $0x14] sm:$0xf]  ;;  %v3361_v3 = vor.u32 %v4907_v1, %v3360_v0  ;;  %v3362_v4 = vld [vmem:[#allocation5 + $0x18] sm:$0xf0]  ;;  %v3352_v5 = vld [vmem:[#allocation5] sm:$0xf] }
  0x28   :  { %v4905_v6 = vld [vmem:[#allocation5 + $0x4] sm:$0xf0]  ;;  %v3365_v7 = vor.u32 %v4906_v2, %v3362_v4  ;;  %v4904_v8 = vld [vmem:[#allocation5 + $0x4] sm:$0xf]  ;;  %v3354_v9 = vld [vmem:[#allocation5 + $0x8] sm:$0xf0] }
  0x29   :  { %vm182_vm0 = vcmask 261120   ;;  %192 = vmatpush.bf16.msra.mxu0 %v3361_v3  ;;  %v3353_v10 = vor.u32 %v4905_v6, %v3352_v5  ;;  %v3482_v11 = vld [vmem:[#allocation8 + $0xe0] sm:$0xf]  ;;  %v4938_v12 = vld [vmem:[#allocation8 + $0xec] sm:$0xf0]  ;;  %v3357_v14 = vor.u32 %v4904_v8, %v3354_v9  ;;  %s3336_s10 = sshll.u32 %s5741_s9, 4  ;;  %s3337_s10 = int_to_ptr.hbm [resolvable:$true] %s3336_s10 }
  0x2a   :  { %v3610_v13 = vld [vmem:[#allocation8 + $0x1e0] sm:$0xf]  ;;  %205 = vmatpush.bf16.msra.mxu1 %v3365_v7  ;;  %v3483_v15 = vor.u32 %v4938_v12, %v3482_v11  ;;  %v4970_v16 = vld [vmem:[#allocation8 + $0x1ec] sm:$0xf0]  ;;  %v4936_v17 = vld [vmem:[#allocation8 + $0xe4] sm:$0xf] }
  0x2b   :  { %v3484_v18 = vld [vmem:[#allocation8 + $0xf0] sm:$0xf0]  ;;  %v151_v19 = vld [vmem:[#allocation2] sm:$0xf]  ;;  %v3611_v20 = vor.u32 %v4970_v16, %v3610_v13  ;;  %v4968_v22 = vld [vmem:[#allocation8 + $0x1e4] sm:$0xf] }
  0x2c   :  { %v3487_v21 = vor.u32 %v4936_v17, %v3484_v18  ;;  %v3612_v23 = vld [vmem:[#allocation8 + $0x1f0] sm:$0xf0]  ;;  %v3466_v24 = vld [vmem:[#allocation8 + $0xc0] sm:$0xf]  ;;  %610 = vmatpush.bf16.msra.mxu2 %v3483_v15  ;;  %v4934_v26 = vld [vmem:[#allocation8 + $0xcc] sm:$0xf0] }
  0x2d   :  { %v3615_v25 = vor.u32 %v4968_v22, %v3612_v23  ;;  %v3594_v27 = vld [vmem:[#allocation8 + $0x1c0] sm:$0xf]  ;;  %v4966_v28 = vld [vmem:[#allocation8 + $0x1cc] sm:$0xf0]  ;;  %193 = vmatpush.bf16.msra.mxu0 %v3353_v10  ;;  %623 = vmatpush.bf16.msra.mxu3 %v3611_v20  ;;  %v3467_v29 = vor.u32 %v4934_v26, %v3466_v24  ;;  %v4932_v31 = vld [vmem:[#allocation8 + $0xc4] sm:$0xf] }
  0x2e   :  { %v3595_v30 = vor.u32 %v4966_v28, %v3594_v27  ;;  %v3468_v32 = vld [vmem:[#allocation8 + $0xd0] sm:$0xf0]  ;;  %v4964_v33 = vld [vmem:[#allocation8 + $0x1c4] sm:$0xf]  ;;  %206 = vmatpush.bf16.msra.mxu1 %v3357_v14  ;;  %v3450_v36 = vld [vmem:[#allocation8 + $0xa0] sm:$0xf] }
  0x2f   :  { %v3471_v34 = vor.u32 %v4932_v31, %v3468_v32  ;;  %v3596_v35 = vld [vmem:[#allocation8 + $0x1d0] sm:$0xf0]  ;;  %v4930_v37 = vld [vmem:[#allocation8 + $0xac] sm:$0xf0]  ;;  %v3578_v39 = vld [vmem:[#allocation8 + $0x1a0] sm:$0xf] }
  0x30   :  { %v3599_v38 = vor.u32 %v4964_v33, %v3596_v35  ;;  %v4962_v40 = vld [vmem:[#allocation8 + $0x1ac] sm:$0xf0]  ;;  %v4928_v41 = vld [vmem:[#allocation8 + $0xa4] sm:$0xf]  ;;  %3366 = vmatmul.msk.bf16.vlgmr.msra.gmra.mxu0 %vm182_vm0, %v151_v19  ;;  %611 = vmatpush.bf16.msra.mxu2 %v3467_v29  ;;  %v3451_v42 = vor.u32 %v4930_v37, %v3450_v36  ;;  %v3452_v43 = vld [vmem:[#allocation8 + $0xb0] sm:$0xf0] }
  0x31   :  { %636 = vmatpush.bf16.msrb.mxu0 %v3487_v21  ;;  %v4960_v44 = vld [vmem:[#allocation8 + $0x1a4] sm:$0xf]  ;;  %v3580_v45 = vld [vmem:[#allocation8 + $0x1b0] sm:$0xf0]  ;;  %3367 = vmatmul.msk.bf16.vlgmr.msra.gmra.mxu1 %vm182_vm0, %v151_v19  ;;  %v3579_v46 = vor.u32 %v4962_v40, %v3578_v39  ;;  %v3434_v47 = vld [vmem:[#allocation8 + $0x80] sm:$0xf]  ;;  %v3455_v49 = vor.u32 %v4928_v41, %v3452_v43 }
  0x32   :  { %649 = vmatpush.bf16.msrb.mxu1 %v3615_v25  ;;  %624 = vmatpush.bf16.msra.mxu3 %v3595_v30  ;;  %v4926_v48 = vld [vmem:[#allocation8 + $0x8c] sm:$0xf0]  ;;  %v3562_v50 = vld [vmem:[#allocation8 + $0x180] sm:$0xf]  ;;  %v3583_v52 = vor.u32 %v4960_v44, %v3580_v45  ;;  %v4924_v53 = vld [vmem:[#allocation8 + $0x84] sm:$0xf] }
  0x33   :  { %v4958_v51 = vld [vmem:[#allocation8 + $0x18c] sm:$0xf0]  ;;  %v3436_v54 = vld [vmem:[#allocation8 + $0x90] sm:$0xf0]  ;;  %v3435_v55 = vor.u32 %v4926_v48, %v3434_v47  ;;  %v4956_v56 = vld [vmem:[#allocation8 + $0x184] sm:$0xf] }
  0x34   :  { %612 = vmatpush.bf16.msra.mxu2 %v3451_v42  ;;  %v3564_v57 = vld [vmem:[#allocation8 + $0x190] sm:$0xf0]  ;;  %v3563_v58 = vor.u32 %v4958_v51, %v3562_v50  ;;  %v3418_v59 = vld [vmem:[#allocation8 + $0x60] sm:$0xf]  ;;  %v4922_v60 = vld [vmem:[#allocation8 + $0x6c] sm:$0xf0]  ;;  %v3439_v61 = vor.u32 %v4924_v53, %v3436_v54 }
  0x35   :  { %637 = vmatpush.bf16.msrb.mxu0 %v3471_v34  ;;  %v3546_v62 = vld [vmem:[#allocation8 + $0x160] sm:$0xf]  ;;  %v4954_v63 = vld [vmem:[#allocation8 + $0x16c] sm:$0xf0]  ;;  %v3567_v0 = vor.u32 %v4956_v56, %v3564_v57  ;;  %v4920_v1 = vld [vmem:[#allocation8 + $0x64] sm:$0xf]  ;;  %v3419_v3 = vor.u32 %v4922_v60, %v3418_v59 }
  0x36   :  { %650 = vmatpush.bf16.msrb.mxu1 %v3599_v38  ;;  %625 = vmatpush.bf16.msra.mxu3 %v3579_v46  ;;  %v3420_v2 = vld [vmem:[#allocation8 + $0x70] sm:$0xf0]  ;;  %v4952_v4 = vld [vmem:[#allocation8 + $0x164] sm:$0xf]  ;;  %v3547_v6 = vor.u32 %v4954_v63, %v3546_v62  ;;  %v3402_v7 = vld [vmem:[#allocation8 + $0x40] sm:$0xf] }
  0x37   :  { %v3548_v5 = vld [vmem:[#allocation8 + $0x170] sm:$0xf0]  ;;  %v4918_v8 = vld [vmem:[#allocation8 + $0x4c] sm:$0xf0]  ;;  %v3423_v9 = vor.u32 %v4920_v1, %v3420_v2  ;;  %v3530_v10 = vld [vmem:[#allocation8 + $0x140] sm:$0xf] }
  0x38   :  { %613 = vmatpush.bf16.msra.mxu2 %v3435_v55  ;;  %v4950_v11 = vld [vmem:[#allocation8 + $0x14c] sm:$0xf0]  ;;  %v3551_v12 = vor.u32 %v4952_v4, %v3548_v5  ;;  %v4916_v13 = vld [vmem:[#allocation8 + $0x44] sm:$0xf]  ;;  %v3404_v14 = vld [vmem:[#allocation8 + $0x50] sm:$0xf0]  ;;  %v3403_v15 = vor.u32 %v4918_v8, %v3402_v7 }
  0x39   :  { %638 = vmatpush.bf16.msrb.mxu0 %v3455_v49  ;;  %v4948_v16 = vld [vmem:[#allocation8 + $0x144] sm:$0xf]  ;;  %v3532_v17 = vld [vmem:[#allocation8 + $0x150] sm:$0xf0]  ;;  %v3531_v18 = vor.u32 %v4950_v11, %v3530_v10  ;;  %v3386_v19 = vld [vmem:[#allocation8 + $0x20] sm:$0xf]  ;;  %v3407_v21 = vor.u32 %v4916_v13, %v3404_v14 }
  0x3a   :  { %651 = vmatpush.bf16.msrb.mxu1 %v3583_v52  ;;  %626 = vmatpush.bf16.msra.mxu3 %v3563_v58  ;;  %v4914_v20 = vld [vmem:[#allocation8 + $0x2c] sm:$0xf0]  ;;  %v3514_v22 = vld [vmem:[#allocation8 + $0x120] sm:$0xf]  ;;  %v4912_v24 = vld [vmem:[#allocation8 + $0x24] sm:$0xf]  ;;  %v3535_v25 = vor.u32 %v4948_v16, %v3532_v17 }
  0x3b   :  { %v4946_v23 = vld [vmem:[#allocation8 + $0x12c] sm:$0xf0]  ;;  %v3388_v26 = vld [vmem:[#allocation8 + $0x30] sm:$0xf0]  ;;  %v4944_v27 = vld [vmem:[#allocation8 + $0x124] sm:$0xf]  ;;  %v3387_v29 = vor.u32 %v4914_v20, %v3386_v19 }
  0x3c   :  { %614 = vmatpush.bf16.msra.mxu2 %v3419_v3  ;;  %v3516_v28 = vld [vmem:[#allocation8 + $0x130] sm:$0xf0]  ;;  %v3370_v30 = vld [vmem:[#allocation8] sm:$0xf]  ;;  %v4910_v31 = vld [vmem:[#allocation8 + $0xc] sm:$0xf0]  ;;  %v3515_v33 = vor.u32 %v4946_v23, %v3514_v22  ;;  %v3391_v37 = vor.u32 %v4912_v24, %v3388_v26 }
  0x3d   :  { %639 = vmatpush.bf16.msrb.mxu0 %v3439_v61  ;;  %v3498_v32 = vld [vmem:[#allocation8 + $0x100] sm:$0xf]  ;;  %v4942_v34 = vld [vmem:[#allocation8 + $0x10c] sm:$0xf0]  ;;  %v4908_v35 = vld [vmem:[#allocation8 + $0x4] sm:$0xf]  ;;  %v3519_v41 = vor.u32 %v4944_v27, %v3516_v28  ;;  %v3371_v45 = vor.u32 %v4910_v31, %v3370_v30 }
  0x3e   :  { %652 = vmatpush.bf16.msrb.mxu1 %v3567_v0  ;;  %627 = vmatpush.bf16.msra.mxu3 %v3547_v6  ;;  %v3372_v36 = vld [vmem:[#allocation8 + $0x10] sm:$0xf0]  ;;  %v4940_v38 = vld [vmem:[#allocation8 + $0x104] sm:$0xf]  ;;  %v3490_v39 = vld [vmem:[#allocation8 + $0xe8] sm:$0xf]  ;;  %v3499_v48 = vor.u32 %v4942_v34, %v3498_v32 }
  0x3f   :  { %v4939_v40 = vld [vmem:[#allocation8 + $0xf4] sm:$0xf0]  ;;  %v3500_v42 = vld [vmem:[#allocation8 + $0x110] sm:$0xf0]  ;;  %v3618_v43 = vld [vmem:[#allocation8 + $0x1e8] sm:$0xf]  ;;  %v3375_v52 = vor.u32 %v4908_v35, %v3372_v36 }
  0x40   :  { %615 = vmatpush.bf16.msra.mxu2 %v3403_v15  ;;  %v4971_v44 = vld [vmem:[#allocation8 + $0x1f4] sm:$0xf0]  ;;  %v4937_v46 = vld [vmem:[#allocation8 + $0xec] sm:$0xf]  ;;  %v3492_v47 = vld [vmem:[#allocation8 + $0xf8] sm:$0xf0]  ;;  %v3491_v49 = vor.u32 %v4939_v40, %v3490_v39  ;;  %v3503_v56 = vor.u32 %v4940_v38, %v3500_v42 }
  0x41   :  { %640 = vmatpush.bf16.msrb.mxu0 %v3423_v9  ;;  %v4969_v50 = vld [vmem:[#allocation8 + $0x1ec] sm:$0xf]  ;;  %v3620_v51 = vld [vmem:[#allocation8 + $0x1f8] sm:$0xf0]  ;;  %v3619_v53 = vor.u32 %v4971_v44, %v3618_v43  ;;  %v3474_v54 = vld [vmem:[#allocation8 + $0xc8] sm:$0xf]  ;;  %v3495_v57 = vor.u32 %v4937_v46, %v3492_v47 }
  0x42   :  { %653 = vmatpush.bf16.msrb.mxu1 %v3551_v12  ;;  %628 = vmatpush.bf16.msra.mxu3 %v3531_v18  ;;  %v4935_v55 = vld [vmem:[#allocation8 + $0xd4] sm:$0xf0]  ;;  %v3602_v58 = vld [vmem:[#allocation8 + $0x1c8] sm:$0xf]  ;;  %v3623_v60 = vor.u32 %v4969_v50, %v3620_v51  ;;  %v4933_v61 = vld [vmem:[#allocation8 + $0xcc] sm:$0xf] }
  0x43   :  { %v4967_v59 = vld [vmem:[#allocation8 + $0x1d4] sm:$0xf0]  ;;  %v3476_v62 = vld [vmem:[#allocation8 + $0xd8] sm:$0xf0]  ;;  %v3475_v63 = vor.u32 %v4935_v55, %v3474_v54  ;;  %v4965_v0 = vld [vmem:[#allocation8 + $0x1cc] sm:$0xf] }
  0x44   :  { %616 = vmatpush.bf16.msra.mxu2 %v3387_v29  ;;  %v3604_v1 = vld [vmem:[#allocation8 + $0x1d8] sm:$0xf0]  ;;  %v3603_v2 = vor.u32 %v4967_v59, %v3602_v58  ;;  %v3479_v3 = vor.u32 %v4933_v61, %v3476_v62  ;;  %v3458_v5 = vld [vmem:[#allocation8 + $0xa8] sm:$0xf]  ;;  %v4931_v6 = vld [vmem:[#allocation8 + $0xb4] sm:$0xf0] }
  0x45   :  { %641 = vmatpush.bf16.msrb.mxu0 %v3407_v21  ;;  %v3607_v4 = vor.u32 %v4965_v0, %v3604_v1  ;;  %v3586_v7 = vld [vmem:[#allocation8 + $0x1a8] sm:$0xf]  ;;  %v3459_v8 = vor.u32 %v4931_v6, %v3458_v5  ;;  %v4963_v9 = vld [vmem:[#allocation8 + $0x1b4] sm:$0xf0]  ;;  %v4929_v10 = vld [vmem:[#allocation8 + $0xac] sm:$0xf] }
  0x46   :  { %654 = vmatpush.bf16.msrb.mxu1 %v3535_v25  ;;  %629 = vmatpush.bf16.msra.mxu3 %v3515_v33  ;;  %v3460_v11 = vld [vmem:[#allocation8 + $0xb8] sm:$0xf0]  ;;  %v3587_v12 = vor.u32 %v4963_v9, %v3586_v7  ;;  %v4961_v14 = vld [vmem:[#allocation8 + $0x1ac] sm:$0xf]  ;;  %v3442_v17 = vld [vmem:[#allocation8 + $0x88] sm:$0xf] }
  0x47   :  { %v3463_v13 = vor.u32 %v4929_v10, %v3460_v11  ;;  %v3588_v15 = vld [vmem:[#allocation8 + $0x1b8] sm:$0xf0]  ;;  %v4927_v18 = vld [vmem:[#allocation8 + $0x94] sm:$0xf0]  ;;  %v3570_v19 = vld [vmem:[#allocation8 + $0x188] sm:$0xf] }
  0x48   :  { %617 = vmatpush.bf16.msra.mxu2 %v3371_v45  ;;  %v3591_v16 = vor.u32 %v4961_v14, %v3588_v15  ;;  %v3443_v20 = vor.u32 %v4927_v18, %v3442_v17  ;;  %v4959_v21 = vld [vmem:[#allocation8 + $0x194] sm:$0xf0]  ;;  %v4925_v22 = vld [vmem:[#allocation8 + $0x8c] sm:$0xf]  ;;  %v3444_v23 = vld [vmem:[#allocation8 + $0x98] sm:$0xf0] }
  0x49   :  { %642 = vmatpush.bf16.msrb.mxu0 %v3391_v37  ;;  %v3571_v24 = vor.u32 %v4959_v21, %v3570_v19  ;;  %v3447_v25 = vor.u32 %v4925_v22, %v3444_v23  ;;  %v4957_v26 = vld [vmem:[#allocation8 + $0x18c] sm:$0xf]  ;;  %v3572_v27 = vld [vmem:[#allocation8 + $0x198] sm:$0xf0]  ;;  %v3426_v29 = vld [vmem:[#allocation8 + $0x68] sm:$0xf] }
  0x4a   :  { %655 = vmatpush.bf16.msrb.mxu1 %v3519_v41  ;;  %630 = vmatpush.bf16.msra.mxu3 %v3499_v48  ;;  %v3575_v28 = vor.u32 %v4957_v26, %v3572_v27  ;;  %v4923_v30 = vld [vmem:[#allocation8 + $0x74] sm:$0xf0]  ;;  %v3554_v31 = vld [vmem:[#allocation8 + $0x168] sm:$0xf]  ;;  %v4921_v34 = vld [vmem:[#allocation8 + $0x6c] sm:$0xf] }
  0x4b   :  { %v3427_v32 = vor.u32 %v4923_v30, %v3426_v29  ;;  %v4955_v33 = vld [vmem:[#allocation8 + $0x174] sm:$0xf0]  ;;  %v3428_v35 = vld [vmem:[#allocation8 + $0x78] sm:$0xf0]  ;;  %v4953_v38 = vld [vmem:[#allocation8 + $0x16c] sm:$0xf] }
  0x4c   :  { %662 = vmatpush.bf16.msrb.mxu2 %v3491_v49  ;;  %v3555_v36 = vor.u32 %v4955_v33, %v3554_v31  ;;  %v3431_v37 = vor.u32 %v4921_v34, %v3428_v35  ;;  %v3556_v39 = vld [vmem:[#allocation8 + $0x178] sm:$0xf0]  ;;  %v3410_v41 = vld [vmem:[#allocation8 + $0x48] sm:$0xf]  ;;  %v4919_v42 = vld [vmem:[#allocation8 + $0x54] sm:$0xf0] }
  0x4d   :  { %643 = vmatpush.bf16.msrb.mxu0 %v3375_v52  ;;  %v3559_v40 = vor.u32 %v4953_v38, %v3556_v39  ;;  %v3538_v43 = vld [vmem:[#allocation8 + $0x148] sm:$0xf]  ;;  %v3411_v44 = vor.u32 %v4919_v42, %v3410_v41  ;;  %v4951_v45 = vld [vmem:[#allocation8 + $0x154] sm:$0xf0]  ;;  %v4917_v46 = vld [vmem:[#allocation8 + $0x4c] sm:$0xf] }
  0x4e   :  { %675 = vmatpush.bf16.msrb.mxu3 %v3619_v53  ;;  %656 = vmatpush.bf16.msrb.mxu1 %v3503_v56  ;;  %v3412_v47 = vld [vmem:[#allocation8 + $0x58] sm:$0xf0]  ;;  %v3539_v48 = vor.u32 %v4951_v45, %v3538_v43  ;;  %v4949_v50 = vld [vmem:[#allocation8 + $0x14c] sm:$0xf]  ;;  %v3394_v52 = vld [vmem:[#allocation8 + $0x28] sm:$0xf] }
  0x4f   :  { %v3415_v49 = vor.u32 %v4917_v46, %v3412_v47  ;;  %v3540_v51 = vld [vmem:[#allocation8 + $0x158] sm:$0xf0]  ;;  %v4915_v54 = vld [vmem:[#allocation8 + $0x34] sm:$0xf0]  ;;  %v3522_v55 = vld [vmem:[#allocation8 + $0x128] sm:$0xf] }
  0x50   :  { %663 = vmatpush.bf16.msrb.mxu2 %v3475_v63  ;;  %v3543_v53 = vor.u32 %v4949_v50, %v3540_v51  ;;  %v4947_v56 = vld [vmem:[#allocation8 + $0x134] sm:$0xf0]  ;;  %v4913_v58 = vld [vmem:[#allocation8 + $0x2c] sm:$0xf]  ;;  %v3396_v59 = vld [vmem:[#allocation8 + $0x38] sm:$0xf0] }
  0x51   :  { %688 = vmatpush.bf16.msra.mxu0 %v3495_v57  ;;  %v3395_v57 = vor.u32 %v4915_v54, %v3394_v52  ;;  %v3523_v61 = vor.u32 %v4947_v56, %v3522_v55  ;;  %v3399_v62 = vor.u32 %v4913_v58, %v3396_v59  ;;  %v3524_v63 = vld [vmem:[#allocation8 + $0x138] sm:$0xf0]  ;;  %v3378_v0 = vld [vmem:[#allocation8 + $0x8] sm:$0xf]  ;;  %v4911_v1 = vld [vmem:[#allocation8 + $0x14] sm:$0xf0] }
  0x52   :  { %701 = vmatpush.bf16.msra.mxu1 %v3623_v60  ;;  %676 = vmatpush.bf16.msrb.mxu3 %v3603_v2  ;;  %v4945_v60 = vld [vmem:[#allocation8 + $0x12c] sm:$0xf]  ;;  %v3380_v6 = vld [vmem:[#allocation8 + $0x18] sm:$0xf0]  ;;  %v3379_v9 = vor.u32 %v4911_v1, %v3378_v0  ;;  %v4106_v19 = vld [vmem:[#allocation11 + $0x3c0] sm:$0xf] }
  0x53   :  { %v3527_v2 = vor.u32 %v4945_v60, %v3524_v63  ;;  %v4909_v5 = vld [vmem:[#allocation8 + $0xc] sm:$0xf]  ;;  %v3850_v21 = vld [vmem:[#allocation11 + $0x1c0] sm:$0xf] }
  0x54   :  { %664 = vmatpush.bf16.msrb.mxu2 %v3459_v8  ;;  %v4941_v7 = vld [vmem:[#allocation8 + $0x10c] sm:$0xf]  ;;  %v3508_v8 = vld [vmem:[#allocation8 + $0x118] sm:$0xf0]  ;;  %v3383_v11 = vor.u32 %v4909_v5, %v3380_v6  ;;  %v5032_v23 = vld [vmem:[#allocation11 + $0x1dc] sm:$0xf0] }
  0x55   :  { %689 = vmatpush.bf16.msra.mxu0 %v3479_v3  ;;  %v3506_v3 = vld [vmem:[#allocation8 + $0x108] sm:$0xf]  ;;  %v4362_v27 = vld [vmem:[#allocation11 + $0x5c0] sm:$0xf]  ;;  %v3851_v34 = vor.u32 %v5032_v23, %v3850_v21 }
  0x56   :  { %702 = vmatpush.bf16.msra.mxu1 %v3607_v4  ;;  %677 = vmatpush.bf16.msrb.mxu3 %v3587_v12  ;;  %v4943_v4 = vld [vmem:[#allocation8 + $0x114] sm:$0xf0]  ;;  %v3511_v12 = vor.u32 %v4941_v7, %v3508_v8  ;;  %v5088_v33 = vld [vmem:[#allocation11 + $0x39c] sm:$0xf0] }
  0x57   :  { %v3507_v10 = vor.u32 %v4943_v4, %v3506_v3  ;;  %v4586_v39 = vld [vmem:[#allocation11 + $0x780] sm:$0xf] }
  0x58   :  { %665 = vmatpush.bf16.msrb.mxu2 %v3443_v20  ;;  %v5096_v20 = vld [vmem:[#allocation11 + $0x3dc] sm:$0xf0] }
  0x59   :  { %690 = vmatpush.bf16.msra.mxu0 %v3463_v13  ;;  %v156_v13 = vld [vmem:[#allocation7] sm:$0x3]  ;;  %v4107_v31 = vor.u32 %v5096_v20, %v4106_v19  ;;  %v5216_v41 = vld [vmem:[#allocation11 + $0x79c] sm:$0xf0] }
  0x5a   :  { %703 = vmatpush.bf16.msra.mxu1 %v3591_v16  ;;  %678 = vmatpush.bf16.msrb.mxu3 %v3571_v24  ;;  %v158_v14 = vperm.slane %v156_v13, 0  ;;  %v159_v15 = vperm.slane %v156_v13, 1  ;;  %v4618_v24 = vld [vmem:[#allocation11 + $0x7c0] sm:$0xf]  ;;  %v4587_v52 = vor.u32 %v5216_v41, %v4586_v39 }
  0x5b   :  { %v4330_v42 = vld [vmem:[#allocation11 + $0x580] sm:$0xf] }
  0x5c   :  { %666 = vmatpush.bf16.msrb.mxu2 %v3427_v32  ;;  %v4074_v32 = vld [vmem:[#allocation11 + $0x380] sm:$0xf] }
  0x5d   :  { %691 = vmatpush.bf16.msra.mxu0 %v3447_v25  ;;  %v5224_v25 = vld [vmem:[#allocation11 + $0x7dc] sm:$0xf0]  ;;  %v4075_v46 = vor.u32 %v5088_v33, %v4074_v32 }
  0x5e   :  { %704 = vmatpush.bf16.msra.mxu1 %v3575_v28  ;;  %679 = vmatpush.bf16.msrb.mxu3 %v3555_v36  ;;  %v5160_v28 = vld [vmem:[#allocation11 + $0x5dc] sm:$0xf0]  ;;  %v4619_v38 = vor.u32 %v5224_v25, %v4618_v24 }
  0x5f   :  { %v3818_v36 = vld [vmem:[#allocation11 + $0x180] sm:$0xf] }
  0x60   :  { %667 = vmatpush.bf16.msrb.mxu2 %v3411_v44  ;;  %v5152_v43 = vld [vmem:[#allocation11 + $0x59c] sm:$0xf0] }
  0x61   :  { %692 = vmatpush.bf16.msra.mxu0 %v3431_v37  ;;  %v5024_v37 = vld [vmem:[#allocation11 + $0x19c] sm:$0xf0]  ;;  %v4331_v54 = vor.u32 %v5152_v43, %v4330_v42 }
  0x62   :  { %705 = vmatpush.bf16.msra.mxu1 %v3559_v40  ;;  %680 = vmatpush.bf16.msrb.mxu3 %v3539_v48  ;;  %v4363_v40 = vor.u32 %v5160_v28, %v4362_v27  ;;  %v4042_v47 = vld [vmem:[#allocation11 + $0x340] sm:$0xf] }
  0x63   :  { %v5080_v48 = vld [vmem:[#allocation11 + $0x35c] sm:$0xf0] }
  0x64   :  { %668 = vmatpush.bf16.msrb.mxu2 %v3395_v57  ;;  %v3786_v50 = vld [vmem:[#allocation11 + $0x140] sm:$0xf]  ;;  %v4043_v58 = vor.u32 %v5080_v48, %v4042_v47 }
  0x65   :  { %693 = vmatpush.bf16.msra.mxu0 %v3415_v49  ;;  %v3819_v49 = vor.u32 %v5024_v37, %v3818_v36  ;;  %v5016_v51 = vld [vmem:[#allocation11 + $0x15c] sm:$0xf0] }
  0x66   :  { %706 = vmatpush.bf16.msra.mxu1 %v3543_v53  ;;  %681 = vmatpush.bf16.msrb.mxu3 %v3523_v61  ;;  %v4554_v53 = vld [vmem:[#allocation11 + $0x740] sm:$0xf]  ;;  %v3787_v61 = vor.u32 %v5016_v51, %v3786_v50  ;;  %v4108_v51 = vld [vmem:[#allocation11 + $0x3e0] sm:$0xf0] }
  0x67   :  { %v5208_v55 = vld [vmem:[#allocation11 + $0x75c] sm:$0xf0] }
  0x68   :  { %669 = vmatpush.bf16.msrb.mxu2 %v3379_v9  ;;  %v4298_v56 = vld [vmem:[#allocation11 + $0x540] sm:$0xf]  ;;  %v4555_v0 = vor.u32 %v5208_v55, %v4554_v53  ;;  %v3852_v53 = vld [vmem:[#allocation11 + $0x1e0] sm:$0xf0] }
  0x69   :  { %694 = vmatpush.bf16.msra.mxu0 %v3399_v62  ;;  %v5144_v57 = vld [vmem:[#allocation11 + $0x55c] sm:$0xf0] }
  0x6a   :  { %707 = vmatpush.bf16.msra.mxu1 %v3527_v2  ;;  %682 = vmatpush.bf16.msrb.mxu3 %v3507_v10  ;;  %v4010_v59 = vld [vmem:[#allocation11 + $0x300] sm:$0xf]  ;;  %v4299_v2 = vor.u32 %v5144_v57, %v4298_v56 }
  0x6b   :  { %v5072_v60 = vld [vmem:[#allocation11 + $0x31c] sm:$0xf0] }
  0x6c   :  { %v3754_v62 = vld [vmem:[#allocation11 + $0x100] sm:$0xf]  ;;  %v4011_v6 = vor.u32 %v5072_v60, %v4010_v59  ;;  %v4620_v59 = vld [vmem:[#allocation11 + $0x7e0] sm:$0xf0] }
  0x6d   :  { %695 = vmatpush.bf16.msra.mxu0 %v3383_v11  ;;  %v5008_v63 = vld [vmem:[#allocation11 + $0x11c] sm:$0xf0] }
  0x6e   :  { %708 = vmatpush.bf16.msra.mxu1 %v3511_v12  ;;  %v4522_v1 = vld [vmem:[#allocation11 + $0x700] sm:$0xf]  ;;  %v3755_v9 = vor.u32 %v5008_v63, %v3754_v62  ;;  %v4076_v63 = vld [vmem:[#allocation11 + $0x3a0] sm:$0xf0] }
  0x6f   :  { %v5200_v3 = vld [vmem:[#allocation11 + $0x71c] sm:$0xf0] }
  0x70   :  { %v4266_v4 = vld [vmem:[#allocation11 + $0x500] sm:$0xf]  ;;  %v4523_v12 = vor.u32 %v5200_v3, %v4522_v1  ;;  %v3820_v1 = vld [vmem:[#allocation11 + $0x1a0] sm:$0xf0] }
  0x71   :  { %v5136_v5 = vld [vmem:[#allocation11 + $0x51c] sm:$0xf0] }
  0x72   :  { %v3978_v7 = vld [vmem:[#allocation11 + $0x2c0] sm:$0xf] }
  0x73   :  { %v5064_v8 = vld [vmem:[#allocation11 + $0x2dc] sm:$0xf0] }
  0x74   :  { %v3722_v10 = vld [vmem:[#allocation11 + $0xc0] sm:$0xf] }
  0x75   :  { %v5000_v11 = vld [vmem:[#allocation11 + $0xdc] sm:$0xf0] }
  0x76   :  { %v4490_v13 = vld [vmem:[#allocation11 + $0x6c0] sm:$0xf]  ;;  %v3723_v21 = vor.u32 %v5000_v11, %v3722_v10  ;;  %v5068_v11 = vld [vmem:[#allocation11 + $0x304] sm:$0xf] }
  0x77   :  { %v3946_v19 = vld [vmem:[#allocation11 + $0x280] sm:$0xf] }
  0x78   :  { %v5056_v20 = vld [vmem:[#allocation11 + $0x29c] sm:$0xf0] }
  0x79   :  { %v4992_v23 = vld [vmem:[#allocation11 + $0x9c] sm:$0xf0] }
  0x7a   :  { %v4458_v25 = vld [vmem:[#allocation11 + $0x680] sm:$0xf] }
  0x7b   :  { %v5184_v27 = vld [vmem:[#allocation11 + $0x69c] sm:$0xf0] }
  0x7c   :  { %v4202_v28 = vld [vmem:[#allocation11 + $0x480] sm:$0xf] }
  0x7d   :  { %v3914_v32 = vld [vmem:[#allocation11 + $0x240] sm:$0xf] }
  0x7e   :  { %v5048_v33 = vld [vmem:[#allocation11 + $0x25c] sm:$0xf0] }
  0x7f   :  { %v3658_v36 = vld [vmem:[#allocation11 + $0x40] sm:$0xf]  ;;  %v3915_v43 = vor.u32 %v5048_v33, %v3914_v32  ;;  %v3724_v32 = vld [vmem:[#allocation11 + $0xe0] sm:$0xf0] }
  0x80   :  { %v4984_v37 = vld [vmem:[#allocation11 + $0x5c] sm:$0xf0]  ;;  %v5156_v33 = vld [vmem:[#allocation11 + $0x5c4] sm:$0xf] }
  0x81   :  { %v4426_v39 = vld [vmem:[#allocation11 + $0x640] sm:$0xf] }
  0x82   :  { %v4170_v41 = vld [vmem:[#allocation11 + $0x440] sm:$0xf] }
  0x83   :  { %v5112_v42 = vld [vmem:[#allocation11 + $0x45c] sm:$0xf0] }
  0x84   :  { %v3626_v47 = vld [vmem:[#allocation11] sm:$0xf]  ;;  %v4171_v50 = vor.u32 %v5112_v42, %v4170_v41  ;;  %v4556_v41 = vld [vmem:[#allocation11 + $0x760] sm:$0xf0] }
  0x85   :  { %v4976_v48 = vld [vmem:[#allocation11 + $0x1c] sm:$0xf0] }
  0x86   :  { %v5168_v55 = vld [vmem:[#allocation11 + $0x61c] sm:$0xf0]  ;;  %v3627_v57 = vor.u32 %v4976_v48, %v3626_v47  ;;  %v5036_v48 = vld [vmem:[#allocation11 + $0x204] sm:$0xf] }
  0xad   :  { %v195_v16 = vpop.f32.mrf.mxu0 }
  0xae   :  { %v196_v17 = vadd.f32 %v195_v16, %v158_v14  ;;  %v208_v18 = vpop.f32.mrf.mxu1  ;;  %v4267_v14 = vor.u32 %v5136_v5, %v4266_v4  ;;  %v4234_v16 = vld [vmem:[#allocation11 + $0x4c0] sm:$0xf]  ;;  %v5076_v5 = vld [vmem:[#allocation11 + $0x344] sm:$0xf] }
  0xaf   :  { %v209_v22 = vadd.f32 %v208_v18, %v159_v15  ;;  %v5192_v15 = vld [vmem:[#allocation11 + $0x6dc] sm:$0xf0]  ;;  %v3979_v18 = vor.u32 %v5064_v8, %v3978_v7  ;;  %v4044_v7 = vld [vmem:[#allocation11 + $0x360] sm:$0xf0] }
  0xb0   :  { %v212_v26 = vmax.f32 %v196_v17, 0.0  ;;  %v5128_v17 = vld [vmem:[#allocation11 + $0x4dc] sm:$0xf0]  ;;  %v4491_v24 = vor.u32 %v5192_v15, %v4490_v13  ;;  %v5012_v8 = vld [vmem:[#allocation11 + $0x144] sm:$0xf]  ;;  %v4047_v10 = vor.u32 %v5076_v5, %v4044_v7 }
  0xb1   :  { %v213_v29 = vmax.f32 %v209_v22, 0.0  ;;  %v3690_v22 = vld [vmem:[#allocation11 + $0x80] sm:$0xf]  ;;  %v4012_v13 = vld [vmem:[#allocation11 + $0x320] sm:$0xf0] }
  0xb2   :  { %v5631_v30 = vpack.c.bf16 %v212_v26, %v212_v26  ;;  %v4235_v26 = vor.u32 %v5128_v17, %v4234_v16  ;;  %v3756_v15 = vld [vmem:[#allocation11 + $0x120] sm:$0xf0]  ;;  %v4015_v16 = vor.u32 %v5068_v11, %v4012_v13 }
  0xb3   :  { %v5633_v35 = vpack.c.bf16 %v213_v29, %v213_v29  ;;  %v5120_v29 = vld [vmem:[#allocation11 + $0x49c] sm:$0xf0]  ;;  %v5180_v5 = vld [vmem:[#allocation11 + $0x684] sm:$0xf] }
  0xb4   :  { %618 = vmatmul.bf16.vlgmr.msra.gmra.mxu2 %v5631_v30  ;;  %644 = vmatmul.bf16.vlgmr.msrb.gmra.mxu0 %v5631_v30  ;;  %v5172_v11 = vld [vmem:[#allocation11 + $0x644] sm:$0xf] }
  0xb5   :  { %631 = vmatmul.bf16.vlgmr.msra.gmra.mxu3 %v5633_v35  ;;  %657 = vmatmul.bf16.vlgmr.msrb.gmra.mxu1 %v5633_v35  ;;  %v197_v44 = vpop.f32.mrf.mxu0 }
  0xb6   :  { %v210_v45 = vpop.f32.mrf.mxu1  ;;  %2289 = vmatpush.bf16.msra.mxu3 %v4107_v31  ;;  %2276 = vmatpush.bf16.msra.mxu2 %v3851_v34  ;;  %v3947_v31 = vor.u32 %v5056_v20, %v3946_v19  ;;  %v3691_v34 = vor.u32 %v4992_v23, %v3690_v22  ;;  %v5040_v44 = vld [vmem:[#allocation11 + $0x21c] sm:$0xf0]  ;;  %v3980_v19 = vld [vmem:[#allocation11 + $0x2e0] sm:$0xf0] }
  0xb7   :  { %2315 = vmatpush.bf16.msrb.mxu1 %v4619_v38  ;;  %2302 = vmatpush.bf16.msrb.mxu0 %v4363_v40  ;;  %v4459_v38 = vor.u32 %v5184_v27, %v4458_v25  ;;  %v5176_v40 = vld [vmem:[#allocation11 + $0x65c] sm:$0xf0]  ;;  %v3659_v45 = vor.u32 %v4984_v37, %v3658_v36  ;;  %v3948_v22 = vld [vmem:[#allocation11 + $0x2a0] sm:$0xf0] }
  0xb8   :  { %v5212_v23 = vld [vmem:[#allocation11 + $0x784] sm:$0xf]  ;;  %v5104_v27 = vld [vmem:[#allocation11 + $0x41c] sm:$0xf0] }
  0xb9   :  { %v4588_v25 = vld [vmem:[#allocation11 + $0x7a0] sm:$0xf0] }
  0xba   :  { %2290 = vmatpush.bf16.msra.mxu3 %v4075_v46  ;;  %2277 = vmatpush.bf16.msra.mxu2 %v3819_v49  ;;  %v5092_v46 = vld [vmem:[#allocation11 + $0x3c4] sm:$0xf]  ;;  %v4427_v49 = vor.u32 %v5176_v40, %v4426_v39 }
  0xbb   :  { %2316 = vmatpush.bf16.msrb.mxu1 %v4587_v52  ;;  %2303 = vmatpush.bf16.msrb.mxu0 %v4331_v54  ;;  %v5028_v52 = vld [vmem:[#allocation11 + $0x1c4] sm:$0xf]  ;;  %v4394_v54 = vld [vmem:[#allocation11 + $0x600] sm:$0xf]  ;;  %v4111_v60 = vor.u32 %v5092_v46, %v4108_v51 }
  0xbc   :  { %v3855_v62 = vor.u32 %v5028_v52, %v3852_v53  ;;  %v4364_v36 = vld [vmem:[#allocation11 + $0x5e0] sm:$0xf0] }
  0xbd   :  { %v4367_v37 = vor.u32 %v5156_v33, %v4364_v36  ;;  %v3916_v39 = vld [vmem:[#allocation11 + $0x260] sm:$0xf0]  ;;  %v5097_v36 = vld [vmem:[#allocation11 + $0x3e4] sm:$0xf0] }
  0xbe   :  { %2291 = vmatpush.bf16.msra.mxu3 %v4043_v58  ;;  %2278 = vmatpush.bf16.msra.mxu2 %v3787_v61  ;;  %v5220_v58 = vld [vmem:[#allocation11 + $0x7c4] sm:$0xf] }
  0xbf   :  { %2317 = vmatpush.bf16.msrb.mxu1 %v4555_v0  ;;  %2304 = vmatpush.bf16.msrb.mxu0 %v4299_v2  ;;  %v5084_v61 = vld [vmem:[#allocation11 + $0x384] sm:$0xf]  ;;  %v4395_v2 = vor.u32 %v5168_v55, %v4394_v54  ;;  %v4623_v3 = vor.u32 %v5220_v58, %v4620_v59 }
  0xc0   :  { %v5020_v0 = vld [vmem:[#allocation11 + $0x184] sm:$0xf]  ;;  %v4079_v4 = vor.u32 %v5084_v61, %v4076_v63 }
  0xc1   :  { %v4332_v46 = vld [vmem:[#allocation11 + $0x5a0] sm:$0xf0] }
  0xc2   :  { %2292 = vmatpush.bf16.msra.mxu3 %v4011_v6  ;;  %2279 = vmatpush.bf16.msra.mxu2 %v3755_v9  ;;  %v3823_v6 = vor.u32 %v5020_v0, %v3820_v1  ;;  %v3788_v9 = vld [vmem:[#allocation11 + $0x160] sm:$0xf0] }
  0xc3   :  { %2318 = vmatpush.bf16.msrb.mxu1 %v4523_v12  ;;  %2305 = vmatpush.bf16.msrb.mxu0 %v4267_v14  ;;  %v3791_v12 = vor.u32 %v5012_v8, %v3788_v9  ;;  %v5004_v14 = vld [vmem:[#allocation11 + $0x104] sm:$0xf] }
  0xc4   :  { %670 = vmatmul.bf16.vlgmr.msrb.gmra.mxu2 %v5631_v30  ;;  %696 = vmatmul.bf16.vlgmr.msra.gmra.mxu0 %v5631_v30  ;;  %v4203_v30 = vor.u32 %v5120_v29, %v4202_v28  ;;  %v3759_v17 = vor.u32 %v5004_v14, %v3756_v15  ;;  %v4591_v28 = vor.u32 %v5212_v23, %v4588_v25  ;;  %v5196_v51 = vld [vmem:[#allocation11 + $0x704] sm:$0xf]  ;;  %v5643_v23 = vld [vmem:[#allocation10] sm:$0xf] }
  0xc5   :  { %683 = vmatmul.bf16.vlgmr.msrb.gmra.mxu3 %v5633_v35  ;;  %709 = vmatmul.bf16.vlgmr.msra.gmra.mxu1 %v5633_v35  ;;  %v3882_v35 = vld [vmem:[#allocation11 + $0x200] sm:$0xf]  ;;  %v4524_v52 = vld [vmem:[#allocation11 + $0x720] sm:$0xf0]  ;;  %v282_v33 = vperm.slane %v5643_v23, 0 }
  0xc6   :  { %2293 = vmatpush.bf16.msra.mxu3 %v3979_v18  ;;  %2280 = vmatpush.bf16.msra.mxu2 %v3723_v21  ;;  %v3883_v56 = vor.u32 %v5040_v44, %v3882_v35  ;;  %v5060_v18 = vld [vmem:[#allocation11 + $0x2c4] sm:$0xf]  ;;  %v4527_v53 = vor.u32 %v5196_v51, %v4524_v52  ;;  %v5081_v51 = vld [vmem:[#allocation11 + $0x364] sm:$0xf0] }
  0xc7   :  { %2319 = vmatpush.bf16.msrb.mxu1 %v4491_v24  ;;  %2306 = vmatpush.bf16.msrb.mxu0 %v4235_v26  ;;  %v3983_v20 = vor.u32 %v5060_v18, %v3980_v19  ;;  %v5052_v21 = vld [vmem:[#allocation11 + $0x284] sm:$0xf]  ;;  %v4138_v26 = vld [vmem:[#allocation11 + $0x400] sm:$0xf] }
  0xc8   :  { %v3951_v24 = vor.u32 %v5052_v21, %v3948_v22  ;;  %v4139_v29 = vor.u32 %v5104_v27, %v4138_v26  ;;  %v3692_v35 = vld [vmem:[#allocation11 + $0xa0] sm:$0xf0]  ;;  %v283_v26 = vperm.slane %v5643_v23, 1 }
  0xc9   :  { %v5148_v44 = vld [vmem:[#allocation11 + $0x584] sm:$0xf] }
  0xca   :  { %2294 = vmatpush.bf16.msra.mxu3 %v3947_v31  ;;  %2281 = vmatpush.bf16.msra.mxu2 %v3691_v34  ;;  %v4996_v31 = vld [vmem:[#allocation11 + $0xc4] sm:$0xf]  ;;  %v4335_v47 = vor.u32 %v5148_v44, %v4332_v46  ;;  %v3858_v46 = vld [vmem:[#allocation11 + $0x1c8] sm:$0xf] }
  0xcb   :  { %2320 = vmatpush.bf16.msrb.mxu1 %v4459_v38  ;;  %2307 = vmatpush.bf16.msrb.mxu0 %v4203_v30  ;;  %v3727_v34 = vor.u32 %v4996_v31, %v3724_v32  ;;  %v5044_v38 = vld [vmem:[#allocation11 + $0x244] sm:$0xf] }
  0xcc   :  { %v5204_v30 = vld [vmem:[#allocation11 + $0x744] sm:$0xf]  ;;  %v3919_v40 = vor.u32 %v5044_v38, %v3916_v39 }
  0xcd   :  { %v4559_v42 = vor.u32 %v5204_v30, %v4556_v41  ;;  %v4980_v54 = vld [vmem:[#allocation11 + $0x44] sm:$0xf] }
  0xce   :  { %2295 = vmatpush.bf16.msra.mxu3 %v3915_v43  ;;  %2282 = vmatpush.bf16.msra.mxu2 %v3659_v45  ;;  %v4988_v43 = vld [vmem:[#allocation11 + $0x84] sm:$0xf] }
  0xcf   :  { %2321 = vmatpush.bf16.msrb.mxu1 %v4427_v49  ;;  %2308 = vmatpush.bf16.msrb.mxu0 %v4171_v50  ;;  %v3695_v45 = vor.u32 %v4988_v43, %v3692_v35  ;;  %v3884_v49 = vld [vmem:[#allocation11 + $0x220] sm:$0xf0]  ;;  %v5089_v43 = vld [vmem:[#allocation11 + $0x3a4] sm:$0xf0] }
  0xd0   :  { %v3887_v50 = vor.u32 %v5036_v48, %v3884_v49  ;;  %v3660_v55 = vld [vmem:[#allocation11 + $0x60] sm:$0xf0] }
  0xd1   :  { %v4300_v58 = vld [vmem:[#allocation11 + $0x560] sm:$0xf0] }
  0xd2   :  { %2296 = vmatpush.bf16.msra.mxu3 %v3883_v56  ;;  %2283 = vmatpush.bf16.msra.mxu2 %v3627_v57  ;;  %v3663_v56 = vor.u32 %v4980_v54, %v3660_v55  ;;  %v5140_v57 = vld [vmem:[#allocation11 + $0x544] sm:$0xf]  ;;  %v285_v54 = vperm.slane %v5643_v23, 3  ;;  %v3826_v55 = vld [vmem:[#allocation11 + $0x188] sm:$0xf] }
  0xd3   :  { %2322 = vmatpush.bf16.msrb.mxu1 %v4395_v2  ;;  %2309 = vmatpush.bf16.msrb.mxu0 %v4139_v29  ;;  %v4303_v59 = vor.u32 %v5140_v57, %v4300_v58  ;;  %v4492_v61 = vld [vmem:[#allocation11 + $0x6e0] sm:$0xf0] }
  0xd4   :  { %v4972_v63 = vld [vmem:[#allocation11 + $0x4] sm:$0xf] }
  0xd5   :  { %v3628_v0 = vld [vmem:[#allocation11 + $0x20] sm:$0xf0] }
  0xd6   :  { %2341 = vmatpush.bf16.msrb.mxu3 %v4111_v60  ;;  %2328 = vmatpush.bf16.msrb.mxu2 %v3855_v62  ;;  %v5188_v60 = vld [vmem:[#allocation11 + $0x6c4] sm:$0xf]  ;;  %v3631_v2 = vor.u32 %v4972_v63, %v3628_v0 }
  0xd7   :  { %2367 = vmatpush.bf16.msra.mxu1 %v4623_v3  ;;  %2354 = vmatpush.bf16.msra.mxu0 %v4367_v37  ;;  %v4495_v62 = vor.u32 %v5188_v60, %v4492_v61  ;;  %v5132_v1 = vld [vmem:[#allocation11 + $0x504] sm:$0xf]  ;;  %v4018_v60 = vld [vmem:[#allocation11 + $0x308] sm:$0xf] }
  0xd8   :  { %v4268_v3 = vld [vmem:[#allocation11 + $0x520] sm:$0xf0]  ;;  %v5073_v61 = vld [vmem:[#allocation11 + $0x324] sm:$0xf0] }
  0xd9   :  { %v5124_v8 = vld [vmem:[#allocation11 + $0x4c4] sm:$0xf] }
  0xda   :  { %2342 = vmatpush.bf16.msrb.mxu3 %v4079_v4  ;;  %2329 = vmatpush.bf16.msrb.mxu2 %v3823_v6  ;;  %v4271_v4 = vor.u32 %v5132_v1, %v4268_v3  ;;  %v4460_v6 = vld [vmem:[#allocation11 + $0x6a0] sm:$0xf0]  ;;  %v5017_v3 = vld [vmem:[#allocation11 + $0x164] sm:$0xf0] }
  0xdb   :  { %2368 = vmatpush.bf16.msra.mxu1 %v4591_v28  ;;  %2355 = vmatpush.bf16.msra.mxu0 %v4335_v47  ;;  %v4463_v7 = vor.u32 %v5180_v5, %v4460_v6  ;;  %v4236_v9 = vld [vmem:[#allocation11 + $0x4e0] sm:$0xf0]  ;;  %v5033_v47 = vld [vmem:[#allocation11 + $0x1e4] sm:$0xf0]  ;;  %v284_v5 = vperm.slane %v5643_v23, 2 }
  0xdc   :  { %v5116_v14 = vld [vmem:[#allocation11 + $0x484] sm:$0xf]  ;;  %v3859_v52 = vor.u32 %v5033_v47, %v3858_v46  ;;  %v3986_v6 = vld [vmem:[#allocation11 + $0x2c8] sm:$0xf] }
  0xdd   :  { %v4204_v15 = vld [vmem:[#allocation11 + $0x4a0] sm:$0xf0]  ;;  %v4594_v23 = vld [vmem:[#allocation11 + $0x788] sm:$0xf] }
  0xde   :  { %2343 = vmatpush.bf16.msrb.mxu3 %v4047_v10  ;;  %2330 = vmatpush.bf16.msrb.mxu2 %v3791_v12  ;;  %v4239_v10 = vor.u32 %v5124_v8, %v4236_v9  ;;  %v4428_v12 = vld [vmem:[#allocation11 + $0x660] sm:$0xf0]  ;;  %v5065_v8 = vld [vmem:[#allocation11 + $0x2e4] sm:$0xf0] }
  0xdf   :  { %2369 = vmatpush.bf16.msra.mxu1 %v4559_v42  ;;  %2356 = vmatpush.bf16.msra.mxu0 %v4303_v59  ;;  %v4431_v13 = vor.u32 %v5172_v11, %v4428_v12  ;;  %v4396_v18 = vld [vmem:[#allocation11 + $0x620] sm:$0xf0]  ;;  %v4082_v42 = vld [vmem:[#allocation11 + $0x388] sm:$0xf] }
  0xe0   :  { %v4172_v21 = vld [vmem:[#allocation11 + $0x460] sm:$0xf0]  ;;  %v4083_v48 = vor.u32 %v5089_v43, %v4082_v42  ;;  %v4626_v9 = vld [vmem:[#allocation11 + $0x7c8] sm:$0xf] }
  0xe1   :  { %v4140_v25 = vld [vmem:[#allocation11 + $0x420] sm:$0xf0]  ;;  %v4338_v46 = vld [vmem:[#allocation11 + $0x588] sm:$0xf] }
  0xe2   :  { %2344 = vmatpush.bf16.msrb.mxu3 %v4015_v16  ;;  %2331 = vmatpush.bf16.msrb.mxu2 %v3759_v17  ;;  %v4207_v16 = vor.u32 %v5116_v14, %v4204_v15  ;;  %v5164_v17 = vld [vmem:[#allocation11 + $0x604] sm:$0xf]  ;;  %v5009_v14 = vld [vmem:[#allocation11 + $0x124] sm:$0xf0] }
  0xe3   :  { %2370 = vmatpush.bf16.msra.mxu1 %v4527_v53  ;;  %2357 = vmatpush.bf16.msra.mxu0 %v4271_v4  ;;  %v4399_v19 = vor.u32 %v5164_v17, %v4396_v18  ;;  %v4019_v4 = vor.u32 %v5073_v61, %v4018_v60  ;;  %v3954_v18 = vld [vmem:[#allocation11 + $0x288] sm:$0xf]  ;;  %v4116_v60 = vld [vmem:[#allocation11 + $0x3e8] sm:$0xf0] }
  0xe4   :  { %v5153_v47 = vld [vmem:[#allocation11 + $0x5a4] sm:$0xf0] }
  0xe5   :  { %v3666_v61 = vld [vmem:[#allocation11 + $0x48] sm:$0xf] }
  0xe6   :  { %2345 = vmatpush.bf16.msrb.mxu3 %v3983_v20  ;;  %2332 = vmatpush.bf16.msrb.mxu2 %v3727_v34  ;;  %v5108_v20 = vld [vmem:[#allocation11 + $0x444] sm:$0xf]  ;;  %v4114_v34 = vld [vmem:[#allocation11 + $0x3c8] sm:$0xf] }
  0xe7   :  { %2371 = vmatpush.bf16.msra.mxu1 %v4495_v62  ;;  %2358 = vmatpush.bf16.msra.mxu0 %v4239_v10  ;;  %v4175_v22 = vor.u32 %v5108_v20, %v4172_v21  ;;  %v4115_v39 = vor.u32 %v5097_v36, %v4114_v34  ;;  %v5225_v10 = vld [vmem:[#allocation11 + $0x7e4] sm:$0xf0] }
  0xe8   :  { %v4627_v17 = vor.u32 %v5225_v10, %v4626_v9  ;;  %v4084_v9 = vld [vmem:[#allocation11 + $0x3a8] sm:$0xf0]  ;;  %v3634_v10 = vld [vmem:[#allocation11 + $0x8] sm:$0xf] }
  0xea   :  { %2346 = vmatpush.bf16.msrb.mxu3 %v3951_v24  ;;  %2333 = vmatpush.bf16.msrb.mxu2 %v3695_v45  ;;  %v5100_v24 = vld [vmem:[#allocation11 + $0x404] sm:$0xf] }
  0xeb   :  { %2372 = vmatpush.bf16.msra.mxu1 %v4463_v7  ;;  %2359 = vmatpush.bf16.msra.mxu0 %v4207_v16  ;;  %v4143_v27 = vor.u32 %v5100_v24, %v4140_v25  ;;  %v3987_v16 = vor.u32 %v5065_v8, %v3986_v6  ;;  %v5217_v24 = vld [vmem:[#allocation11 + $0x7a4] sm:$0xf0]  ;;  %v5085_v8 = vld [vmem:[#allocation11 + $0x38c] sm:$0xf] }
  0xec   :  { %v4595_v36 = vor.u32 %v5217_v24, %v4594_v23  ;;  %v5077_v23 = vld [vmem:[#allocation11 + $0x34c] sm:$0xf] }
  0xed   :  { %v4052_v24 = vld [vmem:[#allocation11 + $0x368] sm:$0xf0] }
  0xee   :  { %2347 = vmatpush.bf16.msrb.mxu3 %v3919_v40  ;;  %2334 = vmatpush.bf16.msrb.mxu2 %v3663_v56  ;;  %v5025_v56 = vld [vmem:[#allocation11 + $0x1a4] sm:$0xf0] }
  0xef   :  { %2373 = vmatpush.bf16.msra.mxu1 %v4431_v13  ;;  %2360 = vmatpush.bf16.msra.mxu0 %v4175_v22  ;;  %v3827_v63 = vor.u32 %v5025_v56, %v3826_v55  ;;  %v3762_v13 = vld [vmem:[#allocation11 + $0x108] sm:$0xf] }
  0xf0   :  { %v5057_v22 = vld [vmem:[#allocation11 + $0x2a4] sm:$0xf0] }
  0xf1   :  { %v3955_v34 = vor.u32 %v5057_v22, %v3954_v18  ;;  %v4530_v55 = vld [vmem:[#allocation11 + $0x708] sm:$0xf] }
  0xf2   :  { %2348 = vmatpush.bf16.msrb.mxu3 %v3887_v50  ;;  %2335 = vmatpush.bf16.msrb.mxu2 %v3631_v2  ;;  %v4050_v50 = vld [vmem:[#allocation11 + $0x348] sm:$0xf] }
  0xf3   :  { %2374 = vmatpush.bf16.msra.mxu1 %v4399_v19  ;;  %2361 = vmatpush.bf16.msra.mxu0 %v4143_v27  ;;  %v4051_v58 = vor.u32 %v5081_v51, %v4050_v50  ;;  %v3794_v2 = vld [vmem:[#allocation11 + $0x148] sm:$0xf] }
  0xf4   :  { %v3795_v11 = vor.u32 %v5017_v3, %v3794_v2  ;;  %v3730_v27 = vld [vmem:[#allocation11 + $0xc8] sm:$0xf] }
  0xf5   :  { %v3890_v51 = vld [vmem:[#allocation11 + $0x208] sm:$0xf] }
  0xf6   :  { %v5201_v56 = vld [vmem:[#allocation11 + $0x724] sm:$0xf0] }
  0xf7   :  { %v4531_v2 = vor.u32 %v5201_v56, %v4530_v55  ;;  %v4466_v18 = vld [vmem:[#allocation11 + $0x688] sm:$0xf] }
  0xf8   :  { %v4178_v55 = vld [vmem:[#allocation11 + $0x448] sm:$0xf] }
  0xf9   :  { %v5113_v56 = vld [vmem:[#allocation11 + $0x464] sm:$0xf0] }
 0x131   :  { %v645_v28 = vpop.f32.mrf.mxu0 }
 0x132   :  { %v646_v29 = vadd.f32 %v645_v28, %v283_v26  ;;  %v658_v31 = vpop.f32.mrf.mxu1  ;;  %v3763_v26 = vor.u32 %v5009_v14, %v3762_v13  ;;  %v5137_v13 = vld [vmem:[#allocation11 + $0x524] sm:$0xf0] }
 0x134   :  { %v659_v32 = vadd.f32 %v658_v31, %v646_v29  ;;  %v5001_v31 = vld [vmem:[#allocation11 + $0xe4] sm:$0xf0] }
 0x135   :  { %v3731_v42 = vor.u32 %v5001_v31, %v3730_v27  ;;  %v5129_v27 = vld [vmem:[#allocation11 + $0x4e4] sm:$0xf0]  ;;  %v3828_v31 = vld [vmem:[#allocation11 + $0x1a8] sm:$0xf0] }
 0x136   :  { %v715_v37 = vmax.f32 %v659_v32, 0.0  ;;  %v4370_v32 = vld [vmem:[#allocation11 + $0x5c8] sm:$0xf] }
 0x137   :  { %v619_v38 = vpop.f32.mrf.mxu2 }
 0x138   :  { %v5647_v30 = vpack.c.bf16 %v715_v37, %v715_v37  ;;  %v620_v40 = vadd.f32 %v619_v38, %v282_v33  ;;  %v632_v41 = vpop.f32.mrf.mxu3  ;;  %v5161_v33 = vld [vmem:[#allocation11 + $0x5e4] sm:$0xf0] }
 0x139   :  { %v647_v35 = vpop.f32.mrf.mxu0  ;;  %v3922_v37 = vld [vmem:[#allocation11 + $0x248] sm:$0xf]  ;;  %v4371_v43 = vor.u32 %v5161_v33, %v4370_v32  ;;  %v4055_v32 = vor.u32 %v5077_v23, %v4052_v24  ;;  %v4340_v23 = vld [vmem:[#allocation11 + $0x5a8] sm:$0xf0] }
 0x13a   :  { %v633_v44 = vadd.f32 %v632_v41, %v620_v40  ;;  %v660_v45 = vpop.f32.mrf.mxu1  ;;  %2297 = vmatmul.bf16.vlgmr.msra.gmra.mxu3 %v5647_v30  ;;  %v5049_v38 = vld [vmem:[#allocation11 + $0x264] sm:$0xf0] }
 0x13b   :  { %2393 = vmatpush.bf16.msra.mxu3 %v4115_v39  ;;  %v4562_v40 = vld [vmem:[#allocation11 + $0x748] sm:$0xf] }
 0x13c   :  { %v714_v49 = vmax.f32 %v633_v44, 0.0  ;;  %v5209_v41 = vld [vmem:[#allocation11 + $0x764] sm:$0xf0] }
 0x13d   :  { %v3698_v35 = vld [vmem:[#allocation11 + $0x88] sm:$0xf]  ;;  %v4563_v50 = vor.u32 %v5209_v41, %v4562_v40 }
 0x13e   :  { %v5650_v53 = vpack.c.bf16 %v714_v49, %v714_v49  ;;  %v4993_v45 = vld [vmem:[#allocation11 + $0xa4] sm:$0xf0]  ;;  %v3923_v49 = vor.u32 %v5049_v38, %v3922_v37  ;;  %v5069_v37 = vld [vmem:[#allocation11 + $0x30c] sm:$0xf] }
 0x13f   :  { %2394 = vmatpush.bf16.msra.mxu3 %v4083_v48  ;;  %v621_v57 = vpop.f32.mrf.mxu2  ;;  %v4434_v33 = vld [vmem:[#allocation11 + $0x648] sm:$0xf]  ;;  %v4020_v38 = vld [vmem:[#allocation11 + $0x328] sm:$0xf0] }
 0x140   :  { %v634_v59 = vpop.f32.mrf.mxu3  ;;  %2284 = vmatmul.bf16.vlgmr.msra.gmra.mxu2 %v5650_v53  ;;  %v3699_v57 = vor.u32 %v4993_v45, %v3698_v35  ;;  %v4210_v40 = vld [vmem:[#allocation11 + $0x488] sm:$0xf]  ;;  %v3796_v35 = vld [vmem:[#allocation11 + $0x168] sm:$0xf0]  ;;  %v4023_v45 = vor.u32 %v5069_v37, %v4020_v38 }
 0x141   :  { %2380 = vmatpush.bf16.msra.mxu2 %v3859_v52  ;;  %v697_v62 = vpop.f32.mrf.mxu0  ;;  %v5093_v59 = vld [vmem:[#allocation11 + $0x3cc] sm:$0xf]  ;;  %v5121_v41 = vld [vmem:[#allocation11 + $0x4a4] sm:$0xf0] }
 0x142   :  { %v698_v0 = vadd.f32 %v697_v62, %v285_v54  ;;  %v710_v1 = vpop.f32.mrf.mxu1  ;;  %v5041_v54 = vld [vmem:[#allocation11 + $0x224] sm:$0xf0]  ;;  %v4119_v3 = vor.u32 %v5093_v59, %v4116_v60  ;;  %v3764_v59 = vld [vmem:[#allocation11 + $0x128] sm:$0xf0] }
 0x143   :  { %2395 = vmatpush.bf16.msra.mxu3 %v4051_v58  ;;  %v4339_v58 = vor.u32 %v5153_v47, %v4338_v46  ;;  %v4985_v62 = vld [vmem:[#allocation11 + $0x64] sm:$0xf0]  ;;  %v3668_v37 = vld [vmem:[#allocation11 + $0x68] sm:$0xf0] }
 0x144   :  { %v711_v7 = vadd.f32 %v710_v1, %v698_v0  ;;  %v5145_v0 = vld [vmem:[#allocation11 + $0x564] sm:$0xf0]  ;;  %v3891_v1 = vor.u32 %v5041_v54, %v3890_v51  ;;  %v3667_v6 = vor.u32 %v4985_v62, %v3666_v61  ;;  %v5221_v51 = vld [vmem:[#allocation11 + $0x7cc] sm:$0xf] }
 0x145   :  { %2381 = vmatpush.bf16.msra.mxu2 %v3827_v63  ;;  %v4306_v63 = vld [vmem:[#allocation11 + $0x548] sm:$0xf]  ;;  %v5053_v62 = vld [vmem:[#allocation11 + $0x28c] sm:$0xf] }
 0x146   :  { %v717_v12 = vmax.f32 %v711_v7, 0.0  ;;  %v4307_v7 = vor.u32 %v5145_v0, %v4306_v63  ;;  %v4402_v46 = vld [vmem:[#allocation11 + $0x608] sm:$0xf]  ;;  %v4179_v63 = vor.u32 %v5113_v56, %v4178_v55  ;;  %v3956_v0 = vld [vmem:[#allocation11 + $0x2a8] sm:$0xf0] }
 0x147   :  { %2396 = vmatpush.bf16.msra.mxu3 %v4019_v4  ;;  %v671_v15 = vpop.f32.mrf.mxu2  ;;  %v4498_v4 = vld [vmem:[#allocation11 + $0x6c8] sm:$0xf]  ;;  %v5141_v38 = vld [vmem:[#allocation11 + $0x54c] sm:$0xf]  ;;  %v3866_v55 = vld [vmem:[#allocation11 + $0x1d0] sm:$0xf] }
 0x148   :  { %v5655_v19 = vpack.c.bf16 %v717_v12, %v717_v12  ;;  %v672_v20 = vadd.f32 %v671_v15, %v284_v5  ;;  %v684_v21 = vpop.f32.mrf.mxu3  ;;  %v5193_v5 = vld [vmem:[#allocation11 + $0x6e4] sm:$0xf0]  ;;  %v5029_v15 = vld [vmem:[#allocation11 + $0x1cc] sm:$0xf]  ;;  %v5034_v56 = vld [vmem:[#allocation11 + $0x1ec] sm:$0xf0] }
 0x149   :  { %2382 = vmatpush.bf16.msra.mxu2 %v3795_v11  ;;  %v699_v25 = vpop.f32.mrf.mxu0  ;;  %v4977_v11 = vld [vmem:[#allocation11 + $0x24] sm:$0xf0]  ;;  %v4499_v14 = vor.u32 %v5193_v5, %v4498_v4 }
 0x14a   :  { %v685_v28 = vadd.f32 %v684_v21, %v672_v20  ;;  %v712_v29 = vpop.f32.mrf.mxu1  ;;  %2323 = vmatmul.bf16.vlgmr.msrb.gmra.mxu1 %v5655_v19  ;;  %2349 = vmatmul.bf16.vlgmr.msrb.gmra.mxu3 %v5647_v30  ;;  %v4274_v12 = vld [vmem:[#allocation11 + $0x508] sm:$0xf]  ;;  %v3635_v21 = vor.u32 %v4977_v11, %v3634_v10  ;;  %v3959_v10 = vor.u32 %v5053_v62, %v3956_v0  ;;  %v4058_v62 = vld [vmem:[#allocation11 + $0x350] sm:$0xf] }
 0x14b   :  { %2397 = vmatpush.bf16.msra.mxu3 %v3987_v16  ;;  %2419 = vmatpush.bf16.msrb.mxu1 %v4627_v17  ;;  %v3860_v16 = vld [vmem:[#allocation11 + $0x1e8] sm:$0xf0]  ;;  %v4087_v17 = vor.u32 %v5085_v8, %v4084_v9  ;;  %v5185_v20 = vld [vmem:[#allocation11 + $0x6a4] sm:$0xf0]  ;;  %v4275_v22 = vor.u32 %v5137_v13, %v4274_v12  ;;  %v3867_v0 = vor.u32 %v5034_v56, %v3866_v55 }
 0x14c   :  { %v716_v39 = vmax.f32 %v685_v28, 0.0  ;;  %v3863_v25 = vor.u32 %v5029_v15, %v3860_v16  ;;  %v4467_v28 = vor.u32 %v5185_v20, %v4466_v18  ;;  %v5021_v29 = vld [vmem:[#allocation11 + $0x18c] sm:$0xf]  ;;  %v5169_v47 = vld [vmem:[#allocation11 + $0x624] sm:$0xf0] }
 0x14d   :  { %2383 = vmatpush.bf16.msra.mxu2 %v3763_v26  ;;  %v4242_v26 = vld [vmem:[#allocation11 + $0x4c8] sm:$0xf]  ;;  %v5157_v8 = vld [vmem:[#allocation11 + $0x5cc] sm:$0xf] }
 0x14e   :  { %v5659_v44 = vpack.c.bf16 %v716_v39, %v716_v39  ;;  %v3831_v39 = vor.u32 %v5021_v29, %v3828_v31  ;;  %v4146_v4 = vld [vmem:[#allocation11 + $0x408] sm:$0xf]  ;;  %v4372_v9 = vld [vmem:[#allocation11 + $0x5e8] sm:$0xf0] }
 0x14f   :  { %2398 = vmatpush.bf16.msra.mxu3 %v3955_v34  ;;  %2420 = vmatpush.bf16.msrb.mxu1 %v4595_v36  ;;  %v673_v48 = vpop.f32.mrf.mxu2  ;;  %v5177_v34 = vld [vmem:[#allocation11 + $0x664] sm:$0xf0]  ;;  %v4243_v36 = vor.u32 %v5129_v27, %v4242_v26  ;;  %v5045_v12 = vld [vmem:[#allocation11 + $0x24c] sm:$0xf]  ;;  %v4375_v18 = vor.u32 %v5157_v8, %v4372_v9 }
 0x150   :  { %v686_v52 = vpop.f32.mrf.mxu3  ;;  %2310 = vmatmul.bf16.vlgmr.msrb.gmra.mxu0 %v5659_v44  ;;  %2336 = vmatmul.bf16.vlgmr.msrb.gmra.mxu2 %v5650_v53  ;;  %v5061_v48 = vld [vmem:[#allocation11 + $0x2cc] sm:$0xf]  ;;  %v5105_v5 = vld [vmem:[#allocation11 + $0x424] sm:$0xf0] }
 0x151   :  { %2384 = vmatpush.bf16.msra.mxu2 %v3731_v42  ;;  %2406 = vmatpush.bf16.msrb.mxu0 %v4371_v43  ;;  %v4435_v42 = vor.u32 %v5177_v34, %v4434_v33  ;;  %v5013_v43 = vld [vmem:[#allocation11 + $0x14c] sm:$0xf]  ;;  %v4147_v13 = vor.u32 %v5105_v5, %v4146_v4  ;;  %v4122_v33 = vld [vmem:[#allocation11 + $0x3d0] sm:$0xf] }
 0x152   :  { %v4628_v52 = vld [vmem:[#allocation11 + $0x7e8] sm:$0xf0]  ;;  %v3799_v54 = vor.u32 %v5013_v43, %v3796_v35  ;;  %v5098_v34 = vld [vmem:[#allocation11 + $0x3ec] sm:$0xf0] }
 0x153   :  { %2399 = vmatpush.bf16.msra.mxu3 %v3923_v49  ;;  %2421 = vmatpush.bf16.msrb.mxu1 %v4563_v50  ;;  %v4211_v49 = vor.u32 %v5121_v41, %v4210_v40  ;;  %v3988_v50 = vld [vmem:[#allocation11 + $0x2e8] sm:$0xf0]  ;;  %v4631_v61 = vor.u32 %v5221_v51, %v4628_v52  ;;  %v3834_v4 = vld [vmem:[#allocation11 + $0x190] sm:$0xf] }
 0x154   :  { %v3991_v60 = vor.u32 %v5061_v48, %v3988_v50  ;;  %v5205_v15 = vld [vmem:[#allocation11 + $0x74c] sm:$0xf]  ;;  %v5090_v48 = vld [vmem:[#allocation11 + $0x3ac] sm:$0xf0] }
 0x155   :  { %2385 = vmatpush.bf16.msra.mxu2 %v3699_v57  ;;  %2407 = vmatpush.bf16.msrb.mxu0 %v4339_v58  ;;  %v4403_v57 = vor.u32 %v5169_v47, %v4402_v46  ;;  %v5005_v58 = vld [vmem:[#allocation11 + $0x10c] sm:$0xf]  ;;  %v4090_v47 = vld [vmem:[#allocation11 + $0x390] sm:$0xf] }
 0x156   :  { %v4564_v16 = vld [vmem:[#allocation11 + $0x768] sm:$0xf0]  ;;  %v5026_v5 = vld [vmem:[#allocation11 + $0x1ac] sm:$0xf0] }
 0x157   :  { %2400 = vmatpush.bf16.msra.mxu3 %v3891_v1  ;;  %2422 = vmatpush.bf16.msrb.mxu1 %v4531_v2  ;;  %v5213_v1 = vld [vmem:[#allocation11 + $0x78c] sm:$0xf] }
 0x158   :  { %v4596_v2 = vld [vmem:[#allocation11 + $0x7a8] sm:$0xf0] }
 0x159   :  { %2386 = vmatpush.bf16.msra.mxu2 %v3667_v6  ;;  %2408 = vmatpush.bf16.msrb.mxu0 %v4307_v7  ;;  %v4997_v6 = vld [vmem:[#allocation11 + $0xcc] sm:$0xf]  ;;  %v4599_v11 = vor.u32 %v5213_v1, %v4596_v2 }
 0x15a   :  { %2375 = vmatmul.bf16.vlgmr.msra.gmra.mxu1 %v5655_v19  ;;  %2401 = vmatmul.bf16.vlgmr.msra.gmra.mxu3 %v5647_v30  ;;  %v3732_v7 = vld [vmem:[#allocation11 + $0xe8] sm:$0xf0] }
 0x15b   :  { %2445 = vmatpush.bf16.msrb.mxu3 %v4119_v3  ;;  %2423 = vmatpush.bf16.msrb.mxu1 %v4499_v14  ;;  %v3767_v3 = vor.u32 %v5005_v58, %v3764_v59  ;;  %v3924_v14 = vld [vmem:[#allocation11 + $0x268] sm:$0xf0] }
 0x15c   :  { %v4989_v20 = vld [vmem:[#allocation11 + $0x8c] sm:$0xf]  ;;  %v3927_v24 = vor.u32 %v5045_v12, %v3924_v14  ;;  %v3835_v12 = vor.u32 %v5026_v5, %v3834_v4  ;;  %v5202_v4 = vld [vmem:[#allocation11 + $0x72c] sm:$0xf0] }
 0x15d   :  { %2387 = vmatpush.bf16.msra.mxu2 %v3635_v21  ;;  %2409 = vmatpush.bf16.msrb.mxu0 %v4275_v22  ;;  %v3700_v21 = vld [vmem:[#allocation11 + $0xa8] sm:$0xf0] }
 0x15e   :  { %v5149_v22 = vld [vmem:[#allocation11 + $0x58c] sm:$0xf]  ;;  %v3703_v31 = vor.u32 %v4989_v20, %v3700_v21 }
 0x15f   :  { %2446 = vmatpush.bf16.msrb.mxu3 %v4087_v17  ;;  %2424 = vmatpush.bf16.msrb.mxu1 %v4467_v28  ;;  %v3735_v17 = vor.u32 %v4997_v6, %v3732_v7  ;;  %v5037_v26 = vld [vmem:[#allocation11 + $0x20c] sm:$0xf] }
 0x160   :  { %2362 = vmatmul.bf16.vlgmr.msra.gmra.mxu0 %v5659_v44  ;;  %2388 = vmatmul.bf16.vlgmr.msra.gmra.mxu2 %v5650_v53  ;;  %v3892_v27 = vld [vmem:[#allocation11 + $0x228] sm:$0xf0] }
 0x161   :  { %2432 = vmatpush.bf16.msrb.mxu2 %v3863_v25  ;;  %2410 = vmatpush.bf16.msrb.mxu0 %v4243_v36  ;;  %v4567_v25 = vor.u32 %v5205_v15, %v4564_v16  ;;  %v5197_v28 = vld [vmem:[#allocation11 + $0x70c] sm:$0xf]  ;;  %v3895_v40 = vor.u32 %v5037_v26, %v3892_v27  ;;  %v3802_v16 = vld [vmem:[#allocation11 + $0x150] sm:$0xf] }
 0x162   :  { %v4532_v29 = vld [vmem:[#allocation11 + $0x728] sm:$0xf0]  ;;  %v5226_v26 = vld [vmem:[#allocation11 + $0x7ec] sm:$0xf0] }
 0x163   :  { %2447 = vmatpush.bf16.msrb.mxu3 %v4055_v32  ;;  %2425 = vmatpush.bf16.msrb.mxu1 %v4435_v42  ;;  %v4343_v32 = vor.u32 %v5149_v22, %v4340_v23  ;;  %v4981_v36 = vld [vmem:[#allocation11 + $0x4c] sm:$0xf]  ;;  %v4535_v41 = vor.u32 %v5197_v28, %v4532_v29  ;;  %v4123_v42 = vor.u32 %v5098_v34, %v4122_v33  ;;  %v3994_v22 = vld [vmem:[#allocation11 + $0x2d0] sm:$0xf] }
 0x164   :  { %v5189_v43 = vld [vmem:[#allocation11 + $0x6cc] sm:$0xf]  ;;  %v5010_v33 = vld [vmem:[#allocation11 + $0x12c] sm:$0xf0] }
 0x165   :  { %2433 = vmatpush.bf16.msrb.mxu2 %v3831_v39  ;;  %2411 = vmatpush.bf16.msrb.mxu0 %v4211_v49  ;;  %v4308_v39 = vld [vmem:[#allocation11 + $0x568] sm:$0xf0] }
 0x166   :  { %v4500_v35 = vld [vmem:[#allocation11 + $0x6e8] sm:$0xf0]  ;;  %v4311_v46 = vor.u32 %v5141_v38, %v4308_v39  ;;  %v5058_v39 = vld [vmem:[#allocation11 + $0x2ac] sm:$0xf0] }
 0x167   :  { %2448 = vmatpush.bf16.msrb.mxu3 %v4023_v45  ;;  %2426 = vmatpush.bf16.msrb.mxu1 %v4403_v57  ;;  %v3671_v45 = vor.u32 %v4981_v36, %v3668_v37  ;;  %v4973_v49 = vld [vmem:[#allocation11 + $0xc] sm:$0xf]  ;;  %v4091_v57 = vor.u32 %v5090_v48, %v4090_v47  ;;  %v3962_v37 = vld [vmem:[#allocation11 + $0x290] sm:$0xf] }
 0x168   :  { %v3636_v50 = vld [vmem:[#allocation11 + $0x28] sm:$0xf0]  ;;  %v4378_v47 = vld [vmem:[#allocation11 + $0x5d0] sm:$0xf] }
 0x169   :  { %2434 = vmatpush.bf16.msrb.mxu2 %v3799_v54  ;;  %2412 = vmatpush.bf16.msrb.mxu0 %v4179_v63  ;;  %v5133_v51 = vld [vmem:[#allocation11 + $0x50c] sm:$0xf]  ;;  %v4503_v54 = vor.u32 %v5189_v43, %v4500_v35  ;;  %v5082_v63 = vld [vmem:[#allocation11 + $0x36c] sm:$0xf0] }
 0x16a   :  { %2427 = vmatmul.bf16.vlgmr.msrb.gmra.mxu1 %v5655_v19  ;;  %v4276_v52 = vld [vmem:[#allocation11 + $0x528] sm:$0xf0]  ;;  %v4059_v6 = vor.u32 %v5082_v63, %v4058_v62  ;;  %v5162_v48 = vld [vmem:[#allocation11 + $0x5ec] sm:$0xf0] }
 0x16b   :  { %2449 = vmatpush.bf16.msrb.mxu3 %v3991_v60  ;;  %2471 = vmatpush.bf16.msra.mxu1 %v4631_v61  ;;  %v5181_v58 = vld [vmem:[#allocation11 + $0x68c] sm:$0xf]  ;;  %v3639_v60 = vor.u32 %v4973_v49, %v3636_v50  ;;  %v4279_v61 = vor.u32 %v5133_v51, %v4276_v52  ;;  %v3963_v49 = vor.u32 %v5058_v39, %v3962_v37  ;;  %v3930_v52 = vld [vmem:[#allocation11 + $0x250] sm:$0xf]  ;;  %v5078_v37 = vld [vmem:[#allocation11 + $0x354] sm:$0xf] }
 0x16c   :  { %v4468_v59 = vld [vmem:[#allocation11 + $0x6a8] sm:$0xf0]  ;;  %v4379_v56 = vor.u32 %v5162_v48, %v4378_v47  ;;  %v5154_v62 = vld [vmem:[#allocation11 + $0x5ac] sm:$0xf0]  ;;  %v4060_v39 = vld [vmem:[#allocation11 + $0x370] sm:$0xf0] }
 0x16d   :  { %2435 = vmatpush.bf16.msrb.mxu2 %v3767_v3  ;;  %2413 = vmatpush.bf16.msrb.mxu0 %v4147_v13  ;;  %v5125_v1 = vld [vmem:[#allocation11 + $0x4cc] sm:$0xf]  ;;  %v4471_v3 = vor.u32 %v5181_v58, %v4468_v59  ;;  %v5210_v58 = vld [vmem:[#allocation11 + $0x76c] sm:$0xf0] }
 0x16e   :  { %v4244_v2 = vld [vmem:[#allocation11 + $0x4e8] sm:$0xf0]  ;;  %v3706_v59 = vld [vmem:[#allocation11 + $0x90] sm:$0xf] }
 0x16f   :  { %2450 = vmatpush.bf16.msrb.mxu3 %v3959_v10  ;;  %2472 = vmatpush.bf16.msra.mxu1 %v4599_v11  ;;  %v5173_v7 = vld [vmem:[#allocation11 + $0x64c] sm:$0xf]  ;;  %v4247_v9 = vor.u32 %v5125_v1, %v4244_v2  ;;  %v4026_v10 = vld [vmem:[#allocation11 + $0x310] sm:$0xf] }
 0x170   :  { %2414 = vmatmul.bf16.vlgmr.msrb.gmra.mxu0 %v5659_v44  ;;  %v4436_v8 = vld [vmem:[#allocation11 + $0x668] sm:$0xf0]  ;;  %v5074_v11 = vld [vmem:[#allocation11 + $0x32c] sm:$0xf0] }
 0x171   :  { %2436 = vmatpush.bf16.msrb.mxu2 %v3735_v17  ;;  %2458 = vmatpush.bf16.msra.mxu0 %v4375_v18  ;;  %v5117_v13 = vld [vmem:[#allocation11 + $0x48c] sm:$0xf]  ;;  %v4439_v15 = vor.u32 %v5173_v7, %v4436_v8  ;;  %v5018_v17 = vld [vmem:[#allocation11 + $0x16c] sm:$0xf0]  ;;  %v4027_v18 = vor.u32 %v5074_v11, %v4026_v10  ;;  %v5094_v7 = vld [vmem:[#allocation11 + $0x3d4] sm:$0xf] }
 0x172   :  { %v4212_v14 = vld [vmem:[#allocation11 + $0x4a8] sm:$0xf0]  ;;  %v3803_v27 = vor.u32 %v5018_v17, %v3802_v16  ;;  %v5042_v2 = vld [vmem:[#allocation11 + $0x22c] sm:$0xf0]  ;;  %v4124_v8 = vld [vmem:[#allocation11 + $0x3f0] sm:$0xf0] }
 0x173   :  { %2451 = vmatpush.bf16.msrb.mxu3 %v3927_v24  ;;  %2473 = vmatpush.bf16.msra.mxu1 %v4567_v25  ;;  %v5165_v20 = vld [vmem:[#allocation11 + $0x60c] sm:$0xf]  ;;  %v4215_v23 = vor.u32 %v5117_v13, %v4212_v14  ;;  %v5066_v24 = vld [vmem:[#allocation11 + $0x2ec] sm:$0xf0] }
 0x174   :  { %v4404_v21 = vld [vmem:[#allocation11 + $0x628] sm:$0xf0]  ;;  %v4634_v25 = vld [vmem:[#allocation11 + $0x7d0] sm:$0xf]  ;;  %v3995_v34 = vor.u32 %v5066_v24, %v3994_v22  ;;  %v4092_v22 = vld [vmem:[#allocation11 + $0x3b0] sm:$0xf0] }
 0x175   :  { %2437 = vmatpush.bf16.msrb.mxu2 %v3703_v31  ;;  %2459 = vmatpush.bf16.msra.mxu0 %v4343_v32  ;;  %v5109_v28 = vld [vmem:[#allocation11 + $0x44c] sm:$0xf]  ;;  %v4407_v31 = vor.u32 %v5165_v20, %v4404_v21  ;;  %v3770_v32 = vld [vmem:[#allocation11 + $0x110] sm:$0xf]  ;;  %v4635_v36 = vor.u32 %v5226_v26, %v4634_v25  ;;  %v5086_v21 = vld [vmem:[#allocation11 + $0x394] sm:$0xf] }
 0x176   :  { %v4180_v29 = vld [vmem:[#allocation11 + $0x468] sm:$0xf0]  ;;  %v4986_v10 = vld [vmem:[#allocation11 + $0x6c] sm:$0xf0] }
 0x177   :  { %2452 = vmatpush.bf16.msrb.mxu3 %v3895_v40  ;;  %2474 = vmatpush.bf16.msra.mxu1 %v4535_v41  ;;  %v4183_v38 = vor.u32 %v5109_v28, %v4180_v29  ;;  %v4602_v40 = vld [vmem:[#allocation11 + $0x790] sm:$0xf]  ;;  %v5101_v43 = vld [vmem:[#allocation11 + $0x40c] sm:$0xf]  ;;  %v3868_v28 = vld [vmem:[#allocation11 + $0x1f0] sm:$0xf0] }
 0x178   :  { %v5218_v41 = vld [vmem:[#allocation11 + $0x7ac] sm:$0xf0]  ;;  %v4148_v35 = vld [vmem:[#allocation11 + $0x428] sm:$0xf0] }
 0x179   :  { %2438 = vmatpush.bf16.msrb.mxu2 %v3671_v45  ;;  %2460 = vmatpush.bf16.msra.mxu0 %v4311_v46  ;;  %v3738_v45 = vld [vmem:[#allocation11 + $0xd0] sm:$0xf]  ;;  %v4603_v50 = vor.u32 %v5218_v41, %v4602_v40  ;;  %v4151_v51 = vor.u32 %v5101_v43, %v4148_v35  ;;  %v3836_v43 = vld [vmem:[#allocation11 + $0x1b0] sm:$0xf0] }
 0x17a   :  { %2453 = vmatmul.bf16.vlgmr.msrb.gmra.mxu3 %v5647_v30  ;;  %v5002_v46 = vld [vmem:[#allocation11 + $0xec] sm:$0xf0] }
 0x17b   :  { %2497 = vmatpush.bf16.msra.mxu3 %v4123_v42  ;;  %2475 = vmatpush.bf16.msra.mxu1 %v4503_v54  ;;  %v3771_v42 = vor.u32 %v5010_v33, %v3770_v32  ;;  %v5050_v54 = vld [vmem:[#allocation11 + $0x26c] sm:$0xf0]  ;;  %v3739_v55 = vor.u32 %v5002_v46, %v3738_v45  ;;  %v4063_v45 = vor.u32 %v5078_v37, %v4060_v39  ;;  %v4348_v37 = vld [vmem:[#allocation11 + $0x5b0] sm:$0xf0] }
 0x17c   :  { %v3931_v63 = vor.u32 %v5050_v54, %v3930_v52  ;;  %v4314_v11 = vld [vmem:[#allocation11 + $0x550] sm:$0xf]  ;;  %v5038_v39 = vld [vmem:[#allocation11 + $0x214] sm:$0xf] }
 0x17d   :  { %2439 = vmatpush.bf16.msrb.mxu2 %v3639_v60  ;;  %2461 = vmatpush.bf16.msra.mxu0 %v4279_v61  ;;  %v4994_v60 = vld [vmem:[#allocation11 + $0xac] sm:$0xf0] }
 0x17e   :  { %v4346_v61 = vld [vmem:[#allocation11 + $0x590] sm:$0xf]  ;;  %v3707_v5 = vor.u32 %v4994_v60, %v3706_v59 }
 0x17f   :  { %2498 = vmatpush.bf16.msra.mxu3 %v4091_v57  ;;  %2476 = vmatpush.bf16.msra.mxu1 %v4471_v3  ;;  %v4570_v57 = vld [vmem:[#allocation11 + $0x750] sm:$0xf] }
 0x180   :  { %2440 = vmatmul.bf16.vlgmr.msrb.gmra.mxu2 %v5650_v53  ;;  %v4571_v1 = vor.u32 %v5210_v58, %v4570_v57  ;;  %v4538_v3 = vld [vmem:[#allocation11 + $0x710] sm:$0xf] }
 0x181   :  { %2484 = vmatpush.bf16.msra.mxu2 %v3867_v0  ;;  %2462 = vmatpush.bf16.msra.mxu0 %v4247_v9  ;;  %v3898_v0 = vld [vmem:[#allocation11 + $0x210] sm:$0xf]  ;;  %v4539_v14 = vor.u32 %v5202_v4, %v4538_v3 }
 0x182   :  { %v3674_v9 = vld [vmem:[#allocation11 + $0x50] sm:$0xf]  ;;  %v3899_v13 = vor.u32 %v5042_v2, %v3898_v0  ;;  %v4636_v2 = vld [vmem:[#allocation11 + $0x7f0] sm:$0xf0] }
 0x183   :  { %2499 = vmatpush.bf16.msra.mxu3 %v4059_v6  ;;  %2477 = vmatpush.bf16.msra.mxu1 %v4439_v15  ;;  %v4347_v6 = vor.u32 %v5154_v62, %v4346_v61  ;;  %v4127_v15 = vor.u32 %v5094_v7, %v4124_v8  ;;  %v4506_v16 = vld [vmem:[#allocation11 + $0x6d0] sm:$0xf]  ;;  %v5062_v62 = vld [vmem:[#allocation11 + $0x2d4] sm:$0xf] }
 0x184   :  { %v5194_v17 = vld [vmem:[#allocation11 + $0x6ec] sm:$0xf0] }
 0x185   :  { %2485 = vmatpush.bf16.msra.mxu2 %v3835_v12  ;;  %2463 = vmatpush.bf16.msra.mxu0 %v4215_v23  ;;  %v5146_v12 = vld [vmem:[#allocation11 + $0x56c] sm:$0xf0]  ;;  %v4507_v29 = vor.u32 %v5194_v17, %v4506_v16 }
 0x186   :  { %v4315_v20 = vor.u32 %v5146_v12, %v4314_v11  ;;  %v3642_v23 = vld [vmem:[#allocation11 + $0x10] sm:$0xf]  ;;  %v3964_v11 = vld [vmem:[#allocation11 + $0x2b0] sm:$0xf0] }
 0x187   :  { %2500 = vmatpush.bf16.msra.mxu3 %v4027_v18  ;;  %2478 = vmatpush.bf16.msra.mxu1 %v4407_v31  ;;  %v3675_v18 = vor.u32 %v4986_v10, %v3674_v9  ;;  %v4978_v24 = vld [vmem:[#allocation11 + $0x2c] sm:$0xf0]  ;;  %v4095_v31 = vor.u32 %v5086_v21, %v4092_v22  ;;  %v5054_v10 = vld [vmem:[#allocation11 + $0x294] sm:$0xf] }
 0x188   :  { %v4282_v25 = vld [vmem:[#allocation11 + $0x510] sm:$0xf]  ;;  %v3643_v32 = vor.u32 %v4978_v24, %v3642_v23  ;;  %v5158_v21 = vld [vmem:[#allocation11 + $0x5d4] sm:$0xf]  ;;  %v3967_v23 = vor.u32 %v5054_v10, %v3964_v11  ;;  %v4066_v10 = vld [vmem:[#allocation11 + $0x358] sm:$0xf] }
 0x189   :  { %2486 = vmatpush.bf16.msra.mxu2 %v3803_v27  ;;  %2464 = vmatpush.bf16.msra.mxu0 %v4183_v38  ;;  %v5138_v26 = vld [vmem:[#allocation11 + $0x52c] sm:$0xf0]  ;;  %v5030_v27 = vld [vmem:[#allocation11 + $0x1d4] sm:$0xf] }
 0x18a   :  { %2479 = vmatmul.bf16.vlgmr.msra.gmra.mxu1 %v5655_v19  ;;  %v4283_v33 = vor.u32 %v5138_v26, %v4282_v25  ;;  %v3871_v38 = vor.u32 %v5030_v27, %v3868_v28  ;;  %v4250_v40 = vld [vmem:[#allocation11 + $0x4d0] sm:$0xf]  ;;  %v4380_v22 = vld [vmem:[#allocation11 + $0x5f0] sm:$0xf0] }
 0x18b   :  { %2501 = vmatpush.bf16.msra.mxu3 %v3995_v34  ;;  %2523 = vmatpush.bf16.msrb.mxu1 %v4635_v36  ;;  %v4474_v34 = vld [vmem:[#allocation11 + $0x690] sm:$0xf]  ;;  %v5046_v27 = vld [vmem:[#allocation11 + $0x254] sm:$0xf] }
 0x18c   :  { %v5186_v36 = vld [vmem:[#allocation11 + $0x6ac] sm:$0xf0]  ;;  %v3932_v28 = vld [vmem:[#allocation11 + $0x270] sm:$0xf0] }
 0x18d   :  { %2487 = vmatpush.bf16.msra.mxu2 %v3771_v42  ;;  %2465 = vmatpush.bf16.msra.mxu0 %v4151_v51  ;;  %v5130_v41 = vld [vmem:[#allocation11 + $0x4ec] sm:$0xf0]  ;;  %v5022_v42 = vld [vmem:[#allocation11 + $0x194] sm:$0xf]  ;;  %v4475_v35 = vor.u32 %v5186_v36, %v4474_v34 }
 0x18e   :  { %v4251_v46 = vor.u32 %v5130_v41, %v4250_v40  ;;  %v4442_v47 = vld [vmem:[#allocation11 + $0x650] sm:$0xf]  ;;  %v4028_v51 = vld [vmem:[#allocation11 + $0x330] sm:$0xf0] }
 0x18f   :  { %2502 = vmatpush.bf16.msra.mxu3 %v3963_v49  ;;  %2524 = vmatpush.bf16.msrb.mxu1 %v4603_v50  ;;  %v5178_v48 = vld [vmem:[#allocation11 + $0x66c] sm:$0xf0]  ;;  %v5070_v49 = vld [vmem:[#allocation11 + $0x314] sm:$0xf]  ;;  %v3839_v50 = vor.u32 %v5022_v42, %v3836_v43 }
 0x190   :  { %2466 = vmatmul.bf16.vlgmr.msra.gmra.mxu0 %v5659_v44  ;;  %v4218_v52 = vld [vmem:[#allocation11 + $0x490] sm:$0xf]  ;;  %v4443_v57 = vor.u32 %v5178_v48, %v4442_v47  ;;  %v4031_v59 = vor.u32 %v5070_v49, %v4028_v51  ;;  %v3708_v34 = vld [vmem:[#allocation11 + $0xb0] sm:$0xf0]  ;;  %v5099_v47 = vld [vmem:[#allocation11 + $0x3f4] sm:$0xf0] }
 0x191   :  { %2488 = vmatpush.bf16.msra.mxu2 %v3739_v55  ;;  %2510 = vmatpush.bf16.msrb.mxu0 %v4379_v56  ;;  %v5122_v54 = vld [vmem:[#allocation11 + $0x4ac] sm:$0xf0]  ;;  %v5014_v55 = vld [vmem:[#allocation11 + $0x154] sm:$0xf] }
 0x192   :  { %v3804_v56 = vld [vmem:[#allocation11 + $0x170] sm:$0xf0]  ;;  %v4410_v58 = vld [vmem:[#allocation11 + $0x610] sm:$0xf]  ;;  %v4219_v60 = vor.u32 %v5122_v54, %v4218_v52 }
 0x193   :  { %2503 = vmatpush.bf16.msra.mxu3 %v3931_v63  ;;  %2525 = vmatpush.bf16.msrb.mxu1 %v4571_v1  ;;  %v5170_v61 = vld [vmem:[#allocation11 + $0x62c] sm:$0xf0]  ;;  %v3996_v63 = vld [vmem:[#allocation11 + $0x2f0] sm:$0xf0]  ;;  %v3807_v0 = vor.u32 %v5014_v55, %v3804_v56 }
 0x194   :  { %v5222_v1 = vld [vmem:[#allocation11 + $0x7d4] sm:$0xf]  ;;  %v4186_v3 = vld [vmem:[#allocation11 + $0x450] sm:$0xf]  ;;  %v4411_v7 = vor.u32 %v5170_v61, %v4410_v58  ;;  %v3999_v8 = vor.u32 %v5062_v62, %v3996_v63  ;;  %v5091_v61 = vld [vmem:[#allocation11 + $0x3b4] sm:$0xf0] }
 0x195   :  { %2489 = vmatpush.bf16.msra.mxu2 %v3707_v5  ;;  %2511 = vmatpush.bf16.msrb.mxu0 %v4347_v6  ;;  %v5114_v4 = vld [vmem:[#allocation11 + $0x46c] sm:$0xf0]  ;;  %v5006_v5 = vld [vmem:[#allocation11 + $0x114] sm:$0xf]  ;;  %v4639_v9 = vor.u32 %v5222_v1, %v4636_v2  ;;  %v3874_v2 = vld [vmem:[#allocation11 + $0x1d8] sm:$0xf] }
 0x196   :  { %v3772_v6 = vld [vmem:[#allocation11 + $0x130] sm:$0xf0]  ;;  %v4187_v12 = vor.u32 %v5114_v4, %v4186_v3  ;;  %v4154_v16 = vld [vmem:[#allocation11 + $0x410] sm:$0xf]  ;;  %v5035_v3 = vld [vmem:[#allocation11 + $0x1f4] sm:$0xf0] }
 0x197   :  { %2504 = vmatpush.bf16.msra.mxu3 %v3899_v13  ;;  %2526 = vmatpush.bf16.msrb.mxu1 %v4539_v14  ;;  %v3775_v13 = vor.u32 %v5006_v5, %v3772_v6  ;;  %v5214_v14 = vld [vmem:[#allocation11 + $0x794] sm:$0xf]  ;;  %v5106_v17 = vld [vmem:[#allocation11 + $0x42c] sm:$0xf0]  ;;  %v3875_v11 = vor.u32 %v5035_v3, %v3874_v2 }
 0x198   :  { %v4155_v25 = vor.u32 %v5106_v17, %v4154_v16  ;;  %v5150_v36 = vld [vmem:[#allocation11 + $0x594] sm:$0xf]  ;;  %v5027_v16 = vld [vmem:[#allocation11 + $0x1b4] sm:$0xf0] }
 0x199   :  { %2490 = vmatpush.bf16.msra.mxu2 %v3675_v18  ;;  %2512 = vmatpush.bf16.msrb.mxu0 %v4315_v20  ;;  %v4998_v18 = vld [vmem:[#allocation11 + $0xd4] sm:$0xf] }
 0x19a   :  { %2505 = vmatmul.bf16.vlgmr.msra.gmra.mxu3 %v5647_v30  ;;  %v3740_v20 = vld [vmem:[#allocation11 + $0xf0] sm:$0xf0] }
 0x19b   :  { %2549 = vmatpush.bf16.msrb.mxu3 %v4127_v15  ;;  %2527 = vmatpush.bf16.msrb.mxu1 %v4507_v29  ;;  %v4604_v15 = vld [vmem:[#allocation11 + $0x7b0] sm:$0xf0]  ;;  %v3743_v26 = vor.u32 %v4998_v18, %v3740_v20 }
 0x19c   :  { %v4607_v24 = vor.u32 %v5214_v14, %v4604_v15  ;;  %v5206_v29 = vld [vmem:[#allocation11 + $0x754] sm:$0xf]  ;;  %v3842_v15 = vld [vmem:[#allocation11 + $0x198] sm:$0xf] }
 0x19d   :  { %2491 = vmatpush.bf16.msra.mxu2 %v3643_v32  ;;  %2513 = vmatpush.bf16.msrb.mxu0 %v4283_v33  ;;  %v4572_v32 = vld [vmem:[#allocation11 + $0x770] sm:$0xf0] }
 0x19e   :  { %v4990_v33 = vld [vmem:[#allocation11 + $0x94] sm:$0xf]  ;;  %v4575_v40 = vor.u32 %v5206_v29, %v4572_v32  ;;  %v5019_v29 = vld [vmem:[#allocation11 + $0x174] sm:$0xf0] }
 0x19f   :  { %2550 = vmatpush.bf16.msrb.mxu3 %v4095_v31  ;;  %2528 = vmatpush.bf16.msrb.mxu1 %v4475_v35  ;;  %v4383_v31 = vor.u32 %v5158_v21, %v4380_v22  ;;  %v3711_v41 = vor.u32 %v4990_v33, %v3708_v34  ;;  %v3900_v42 = vld [vmem:[#allocation11 + $0x230] sm:$0xf0] }
 0x1a0   :  { %2492 = vmatmul.bf16.vlgmr.msra.gmra.mxu2 %v5650_v53  ;;  %v5198_v43 = vld [vmem:[#allocation11 + $0x714] sm:$0xf]  ;;  %v3903_v52 = vor.u32 %v5038_v39, %v3900_v42 }
 0x1a1   :  { %2536 = vmatpush.bf16.msrb.mxu2 %v3871_v38  ;;  %2514 = vmatpush.bf16.msrb.mxu0 %v4251_v46  ;;  %v3935_v38 = vor.u32 %v5046_v27, %v3932_v28  ;;  %v4540_v35 = vld [vmem:[#allocation11 + $0x730] sm:$0xf0]  ;;  %v4130_v46 = vld [vmem:[#allocation11 + $0x3d8] sm:$0xf] }
 0x1a2   :  { %v4982_v48 = vld [vmem:[#allocation11 + $0x54] sm:$0xf]  ;;  %v4543_v54 = vor.u32 %v5198_v43, %v4540_v35  ;;  %v4131_v55 = vor.u32 %v5099_v47, %v4130_v46  ;;  %v3810_v28 = vld [vmem:[#allocation11 + $0x158] sm:$0xf] }
 0x1a3   :  { %2551 = vmatpush.bf16.msrb.mxu3 %v4063_v45  ;;  %2529 = vmatpush.bf16.msrb.mxu1 %v4443_v57  ;;  %v4351_v45 = vor.u32 %v5150_v36, %v4348_v37  ;;  %v3676_v49 = vld [vmem:[#allocation11 + $0x70] sm:$0xf0]  ;;  %v4002_v37 = vld [vmem:[#allocation11 + $0x2d8] sm:$0xf]  ;;  %v3811_v39 = vor.u32 %v5019_v29, %v3810_v28  ;;  %v5095_v28 = vld [vmem:[#allocation11 + $0x3dc] sm:$0xf] }
 0x1a4   :  { %v4316_v51 = vld [vmem:[#allocation11 + $0x570] sm:$0xf0]  ;;  %v3679_v58 = vor.u32 %v4982_v48, %v3676_v49  ;;  %v3778_v35 = vld [vmem:[#allocation11 + $0x118] sm:$0xf]  ;;  %v4132_v29 = vld [vmem:[#allocation11 + $0x3f8] sm:$0xf0] }
 0x1a5   :  { %2537 = vmatpush.bf16.msrb.mxu2 %v3839_v50  ;;  %2515 = vmatpush.bf16.msrb.mxu0 %v4219_v60  ;;  %v5142_v50 = vld [vmem:[#allocation11 + $0x554] sm:$0xf]  ;;  %v4098_v60 = vld [vmem:[#allocation11 + $0x398] sm:$0xf] }
 0x1a6   :  { %v5190_v56 = vld [vmem:[#allocation11 + $0x6d4] sm:$0xf]  ;;  %v4099_v5 = vor.u32 %v5091_v61, %v4098_v60  ;;  %v3746_v60 = vld [vmem:[#allocation11 + $0xd8] sm:$0xf] }
 0x1a7   :  { %2552 = vmatpush.bf16.msrb.mxu3 %v4031_v59  ;;  %2530 = vmatpush.bf16.msrb.mxu1 %v4411_v7  ;;  %v4508_v57 = vld [vmem:[#allocation11 + $0x6f0] sm:$0xf0]  ;;  %v4319_v59 = vor.u32 %v5142_v50, %v4316_v51  ;;  %v3970_v50 = vld [vmem:[#allocation11 + $0x298] sm:$0xf] }
 0x1a8   :  { %v4974_v62 = vld [vmem:[#allocation11 + $0x14] sm:$0xf]  ;;  %v4511_v4 = vor.u32 %v5190_v56, %v4508_v57  ;;  %v5059_v51 = vld [vmem:[#allocation11 + $0x2b4] sm:$0xf0] }
 0x1a9   :  { %2538 = vmatpush.bf16.msrb.mxu2 %v3807_v0  ;;  %2516 = vmatpush.bf16.msrb.mxu0 %v4187_v12  ;;  %v3644_v63 = vld [vmem:[#allocation11 + $0x30] sm:$0xf0]  ;;  %v5083_v12 = vld [vmem:[#allocation11 + $0x374] sm:$0xf0] }
 0x1aa   :  { %2531 = vmatmul.bf16.vlgmr.msrb.gmra.mxu1 %v5655_v19  ;;  %v5134_v0 = vld [vmem:[#allocation11 + $0x514] sm:$0xf]  ;;  %v3647_v6 = vor.u32 %v4974_v62, %v3644_v63  ;;  %v4067_v18 = vor.u32 %v5083_v12, %v4066_v10  ;;  %v4610_v56 = vld [vmem:[#allocation11 + $0x798] sm:$0xf] }
 0x1ab   :  { %2553 = vmatpush.bf16.msrb.mxu3 %v3999_v8  ;;  %2575 = vmatpush.bf16.msra.mxu1 %v4639_v9  ;;  %v4284_v1 = vld [vmem:[#allocation11 + $0x530] sm:$0xf0]  ;;  %v5219_v57 = vld [vmem:[#allocation11 + $0x7b4] sm:$0xf0] }
 0x1ac   :  { %v4287_v7 = vor.u32 %v5134_v0, %v4284_v1  ;;  %v5182_v8 = vld [vmem:[#allocation11 + $0x694] sm:$0xf]  ;;  %v5003_v61 = vld [vmem:[#allocation11 + $0xf4] sm:$0xf0]  ;;  %v3971_v1 = vor.u32 %v5059_v51, %v3970_v50  ;;  %v4611_v2 = vor.u32 %v5219_v57, %v4610_v56 }
 0x1ad   :  { %2539 = vmatpush.bf16.msrb.mxu2 %v3775_v13  ;;  %2517 = vmatpush.bf16.msrb.mxu0 %v4155_v25  ;;  %v4476_v9 = vld [vmem:[#allocation11 + $0x6b0] sm:$0xf0]  ;;  %v5075_v25 = vld [vmem:[#allocation11 + $0x334] sm:$0xf0] }
 0x1ae   :  { %v5126_v13 = vld [vmem:[#allocation11 + $0x4d4] sm:$0xf]  ;;  %v4479_v17 = vor.u32 %v5182_v8, %v4476_v9  ;;  %v4386_v63 = vld [vmem:[#allocation11 + $0x5d8] sm:$0xf] }
 0x1af   :  { %2554 = vmatpush.bf16.msrb.mxu3 %v3967_v23  ;;  %2576 = vmatpush.bf16.msra.mxu1 %v4607_v24  ;;  %v4252_v14 = vld [vmem:[#allocation11 + $0x4f0] sm:$0xf0]  ;;  %v4034_v23 = vld [vmem:[#allocation11 + $0x318] sm:$0xf]  ;;  %v3843_v24 = vor.u32 %v5027_v16, %v3842_v15 }
 0x1b0   :  { %2518 = vmatmul.bf16.vlgmr.msrb.gmra.mxu0 %v5659_v44  ;;  %v4255_v20 = vor.u32 %v5126_v13, %v4252_v14  ;;  %v5174_v21 = vld [vmem:[#allocation11 + $0x654] sm:$0xf]  ;;  %v4035_v33 = vor.u32 %v5075_v25, %v4034_v23  ;;  %v5163_v0 = vld [vmem:[#allocation11 + $0x5f4] sm:$0xf0] }
 0x1b1   :  { %2540 = vmatpush.bf16.msrb.mxu2 %v3743_v26  ;;  %2562 = vmatpush.bf16.msra.mxu0 %v4383_v31  ;;  %v4444_v22 = vld [vmem:[#allocation11 + $0x670] sm:$0xf0]  ;;  %v4387_v9 = vor.u32 %v5163_v0, %v4386_v63  ;;  %v5211_v10 = vld [vmem:[#allocation11 + $0x774] sm:$0xf0]  ;;  %v5079_v0 = vld [vmem:[#allocation11 + $0x35c] sm:$0xf] }
 0x1b2   :  { %v5118_v26 = vld [vmem:[#allocation11 + $0x494] sm:$0xf]  ;;  %v4447_v31 = vor.u32 %v5174_v21, %v4444_v22  ;;  %v4995_v12 = vld [vmem:[#allocation11 + $0xb4] sm:$0xf0] }
 0x1b3   :  { %2555 = vmatpush.bf16.msrb.mxu3 %v3935_v38  ;;  %2577 = vmatpush.bf16.msra.mxu1 %v4575_v40  ;;  %v4220_v27 = vld [vmem:[#allocation11 + $0x4b0] sm:$0xf0]  ;;  %v5067_v38 = vld [vmem:[#allocation11 + $0x2f4] sm:$0xf0] }
 0x1b4   :  { %v5166_v32 = vld [vmem:[#allocation11 + $0x614] sm:$0xf]  ;;  %v4223_v34 = vor.u32 %v5118_v26, %v4220_v27  ;;  %v4642_v40 = vld [vmem:[#allocation11 + $0x7d8] sm:$0xf]  ;;  %v4003_v48 = vor.u32 %v5067_v38, %v4002_v37  ;;  %v4135_v38 = vor.u32 %v5095_v28, %v4132_v29 }
 0x1b5   :  { %2541 = vmatpush.bf16.msrb.mxu2 %v3711_v41  ;;  %2563 = vmatpush.bf16.msra.mxu0 %v4351_v45  ;;  %v4412_v36 = vld [vmem:[#allocation11 + $0x630] sm:$0xf0]  ;;  %v5227_v41 = vld [vmem:[#allocation11 + $0x7f4] sm:$0xf0] }
 0x1b6   :  { %v5110_v42 = vld [vmem:[#allocation11 + $0x454] sm:$0xf]  ;;  %v5011_v45 = vld [vmem:[#allocation11 + $0x134] sm:$0xf0]  ;;  %v4415_v46 = vor.u32 %v5166_v32, %v4412_v36  ;;  %v4643_v49 = vor.u32 %v5227_v41, %v4642_v40 }
 0x1b7   :  { %2556 = vmatpush.bf16.msrb.mxu3 %v3903_v52  ;;  %2578 = vmatpush.bf16.msra.mxu1 %v4543_v54  ;;  %v4188_v43 = vld [vmem:[#allocation11 + $0x470] sm:$0xf0]  ;;  %v5679_v52 = vld [vmem:[#allocation13] sm:$0xff]  ;;  %v4354_v14 = vld [vmem:[#allocation11 + $0x598] sm:$0xf] }
 0x1b8   :  { %v4191_v54 = vor.u32 %v5110_v42, %v4188_v43  ;;  %v980_v62 = vperm.slane %v5679_v52, 0  ;;  %v5155_v15 = vld [vmem:[#allocation11 + $0x5b4] sm:$0xf0] }
 0x1b9   :  { %2542 = vmatpush.bf16.msrb.mxu2 %v3679_v58  ;;  %2564 = vmatpush.bf16.msra.mxu0 %v4319_v59  ;;  %v5102_v58 = vld [vmem:[#allocation11 + $0x414] sm:$0xf]  ;;  %v5043_v22 = vld [vmem:[#allocation11 + $0x234] sm:$0xf0]  ;;  %v4355_v27 = vor.u32 %v5155_v15, %v4354_v14  ;;  %v5071_v14 = vld [vmem:[#allocation11 + $0x31c] sm:$0xf] }
 0x1ba   :  { %2557 = vmatmul.bf16.vlgmr.msrb.gmra.mxu3 %v5647_v30  ;;  %v4156_v59 = vld [vmem:[#allocation11 + $0x430] sm:$0xf0]  ;;  %v4546_v23 = vld [vmem:[#allocation11 + $0x718] sm:$0xf] }
 0x1bb   :  { %2601 = vmatpush.bf16.msra.mxu3 %v4131_v55  ;;  %2579 = vmatpush.bf16.msra.mxu1 %v4511_v4  ;;  %v3779_v55 = vor.u32 %v5011_v45, %v3778_v35  ;;  %v4159_v3 = vor.u32 %v5102_v58, %v4156_v59  ;;  %v3747_v4 = vor.u32 %v5003_v61, %v3746_v60  ;;  %v4987_v32 = vld [vmem:[#allocation11 + $0x74] sm:$0xf0]  ;;  %v5087_v35 = vld [vmem:[#allocation11 + $0x39c] sm:$0xf] }
 0x1bc   :  { %v5195_v40 = vld [vmem:[#allocation11 + $0x6f4] sm:$0xf0]  ;;  %v4100_v45 = vld [vmem:[#allocation11 + $0x3b8] sm:$0xf0] }
 0x1bd   :  { %2543 = vmatpush.bf16.msrb.mxu2 %v3647_v6  ;;  %2565 = vmatpush.bf16.msra.mxu0 %v4287_v7  ;;  %v2298_v47 = vpop.f32.mrf.mxu3  ;;  %v5051_v6 = vld [vmem:[#allocation11 + $0x274] sm:$0xf0]  ;;  %v4103_v58 = vor.u32 %v5087_v35, %v4100_v45  ;;  %v5055_v45 = vld [vmem:[#allocation11 + $0x29c] sm:$0xf] }
 0x1be   :  { %v4578_v7 = vld [vmem:[#allocation11 + $0x758] sm:$0xf] }
 0x1bf   :  { %2602 = vmatpush.bf16.msra.mxu3 %v4099_v5  ;;  %2580 = vmatpush.bf16.msra.mxu1 %v4479_v17  ;;  %v3938_v5 = vld [vmem:[#allocation11 + $0x258] sm:$0xf] }
 0x1c0   :  { %2544 = vmatmul.bf16.vlgmr.msrb.gmra.mxu2 %v5650_v53  ;;  %v3939_v17 = vor.u32 %v5051_v6, %v3938_v5  ;;  %v5187_v63 = vld [vmem:[#allocation11 + $0x6b4] sm:$0xf0]  ;;  %v5023_v6 = vld [vmem:[#allocation11 + $0x19c] sm:$0xf] }
 0x1c1   :  { %2588 = vmatpush.bf16.msra.mxu2 %v3875_v11  ;;  %2566 = vmatpush.bf16.msra.mxu0 %v4255_v20  ;;  %v3714_v11 = vld [vmem:[#allocation11 + $0x98] sm:$0xf]  ;;  %v4579_v20 = vor.u32 %v5211_v10, %v4578_v7  ;;  %v3844_v7 = vld [vmem:[#allocation11 + $0x1b8] sm:$0xf0] }
 0x1c2   :  { %v3715_v21 = vor.u32 %v4995_v12, %v3714_v11  ;;  %v5131_v5 = vld [vmem:[#allocation11 + $0x4f4] sm:$0xf0]  ;;  %v3847_v15 = vor.u32 %v5023_v6, %v3844_v7  ;;  %v5207_v6 = vld [vmem:[#allocation11 + $0x75c] sm:$0xf] }
 0x1c3   :  { %2603 = vmatpush.bf16.msra.mxu3 %v4067_v18  ;;  %2581 = vmatpush.bf16.msra.mxu1 %v4447_v31  ;;  %v2285_v8 = vpop.f32.mrf.mxu2  ;;  %v3906_v18 = vld [vmem:[#allocation11 + $0x218] sm:$0xf] }
 0x1c4   :  { %v2286_v13 = vadd.f32 %v2285_v8, %v980_v62  ;;  %v3682_v31 = vld [vmem:[#allocation11 + $0x58] sm:$0xf]  ;;  %v3907_v36 = vor.u32 %v5043_v22, %v3906_v18  ;;  %v5015_v22 = vld [vmem:[#allocation11 + $0x15c] sm:$0xf] }
 0x1c5   :  { %2589 = vmatpush.bf16.msra.mxu2 %v3843_v24  ;;  %2567 = vmatpush.bf16.msra.mxu0 %v4223_v34  ;;  %v2300_v16 = vpop.f32.mrf.mxu3  ;;  %v5203_v24 = vld [vmem:[#allocation11 + $0x734] sm:$0xf0]  ;;  %v3683_v42 = vor.u32 %v4987_v32, %v3682_v31  ;;  %v5063_v31 = vld [vmem:[#allocation11 + $0x2dc] sm:$0xf] }
 0x1c6   :  { %v2299_v25 = vadd.f32 %v2298_v47, %v2286_v13  ;;  %v5147_v34 = vld [vmem:[#allocation11 + $0x574] sm:$0xf0]  ;;  %v4547_v37 = vor.u32 %v5203_v24, %v4546_v23  ;;  %v4036_v16 = vld [vmem:[#allocation11 + $0x338] sm:$0xf0] }
 0x1c7   :  { %2604 = vmatpush.bf16.msra.mxu3 %v4035_v33  ;;  %2582 = vmatpush.bf16.msra.mxu1 %v4415_v46  ;;  %v2324_v26 = vpop.f32.mrf.mxu1  ;;  %v4322_v33 = vld [vmem:[#allocation11 + $0x558] sm:$0xf]  ;;  %v3812_v23 = vld [vmem:[#allocation11 + $0x178] sm:$0xf0] }
 0x1c8   :  { %v4323_v43 = vor.u32 %v5147_v34, %v4322_v33  ;;  %v3650_v46 = vld [vmem:[#allocation11 + $0x18] sm:$0xf]  ;;  %v4004_v32 = vld [vmem:[#allocation11 + $0x2f8] sm:$0xf0]  ;;  %v3815_v33 = vor.u32 %v5015_v22, %v3812_v23 }
 0x1c9   :  { %2590 = vmatpush.bf16.msra.mxu2 %v3811_v39  ;;  %2568 = vmatpush.bf16.msra.mxu0 %v4191_v54  ;;  %v4514_v39 = vld [vmem:[#allocation11 + $0x6d8] sm:$0xf]  ;;  %v5031_v54 = vld [vmem:[#allocation11 + $0x1dc] sm:$0xf] }
 0x1ca   :  { %2583 = vmatmul.bf16.vlgmr.msra.gmra.mxu1 %v5655_v19  ;;  %v4979_v47 = vld [vmem:[#allocation11 + $0x34] sm:$0xf0]  ;;  %v4515_v57 = vor.u32 %v5195_v40, %v4514_v39  ;;  %v5223_v34 = vld [vmem:[#allocation11 + $0x7dc] sm:$0xf] }
 0x1cb   :  { %2605 = vmatpush.bf16.msra.mxu3 %v4003_v48  ;;  %2627 = vmatpush.bf16.msrb.mxu1 %v4643_v49  ;;  %v2287_v41 = vpop.f32.mrf.mxu2  ;;  %v4290_v48 = vld [vmem:[#allocation11 + $0x518] sm:$0xf]  ;;  %v3651_v60 = vor.u32 %v4979_v47, %v3650_v46  ;;  %v5007_v39 = vld [vmem:[#allocation11 + $0x11c] sm:$0xf] }
 0x1cc   :  { %v5139_v49 = vld [vmem:[#allocation11 + $0x534] sm:$0xf0]  ;;  %v3780_v40 = vld [vmem:[#allocation11 + $0x138] sm:$0xf0] }
 0x1cd   :  { %2591 = vmatpush.bf16.msra.mxu2 %v3779_v55  ;;  %2569 = vmatpush.bf16.msra.mxu0 %v4159_v3  ;;  %v2311_v50 = vpop.f32.mrf.mxu0  ;;  %v5684_v51 = vpop.f32.mrf.mxu3  ;;  %v3876_v55 = vld [vmem:[#allocation11 + $0x1f8] sm:$0xf0]  ;;  %v4291_v61 = vor.u32 %v5139_v49, %v4290_v48  ;;  %v4482_v62 = vld [vmem:[#allocation11 + $0x698] sm:$0xf]  ;;  %v3783_v48 = vor.u32 %v5007_v39, %v3780_v40 }
 0x1ce   :  { %v2312_v56 = vadd.f32 %v2311_v50, %v2299_v25  ;;  %v4068_v3 = vld [vmem:[#allocation11 + $0x378] sm:$0xf0]  ;;  %v4483_v8 = vor.u32 %v5187_v63, %v4482_v62  ;;  %v4450_v12 = vld [vmem:[#allocation11 + $0x658] sm:$0xf] }
 0x1cf   :  { %2606 = vmatpush.bf16.msra.mxu3 %v3971_v1  ;;  %2628 = vmatpush.bf16.msrb.mxu1 %v4611_v2  ;;  %v2326_v59 = vpop.f32.mrf.mxu1  ;;  %v3879_v2 = vor.u32 %v5031_v54, %v3876_v55  ;;  %v4071_v10 = vor.u32 %v5079_v0, %v4068_v3  ;;  %v5179_v13 = vld [vmem:[#allocation11 + $0x674] sm:$0xf0]  ;;  %v3972_v46 = vld [vmem:[#allocation11 + $0x2b8] sm:$0xf0] }
 0x1d0   :  { %2570 = vmatmul.bf16.vlgmr.msra.gmra.mxu0 %v5659_v44  ;;  %v5686_v1 = vadd.f32 %v2324_v26, %v2312_v56  ;;  %v5123_v18 = vld [vmem:[#allocation11 + $0x4b4] sm:$0xf0]  ;;  %v4451_v24 = vor.u32 %v5179_v13, %v4450_v12  ;;  %v5215_v49 = vld [vmem:[#allocation11 + $0x79c] sm:$0xf]  ;;  %v3975_v63 = vor.u32 %v5055_v45, %v3972_v46 }
 0x1d1   :  { %2592 = vmatpush.bf16.msra.mxu2 %v3747_v4  ;;  %2614 = vmatpush.bf16.msrb.mxu0 %v4387_v9  ;;  %v4258_v4 = vld [vmem:[#allocation11 + $0x4d8] sm:$0xf]  ;;  %v4612_v50 = vld [vmem:[#allocation11 + $0x7b8] sm:$0xf0] }
 0x1d2   :  { %v4259_v11 = vor.u32 %v5131_v5, %v4258_v4  ;;  %v4418_v25 = vld [vmem:[#allocation11 + $0x618] sm:$0xf]  ;;  %v3748_v59 = vld [vmem:[#allocation11 + $0xf8] sm:$0xf0]  ;;  %v4615_v0 = vor.u32 %v5215_v49, %v4612_v50 }
 0x1d3   :  { %2607 = vmatpush.bf16.msra.mxu3 %v3939_v17  ;;  %2629 = vmatpush.bf16.msrb.mxu1 %v4579_v20  ;;  %v5689_v9 = vpop.f32.mrf.mxu2  ;;  %v4226_v17 = vld [vmem:[#allocation11 + $0x498] sm:$0xf]  ;;  %v5047_v4 = vld [vmem:[#allocation11 + $0x25c] sm:$0xf] }
 0x1d4   :  { %v4227_v28 = vor.u32 %v5123_v18, %v4226_v17  ;;  %v5171_v29 = vld [vmem:[#allocation11 + $0x634] sm:$0xf0]  ;;  %v3940_v5 = vld [vmem:[#allocation11 + $0x278] sm:$0xf0] }
 0x1d5   :  { %2593 = vmatpush.bf16.msra.mxu2 %v3715_v21  ;;  %2615 = vmatpush.bf16.msrb.mxu0 %v4355_v27  ;;  %v2313_v20 = vpop.f32.mrf.mxu0  ;;  %v2352_v21 = vpop.f32.mrf.mxu3  ;;  %v4039_v27 = vor.u32 %v5071_v14, %v4036_v16  ;;  %v4419_v41 = vor.u32 %v5171_v29, %v4418_v25  ;;  %v4162_v54 = vld [vmem:[#allocation11 + $0x418] sm:$0xf]  ;;  %v5151_v12 = vld [vmem:[#allocation11 + $0x59c] sm:$0xf]  ;;  %v3943_v14 = vor.u32 %v5047_v4, %v3940_v5 }
 0x1d6   :  { %v4356_v13 = vld [vmem:[#allocation11 + $0x5b8] sm:$0xf0] }
 0x1d7   :  { %2608 = vmatpush.bf16.msra.mxu3 %v3907_v36  ;;  %2630 = vmatpush.bf16.msrb.mxu1 %v4547_v37  ;;  %v5692_v26 = vpop.f32.mrf.mxu1  ;;  %v4644_v36 = vld [vmem:[#allocation11 + $0x7f8] sm:$0xf0]  ;;  %v4194_v37 = vld [vmem:[#allocation11 + $0x458] sm:$0xf]  ;;  %v4359_v23 = vor.u32 %v5151_v12, %v4356_v13 }
 0x1d8   :  { %v4647_v35 = vor.u32 %v5223_v34, %v4644_v36  ;;  %v5039_v18 = vld [vmem:[#allocation11 + $0x21c] sm:$0xf]  ;;  %v5243_v36 = vld [vmem:[#allocation14 + $0x78] sm:$0xff] }
 0x1d9   :  { %2594 = vmatpush.bf16.msra.mxu2 %v3683_v42  ;;  %2616 = vmatpush.bf16.msrb.mxu0 %v4323_v43  ;;  %v4007_v43 = vor.u32 %v5063_v31, %v4004_v32  ;;  %v3908_v20 = vld [vmem:[#allocation11 + $0x238] sm:$0xf0] }
 0x1da   :  { %2609 = vmatmul.bf16.vlgmr.msra.gmra.mxu3 %v5647_v30  ;;  %v4548_v25 = vld [vmem:[#allocation11 + $0x738] sm:$0xf0] }
 0x1db   :  { %2653 = vmatpush.bf16.msrb.mxu3 %v4135_v38  ;;  %2631 = vmatpush.bf16.msrb.mxu1 %v4515_v57  ;;  %v5115_v38 = vld [vmem:[#allocation11 + $0x474] sm:$0xf0]  ;;  %v2339_v42 = vpop.f32.mrf.mxu2  ;;  %v5143_v29 = vld [vmem:[#allocation11 + $0x55c] sm:$0xf] }
 0x1dc   :  { %v4195_v47 = vor.u32 %v5115_v38, %v4194_v37  ;;  %v5107_v57 = vld [vmem:[#allocation11 + $0x434] sm:$0xf0]  ;;  %v4324_v31 = vld [vmem:[#allocation11 + $0x578] sm:$0xf0] }
 0x1dd   :  { %2595 = vmatpush.bf16.msra.mxu2 %v3651_v60  ;;  %2617 = vmatpush.bf16.msrb.mxu0 %v4291_v61  ;;  %v5694_v55 = vpop.f32.mrf.mxu0  ;;  %v5696_v56 = vpop.f32.mrf.mxu3  ;;  %v5159_v60 = vld [vmem:[#allocation11 + $0x5dc] sm:$0xf]  ;;  %v4327_v38 = vor.u32 %v5143_v29, %v4324_v31 }
 0x1de   :  { %v4388_v61 = vld [vmem:[#allocation11 + $0x5f8] sm:$0xf0] }
 0x1df   :  { %2654 = vmatpush.bf16.msrb.mxu3 %v4103_v58  ;;  %2632 = vmatpush.bf16.msrb.mxu1 %v4483_v8  ;;  %v4999_v58 = vld [vmem:[#allocation11 + $0xdc] sm:$0xf]  ;;  %v2378_v62 = vpop.f32.mrf.mxu1  ;;  %v4391_v7 = vor.u32 %v5159_v60, %v4388_v61 }
 0x1e0   :  { %2596 = vmatmul.bf16.vlgmr.msra.gmra.mxu2 %v5650_v53  ;;  %v3751_v3 = vor.u32 %v4999_v58, %v3748_v59  ;;  %v4580_v8 = vld [vmem:[#allocation11 + $0x778] sm:$0xf0]  ;;  %v5235_v58 = vld [vmem:[#allocation14 + $0x38] sm:$0xff] }
 0x1e1   :  { %2640 = vmatpush.bf16.msrb.mxu2 %v3879_v2  ;;  %2618 = vmatpush.bf16.msrb.mxu0 %v4259_v11  ;;  %v4163_v2 = vor.u32 %v5107_v57, %v4162_v54  ;;  %v3716_v11 = vld [vmem:[#allocation11 + $0xb8] sm:$0xf0]  ;;  %v4583_v16 = vor.u32 %v5207_v6, %v4580_v8  ;;  %v5240_v8 = vld [vmem:[#allocation14 + $0x60] sm:$0xff] }
 0x1e2   :  { %v5191_v39 = vld [vmem:[#allocation11 + $0x6dc] sm:$0xf] }
 0x1e3   :  { %2655 = vmatpush.bf16.msrb.mxu3 %v4071_v10  ;;  %2633 = vmatpush.bf16.msrb.mxu1 %v4451_v24  ;;  %v4991_v10 = vld [vmem:[#allocation11 + $0x9c] sm:$0xf] }
 0x1e4   :  { %v3719_v17 = vor.u32 %v4991_v10, %v3716_v11  ;;  %v5199_v24 = vld [vmem:[#allocation11 + $0x71c] sm:$0xf] }
 0x1e5   :  { %2641 = vmatpush.bf16.msrb.mxu2 %v3847_v15  ;;  %2619 = vmatpush.bf16.msrb.mxu0 %v4227_v28  ;;  %v5699_v15 = vpop.f32.mrf.mxu2  ;;  %v2365_v21 = vpop.f32.mrf.mxu0  ;;  %v3684_v28 = vld [vmem:[#allocation11 + $0x78] sm:$0xf0]  ;;  %v4551_v34 = vor.u32 %v5199_v24, %v4548_v25  ;;  %v5232_v24 = vld [vmem:[#allocation14 + $0x20] sm:$0xff] }
 0x1e6   :  { %v2404_v22 = vpop.f32.mrf.mxu3  ;;  %v4516_v40 = vld [vmem:[#allocation11 + $0x6f8] sm:$0xf0]  ;;  %v5239_v21 = vld [vmem:[#allocation14 + $0x58] sm:$0xff] }
 0x1e7   :  { %2656 = vmatpush.bf16.msrb.mxu3 %v4039_v27  ;;  %2634 = vmatpush.bf16.msrb.mxu1 %v4419_v41  ;;  %v4983_v27 = vld [vmem:[#allocation11 + $0x5c] sm:$0xf]  ;;  %v5702_v32 = vpop.f32.mrf.mxu1  ;;  %v4519_v46 = vor.u32 %v5191_v39, %v4516_v40  ;;  %v5257_v39 = vld [vmem:[#allocation14 + $0xe8] sm:$0xff] }
 0x1e8   :  { %v3687_v37 = vor.u32 %v4983_v27, %v3684_v28  ;;  %v4975_v41 = vld [vmem:[#allocation11 + $0x1c] sm:$0xf] }
 0x1e9   :  { %2642 = vmatpush.bf16.msrb.mxu2 %v3815_v33  ;;  %2620 = vmatpush.bf16.msrb.mxu0 %v4195_v47  ;;  %v3911_v33 = vor.u32 %v5039_v18, %v3908_v20  ;;  %v3652_v42 = vld [vmem:[#allocation11 + $0x38] sm:$0xf0] }
 0x1ea   :  { %2635 = vmatmul.bf16.vlgmr.msrb.gmra.mxu1 %v5655_v19  ;;  %v5242_v47 = vld [vmem:[#allocation14 + $0x70] sm:$0xff] }
 0x1eb   :  { %2657 = vmatpush.bf16.msrb.mxu3 %v4007_v43  ;;  %2679 = vmatpush.bf16.msra.mxu1 %v4647_v35  ;;  %v5135_v43 = vld [vmem:[#allocation11 + $0x51c] sm:$0xf] }
 0x1ec   :  { %v4292_v35 = vld [vmem:[#allocation11 + $0x538] sm:$0xf0] }
 0x1ed   :  { %2643 = vmatpush.bf16.msrb.mxu2 %v3783_v48  ;;  %2621 = vmatpush.bf16.msrb.mxu0 %v4163_v2  ;;  %v2391_v45 = vpop.f32.mrf.mxu2  ;;  %v3655_v48 = vor.u32 %v4975_v41, %v3652_v42  ;;  %v4295_v49 = vor.u32 %v5135_v43, %v4292_v35  ;;  %v5183_v50 = vld [vmem:[#allocation11 + $0x69c] sm:$0xf]  ;;  %v5705_v57 = vpop.f32.mrf.mxu0  ;;  %v983_v43 = vperm.slane %v5679_v52, 3 }
 0x1ee   :  { %v4484_v54 = vld [vmem:[#allocation11 + $0x6b8] sm:$0xf0]  ;;  %v5256_v45 = vld [vmem:[#allocation14 + $0xe0] sm:$0xff] }
 0x1ef   :  { %2658 = vmatpush.bf16.msrb.mxu3 %v3975_v63  ;;  %2680 = vmatpush.bf16.msra.mxu1 %v4615_v0  ;;  %v5127_v59 = vld [vmem:[#allocation11 + $0x4dc] sm:$0xf]  ;;  %v2430_v61 = vpop.f32.mrf.mxu1  ;;  %v4487_v62 = vor.u32 %v5183_v50, %v4484_v54  ;;  %v5241_v63 = vld [vmem:[#allocation14 + $0x68] sm:$0xff]  ;;  %v982_v50 = vperm.slane %v5679_v52, 2  ;;  %v5255_v54 = vld [vmem:[#allocation14 + $0xd8] sm:$0xff] }
 0x1f0   :  { %2622 = vmatmul.bf16.vlgmr.msrb.gmra.mxu0 %v5659_v44  ;;  %v4260_v60 = vld [vmem:[#allocation11 + $0x4f8] sm:$0xf0]  ;;  %v5267_v61 = vld [vmem:[#allocation14 + $0x138] sm:$0xff] }
 0x1f1   :  { %2644 = vmatpush.bf16.msrb.mxu2 %v3751_v3  ;;  %2666 = vmatpush.bf16.msra.mxu0 %v4391_v7  ;;  %v4263_v0 = vor.u32 %v5127_v59, %v4260_v60  ;;  %v5175_v2 = vld [vmem:[#allocation11 + $0x65c] sm:$0xf]  ;;  %v2692_v59 = vmax.f32 %v5686_v1, 0.0  ;;  %v5248_v60 = vld [vmem:[#allocation14 + $0xa0] sm:$0xff] }
 0x1f2   :  { %v4452_v3 = vld [vmem:[#allocation11 + $0x678] sm:$0xf0] }
 0x1f3   :  { %2659 = vmatpush.bf16.msrb.mxu3 %v3943_v14  ;;  %2681 = vmatpush.bf16.msra.mxu1 %v4583_v16  ;;  %v5234_v4 = vld [vmem:[#allocation14 + $0x30] sm:$0xff]  ;;  %v4455_v7 = vor.u32 %v5175_v2, %v4452_v3  ;;  %v5233_v14 = vld [vmem:[#allocation14 + $0x28] sm:$0xff]  ;;  %v2700_v3 = vpack.c.bf16 %v2692_v59, %v2692_v59 }
 0x1f4   :  { %v5119_v5 = vld [vmem:[#allocation11 + $0x49c] sm:$0xf] }
 0x1f5   :  { %2645 = vmatpush.bf16.msrb.mxu2 %v3719_v17  ;;  %2667 = vmatpush.bf16.msra.mxu0 %v4359_v23  ;;  %v4228_v6 = vld [vmem:[#allocation11 + $0x4b8] sm:$0xf0]  ;;  %v2417_v13 = vpop.f32.mrf.mxu0 }
 0x1f6   :  { %v4231_v10 = vor.u32 %v5119_v5, %v4228_v6  ;;  %v5167_v11 = vld [vmem:[#allocation11 + $0x61c] sm:$0xf]  ;;  %v5247_v5 = vld [vmem:[#allocation14 + $0x98] sm:$0xff] }
 0x1f7   :  { %2660 = vmatpush.bf16.msrb.mxu3 %v3911_v33  ;;  %2682 = vmatpush.bf16.msra.mxu1 %v4551_v34  ;;  %v4420_v12 = vld [vmem:[#allocation11 + $0x638] sm:$0xf0]  ;;  %v5231_v34 = vld [vmem:[#allocation14 + $0x18] sm:$0xff] }
 0x1f8   :  { %v5111_v16 = vld [vmem:[#allocation11 + $0x45c] sm:$0xf]  ;;  %v4423_v20 = vor.u32 %v5167_v11, %v4420_v12  ;;  %v5265_v12 = vld [vmem:[#allocation14 + $0x128] sm:$0xff] }
 0x1f9   :  { %2646 = vmatpush.bf16.msrb.mxu2 %v3687_v37  ;;  %2668 = vmatpush.bf16.msra.mxu0 %v4327_v38  ;;  %v4196_v17 = vld [vmem:[#allocation11 + $0x478] sm:$0xf0]  ;;  %v5237_v38 = vld [vmem:[#allocation14 + $0x48] sm:$0xff] }
 0x1fa   :  { %2661 = vmatmul.bf16.vlgmr.msrb.gmra.mxu3 %v5647_v30  ;;  %v981_v30 = vperm.slane %v5679_v52, 1  ;;  %v4199_v23 = vor.u32 %v5111_v16, %v4196_v17  ;;  %v5103_v25 = vld [vmem:[#allocation11 + $0x41c] sm:$0xf]  ;;  %v5252_v16 = vld [vmem:[#allocation14 + $0xc0] sm:$0xff] }
 0x1fb   :  { %3237 = vmatpush.bf16.msra.mxu3 %v5243_v36  ;;  %2683 = vmatpush.bf16.msra.mxu1 %v4519_v46  ;;  %v4164_v27 = vld [vmem:[#allocation11 + $0x438] sm:$0xf0]  ;;  %v5251_v36 = vld [vmem:[#allocation14 + $0xb8] sm:$0xff]  ;;  %v5229_v46 = vld [vmem:[#allocation14 + $0x8] sm:$0xff] }
 0x1fc   :  { %v2338_v18 = vadd.f32 %v5689_v9, %v981_v30  ;;  %v5238_v29 = vld [vmem:[#allocation14 + $0x50] sm:$0xff]  ;;  %v4167_v33 = vor.u32 %v5103_v25, %v4164_v27  ;;  %v5275_v30 = vld [vmem:[#allocation14 + $0x178] sm:$0xff]  ;;  %v984_v27 = vperm.slane %v5679_v52, 4 }
 0x1fd   :  { %2647 = vmatpush.bf16.msrb.mxu2 %v3655_v48  ;;  %2669 = vmatpush.bf16.msra.mxu0 %v4295_v49  ;;  %v2454_v22 = vpop.f32.mrf.mxu3  ;;  %v5258_v31 = vld [vmem:[#allocation14 + $0xf0] sm:$0xff] }
 0x1fe   :  { %v2351_v28 = vadd.f32 %v5684_v51, %v2338_v18  ;;  %v5230_v41 = vld [vmem:[#allocation14 + $0x10] sm:$0xff] }
 0x1ff   :  { %3238 = vmatpush.bf16.msra.mxu3 %v5242_v47  ;;  %2684 = vmatpush.bf16.msra.mxu1 %v4487_v62  ;;  %v5254_v2 = vld [vmem:[#allocation14 + $0xd0] sm:$0xff] }
 0x200   :  { %2648 = vmatmul.bf16.vlgmr.msrb.gmra.mxu2 %v5650_v53  ;;  %v5259_v53 = vld [vmem:[#allocation14 + $0xf8] sm:$0xff]  ;;  %v2364_v9 = vadd.f32 %v5694_v55, %v2351_v28  ;;  %v5250_v55 = vld [vmem:[#allocation14 + $0xb0] sm:$0xff] }
 0x201   :  { %3224 = vmatpush.bf16.msra.mxu2 %v5235_v58  ;;  %2670 = vmatpush.bf16.msra.mxu0 %v4263_v0  ;;  %v2390_v0 = vadd.f32 %v5699_v15, %v982_v50  ;;  %v5266_v6 = vld [vmem:[#allocation14 + $0x130] sm:$0xff] }
 0x202   :  { %v2377_v51 = vadd.f32 %v5692_v26, %v2364_v9  ;;  %v5249_v26 = vld [vmem:[#allocation14 + $0xa8] sm:$0xff]  ;;  %v5274_v1 = vld [vmem:[#allocation14 + $0x170] sm:$0xff] }
 0x203   :  { %3239 = vmatpush.bf16.msra.mxu3 %v5241_v63  ;;  %2685 = vmatpush.bf16.msra.mxu1 %v4455_v7  ;;  %v2441_v37 = vpop.f32.mrf.mxu2  ;;  %v2403_v7 = vadd.f32 %v5696_v56, %v2390_v0  ;;  %v5246_v15 = vld [vmem:[#allocation14 + $0x90] sm:$0xff]  ;;  %v5264_v56 = vld [vmem:[#allocation14 + $0x120] sm:$0xff] }
 0x204   :  { %v2693_v35 = vmax.f32 %v2377_v51, 0.0  ;;  %v2442_v48 = vadd.f32 %v2441_v37, %v983_v43  ;;  %v5260_v51 = vld [vmem:[#allocation14 + $0x100] sm:$0xff] }
 0x205   :  { %3225 = vmatpush.bf16.msra.mxu2 %v5234_v4  ;;  %2671 = vmatpush.bf16.msra.mxu0 %v4231_v10  ;;  %v2456_v40 = vpop.f32.mrf.mxu3  ;;  %v2416_v13 = vadd.f32 %v5705_v57, %v2403_v7 }
 0x206   :  { %v2701_v49 = vpack.c.bf16 %v2693_v35, %v2693_v35  ;;  %v2455_v63 = vadd.f32 %v2454_v22, %v2442_v48  ;;  %v5244_v22 = vld [vmem:[#allocation14 + $0x80] sm:$0xff]  ;;  %v5283_v35 = vld [vmem:[#allocation14 + $0x1b8] sm:$0xff] }
 0x207   :  { %3240 = vmatpush.bf16.msra.mxu3 %v5240_v8  ;;  %2686 = vmatpush.bf16.msra.mxu1 %v4423_v20  ;;  %v2480_v42 = vpop.f32.mrf.mxu1  ;;  %v5253_v8 = vld [vmem:[#allocation14 + $0xc8] sm:$0xff] }
 0x208   :  { %v5245_v20 = vld [vmem:[#allocation14 + $0x88] sm:$0xff] }
 0x209   :  { %3226 = vmatpush.bf16.msra.mxu2 %v5233_v14  ;;  %2672 = vmatpush.bf16.msra.mxu0 %v4199_v23  ;;  %v5273_v14 = vld [vmem:[#allocation14 + $0x168] sm:$0xff]  ;;  %v5263_v23 = vld [vmem:[#allocation14 + $0x118] sm:$0xff] }
 0x20a   :  { %2687 = vmatmul.bf16.vlgmr.msra.gmra.mxu1 %v5655_v19  ;;  %v5236_v19 = vld [vmem:[#allocation14 + $0x40] sm:$0xff] }
 0x20b   :  { %3241 = vmatpush.bf16.msra.mxu3 %v5239_v21  ;;  %3263 = vmatpush.bf16.msrb.mxu1 %v5259_v53  ;;  %v2443_v47 = vpop.f32.mrf.mxu2  ;;  %v2429_v21 = vadd.f32 %v5702_v32, %v2416_v13  ;;  %v5271_v32 = vld [vmem:[#allocation14 + $0x158] sm:$0xff] }
 0x20c   :  { %v5281_v47 = vld [vmem:[#allocation14 + $0x1a8] sm:$0xff] }
 0x20d   :  { %3227 = vmatpush.bf16.msra.mxu2 %v5232_v24  ;;  %2673 = vmatpush.bf16.msra.mxu0 %v4167_v33  ;;  %v2467_v58 = vpop.f32.mrf.mxu0  ;;  %v2694_v57 = vmax.f32 %v2429_v21, 0.0  ;;  %v5272_v24 = vld [vmem:[#allocation14 + $0x160] sm:$0xff] }
 0x20e   :  { %v2468_v4 = vadd.f32 %v2467_v58, %v2455_v63 }
 0x20f   :  { %3242 = vmatpush.bf16.msra.mxu3 %v5238_v29  ;;  %3264 = vmatpush.bf16.msrb.mxu1 %v5258_v31  ;;  %v2482_v62 = vpop.f32.mrf.mxu1  ;;  %v5262_v29 = vld [vmem:[#allocation14 + $0x110] sm:$0xff]  ;;  %v2702_v31 = vpack.c.bf16 %v2694_v57, %v2694_v57 }
 0x210   :  { %2674 = vmatmul.bf16.vlgmr.msra.gmra.mxu0 %v5659_v44  ;;  %v5228_v44 = vld [vmem:[#allocation14] sm:$0xff]  ;;  %v2481_v11 = vadd.f32 %v2480_v42, %v2468_v4 }
 0x211   :  { %3228 = vmatpush.bf16.msra.mxu2 %v5231_v34  ;;  %3250 = vmatpush.bf16.msrb.mxu0 %v5251_v36  ;;  %v5261_v34 = vld [vmem:[#allocation14 + $0x108] sm:$0xff]  ;;  %v5270_v36 = vld [vmem:[#allocation14 + $0x150] sm:$0xff] }
 0x212   :  { %v2695_v17 = vmax.f32 %v2481_v11, 0.0  ;;  %v5289_v11 = vld [vmem:[#allocation14 + $0x1e8] sm:$0xff] }
 0x213   :  { %3243 = vmatpush.bf16.msra.mxu3 %v5237_v38  ;;  %3265 = vmatpush.bf16.msrb.mxu1 %v5257_v39 }
 0x214   :  { %v2703_v53 = vpack.c.bf16 %v2695_v17, %v2695_v17  ;;  %v5287_v17 = vld [vmem:[#allocation14 + $0x1d8] sm:$0xff] }
 0x215   :  { %3229 = vmatpush.bf16.msra.mxu2 %v5230_v41  ;;  %3251 = vmatpush.bf16.msrb.mxu0 %v5250_v55  ;;  %v2469_v10 = vpop.f32.mrf.mxu0  ;;  %v5269_v41 = vld [vmem:[#allocation14 + $0x148] sm:$0xff] }
 0x217   :  { %3244 = vmatpush.bf16.msra.mxu3 %v5236_v19  ;;  %3266 = vmatpush.bf16.msrb.mxu1 %v5256_v45  ;;  %v5268_v19 = vld [vmem:[#allocation14 + $0x140] sm:$0xff] }
 0x219   :  { %3230 = vmatpush.bf16.msra.mxu2 %v5229_v46  ;;  %3252 = vmatpush.bf16.msrb.mxu0 %v5249_v26  ;;  %v5282_v46 = vld [vmem:[#allocation14 + $0x1b0] sm:$0xff] }
 0x21a   :  { %3245 = vmatmul.bf16.vlgmr.msra.gmra.mxu3 %v2701_v49  ;;  %v5280_v49 = vld [vmem:[#allocation14 + $0x1a0] sm:$0xff] }
 0x21b   :  { %3267 = vmatpush.bf16.msrb.mxu1 %v5255_v54  ;;  %3289 = vmatpush.bf16.msrb.mxu3 %v5275_v30  ;;  %v985_v54 = vperm.slane %v5679_v52, 5 }
 0x21d   :  { %3231 = vmatpush.bf16.msra.mxu2 %v5228_v44  ;;  %3253 = vmatpush.bf16.msrb.mxu0 %v5248_v60  ;;  %v2506_v18 = vpop.f32.mrf.mxu3  ;;  %v5279_v44 = vld [vmem:[#allocation14 + $0x198] sm:$0xff] }
 0x21f   :  { %3268 = vmatpush.bf16.msrb.mxu1 %v5254_v2  ;;  %3290 = vmatpush.bf16.msrb.mxu3 %v5274_v1  ;;  %v5277_v2 = vld [vmem:[#allocation14 + $0x188] sm:$0xff]  ;;  %v5291_v1 = vld [vmem:[#allocation14 + $0x1f8] sm:$0xff] }
 0x220   :  { %3232 = vmatmul.bf16.vlgmr.msra.gmra.mxu2 %v2700_v3 }
 0x221   :  { %3276 = vmatpush.bf16.msrb.mxu2 %v5267_v61  ;;  %3254 = vmatpush.bf16.msrb.mxu0 %v5247_v5  ;;  %v5278_v61 = vld [vmem:[#allocation14 + $0x190] sm:$0xff] }
 0x223   :  { %3269 = vmatpush.bf16.msrb.mxu1 %v5253_v8  ;;  %3291 = vmatpush.bf16.msrb.mxu3 %v5273_v14  ;;  %v2493_v25 = vpop.f32.mrf.mxu2  ;;  %v5290_v8 = vld [vmem:[#allocation14 + $0x1f0] sm:$0xff]  ;;  %v986_v14 = vperm.slane %v5679_v52, 6 }
 0x224   :  { %v2494_v33 = vadd.f32 %v2493_v25, %v984_v27  ;;  %v5284_v27 = vld [vmem:[#allocation14 + $0x1c0] sm:$0xff] }
 0x225   :  { %3277 = vmatpush.bf16.msrb.mxu2 %v5266_v6  ;;  %3255 = vmatpush.bf16.msrb.mxu0 %v5246_v15  ;;  %v2508_v28 = vpop.f32.mrf.mxu3  ;;  %v5276_v6 = vld [vmem:[#allocation14 + $0x180] sm:$0xff] }
 0x226   :  { %v2507_v38 = vadd.f32 %v2506_v18, %v2494_v33  ;;  %v987_v33 = vperm.slane %v5679_v52, 7 }
 0x227   :  { %3270 = vmatpush.bf16.msrb.mxu1 %v5252_v16  ;;  %3292 = vmatpush.bf16.msrb.mxu3 %v5272_v24  ;;  %v2532_v9 = vpop.f32.mrf.mxu1 }
 0x229   :  { %3278 = vmatpush.bf16.msrb.mxu2 %v5265_v12  ;;  %3256 = vmatpush.bf16.msrb.mxu0 %v5245_v20  ;;  %v5288_v12 = vld [vmem:[#allocation14 + $0x1e0] sm:$0xff] }
 0x22a   :  { %3271 = vmatmul.bf16.vlgmr.msrb.gmra.mxu1 %v2703_v53 }
 0x22b   :  { %3293 = vmatpush.bf16.msrb.mxu3 %v5271_v32  ;;  %v2495_v37 = vpop.f32.mrf.mxu2  ;;  %3315 = vmatpush.bf16.msra.mxu1 %v5291_v1 }
 0x22d   :  { %3279 = vmatpush.bf16.msrb.mxu2 %v5264_v56  ;;  %3257 = vmatpush.bf16.msrb.mxu0 %v5244_v22  ;;  %v2519_v39 = vpop.f32.mrf.mxu0  ;;  %v5286_v56 = vld [vmem:[#allocation14 + $0x1d0] sm:$0xff]  ;;  %v5285_v22 = vld [vmem:[#allocation14 + $0x1c8] sm:$0xff] }
 0x22e   :  { %v2520_v40 = vadd.f32 %v2519_v39, %v2507_v38 }
 0x22f   :  { %3294 = vmatpush.bf16.msrb.mxu3 %v5270_v36  ;;  %v2534_v55 = vpop.f32.mrf.mxu1  ;;  %3316 = vmatpush.bf16.msra.mxu1 %v5290_v8 }
 0x230   :  { %3258 = vmatmul.bf16.vlgmr.msrb.gmra.mxu0 %v2702_v31  ;;  %v2533_v42 = vadd.f32 %v2532_v9, %v2520_v40 }
 0x231   :  { %3280 = vmatpush.bf16.msrb.mxu2 %v5263_v23  ;;  %3302 = vmatpush.bf16.msra.mxu0 %v5283_v35 }
 0x232   :  { %v2696_v43 = vmax.f32 %v2533_v42, 0.0 }
 0x233   :  { %3295 = vmatpush.bf16.msrb.mxu3 %v5269_v41  ;;  %3317 = vmatpush.bf16.msra.mxu1 %v5289_v11 }
 0x234   :  { %v2704_v45 = vpack.c.bf16 %v2696_v43, %v2696_v43 }
 0x235   :  { %3281 = vmatpush.bf16.msrb.mxu2 %v5262_v29  ;;  %v2521_v26 = vpop.f32.mrf.mxu0  ;;  %3303 = vmatpush.bf16.msra.mxu0 %v5282_v46 }
 0x237   :  { %3296 = vmatpush.bf16.msrb.mxu3 %v5268_v19  ;;  %3318 = vmatpush.bf16.msra.mxu1 %v5288_v12 }
 0x239   :  { %3282 = vmatpush.bf16.msrb.mxu2 %v5261_v34  ;;  %3304 = vmatpush.bf16.msra.mxu0 %v5281_v47 }
 0x23b   :  { %3319 = vmatpush.bf16.msra.mxu1 %v5287_v17 }
 0x23d   :  { %3283 = vmatpush.bf16.msrb.mxu2 %v5260_v51  ;;  %v2558_v48 = vpop.f32.mrf.mxu3  ;;  %3305 = vmatpush.bf16.msra.mxu0 %v5280_v49 }
 0x23f   :  { %3320 = vmatpush.bf16.msra.mxu1 %v5286_v56 }
 0x240   :  { %3284 = vmatmul.bf16.vlgmr.msrb.gmra.mxu2 %v2704_v45  ;;  %v5309_v45 = vld [vmem:[%s5740_s8] ss:$0 sm:$0xff]  ;;  %s5554_s8 = smov [#allocation16]  }
 0x241   :  { %3306 = vmatpush.bf16.msra.mxu0 %v5279_v44  ;;  %s3334_s28 = sshll.u32 %s5554_s8, 4  ;;  %s3335_s28 = int_to_ptr.vmem [resolvable:$true] %s3334_s28 }
 0x243   :  { %v2545_v50 = vpop.f32.mrf.mxu2  ;;  %3321 = vmatpush.bf16.msra.mxu1 %v5285_v22 }
 0x244   :  { %v2546_v60 = vadd.f32 %v2545_v50, %v985_v54 }
 0x245   :  { %v2560_v58 = vpop.f32.mrf.mxu3  ;;  %3307 = vmatpush.bf16.msra.mxu0 %v5278_v61 }
 0x246   :  { %v2559_v63 = vadd.f32 %v2558_v48, %v2546_v60 }
 0x247   :  { %v2584_v59 = vpop.f32.mrf.mxu1  ;;  %3322 = vmatpush.bf16.msra.mxu1 %v5284_v27 }
 0x249   :  { %3308 = vmatpush.bf16.msra.mxu0 %v5277_v2 }
 0x24b   :  { %v2547_v62 = vpop.f32.mrf.mxu2 }
 0x24d   :  { %v2571_v0 = vpop.f32.mrf.mxu0  ;;  %3309 = vmatpush.bf16.msra.mxu0 %v5276_v6 }
 0x24e   :  { %v2572_v3 = vadd.f32 %v2571_v0, %v2559_v63 }
 0x24f   :  { %v2586_v4 = vpop.f32.mrf.mxu1 }
 0x250   :  { %v2585_v5 = vadd.f32 %v2584_v59, %v2572_v3 }
 0x252   :  { %v2697_v30 = vmax.f32 %v2585_v5, 0.0 }
 0x254   :  { %v2705_v7 = vpack.c.bf16 %v2697_v30, %v2697_v30 }
 0x255   :  { %v2573_v10 = vpop.f32.mrf.mxu0 }
 0x256   :  { %3297 = vmatmul.bf16.vlgmr.msrb.gmra.mxu3 %v2705_v7 }
 0x25d   :  { %v2610_v15 = vpop.f32.mrf.mxu3 }
 0x263   :  { %v2597_v13 = vpop.f32.mrf.mxu2 }
 0x264   :  { %v2598_v20 = vadd.f32 %v2597_v13, %v986_v14 }
 0x265   :  { %v2612_v16 = vpop.f32.mrf.mxu3 }
 0x266   :  { %v2611_v53 = vadd.f32 %v2610_v15, %v2598_v20 }
 0x267   :  { %v2636_v18 = vpop.f32.mrf.mxu1 }
 0x26b   :  { %v2599_v21 = vpop.f32.mrf.mxu2 }
 0x26d   :  { %v2623_v23 = vpop.f32.mrf.mxu0 }
 0x26e   :  { %v2624_v57 = vadd.f32 %v2623_v23, %v2611_v53 }
 0x26f   :  { %v2638_v24 = vpop.f32.mrf.mxu1 }
 0x270   :  { %v2637_v25 = vadd.f32 %v2636_v18, %v2624_v57 }
 0x272   :  { %v2698_v28 = vmax.f32 %v2637_v25, 0.0 }
 0x274   :  { %v2706_v29 = vpack.c.bf16 %v2698_v28, %v2698_v28 }
 0x275   :  { %v2625_v31 = vpop.f32.mrf.mxu0 }
 0x276   :  { %3310 = vmatmul.bf16.vlgmr.msra.gmra.mxu0 %v2706_v29 }
 0x27d   :  { %v2662_v32 = vpop.f32.mrf.mxu3 }
 0x283   :  { %v2649_v9 = vpop.f32.mrf.mxu2 }
 0x284   :  { %v2650_v37 = vadd.f32 %v2649_v9, %v987_v33 }
 0x285   :  { %v2664_v34 = vpop.f32.mrf.mxu3 }
 0x286   :  { %v2663_v51 = vadd.f32 %v2662_v32, %v2650_v37 }
 0x287   :  { %v2688_v36 = vpop.f32.mrf.mxu1 }
 0x28b   :  { %v2651_v38 = vpop.f32.mrf.mxu2 }
 0x28d   :  { %v2675_v39 = vpop.f32.mrf.mxu0 }
 0x28e   :  { %v2676_v40 = vadd.f32 %v2675_v39, %v2663_v51 }
 0x28f   :  { %v2690_v41 = vpop.f32.mrf.mxu1 }
 0x290   :  { %v2689_v55 = vadd.f32 %v2688_v36, %v2676_v40 }
 0x292   :  { %v2699_v42 = vmax.f32 %v2689_v55, 0.0 }
 0x294   :  { %v2707_v43 = vpack.c.bf16 %v2699_v42, %v2699_v42 }
 0x295   :  { %v2677_v19 = vpop.f32.mrf.mxu0 }
 0x296   :  { %3323 = vmatmul.bf16.vlgmr.msra.gmra.mxu1 %v2707_v43 }
 0x29d   :  { %v3246_v35 = vpop.f32.mrf.mxu3 }
 0x2a3   :  { %v3233_v46 = vpop.f32.mrf.mxu2 }
 0x2a4   :  { %v3234_v52 = vadd.f32 %v5309_v45, %v3233_v46 }
 0x2a5   :  { %v3248_v26 = vpop.f32.mrf.mxu3 }
 0x2a6   :  { %v3247_v47 = vadd.f32 %v3246_v35, %v3234_v52 }
 0x2a7   :  { %v3272_v48 = vpop.f32.mrf.mxu1 }
 0x2ab   :  { %v3235_v49 = vpop.f32.mrf.mxu2 }
 0x2ad   :  { %v3259_v50 = vpop.f32.mrf.mxu0 }
 0x2ae   :  { %v3260_v54 = vadd.f32 %v3259_v50, %v3247_v47 }
 0x2af   :  { %v3274_v58 = vpop.f32.mrf.mxu1 }
 0x2b0   :  { %v3273_v44 = vadd.f32 %v3272_v48, %v3260_v54 }
 0x2b5   :  { %v3261_v59 = vpop.f32.mrf.mxu0 }
 0x2c3   :  { %v3285_v60 = vpop.f32.mrf.mxu2 }
 0x2c4   :  { %v3286_v61 = vadd.f32 %v3285_v60, %v3273_v44 }
 0x2cb   :  { %v3287_v62 = vpop.f32.mrf.mxu2 }
 0x2d9   :  { %v3298_v63 = vpop.f32.mrf.mxu3 }
 0x2da   :  { %v3299_v4 = vadd.f32 %v3298_v63, %v3286_v61 }
 0x2e1   :  { %v3300_v0 = vpop.f32.mrf.mxu3 }
 0x2f3   :  { %v3311_v2 = vpop.f32.mrf.mxu0 }
 0x2f4   :  { %v3312_v5 = vadd.f32 %v3311_v2, %v3299_v4 }
 0x2fb   :  { %v3313_v3 = vpop.f32.mrf.mxu0 }
 0x313   :  { %v3324_v6 = vpop.f32.mrf.mxu1 }
 0x314   :  { %v3325_v30 = vadd.f32 %v3324_v6, %v3312_v5 }
 0x316   :  { %3328 = vst [vmem:[#allocation16] sm:$0xff] %v3325_v30 }
 0x317   :  { %3339 = dma.vmem_to_hbm [thread:$0]  %s3335_s28, 128, %s3337_s10, [#allocation4]  }
 0x31b   :  { %v3326_v1 = vpop.f32.mrf.mxu1 }
 0x31c   :  { %5536 = dma.done.wait [#allocation4], 128  }
 0x31d   :  { %5537 = vsyncadd [#allocation4], 4294967168 }
 0x31e   :  { %3344 = vsyncpa [#allocation3], 1 }
 0x31f   :  { %3345 = vsyncpa [#allocation6], 1 }
 0x320   :  { %3346 = vsyncpa [#allocation9], 1 }
 0x321   :  { %3347 = vsyncpa [#allocation12], 1 }
 0x322   :  { %3348 = vsyncpa [#allocation15], 1 }
 0x323   :  { %3349 = vsyncpa [#allocation4], 1 }

</bundles_post_ra>
